<compile_context>
chip_gen: v7x
topology: tpu7x:2x2x1
jax: 0.10.0
libtpu: 0.0.40
codegen_flags: <defaults>
</compile_context>

<pallas_src>
import functools

import jax
import jax.numpy as jnp
import numpy as np
from jax import lax
from jax.experimental import pallas as pl
from jax.experimental.pallas import tpu as pltpu


# --------------------------------------------------------------------------- #
# Fused kernel factory (all args are static Python ints / bools)               #
# --------------------------------------------------------------------------- #
def _build_kernel(*, Cout, HW, K, Wp, M, L1, base, lead2, Lscr, fuse_match):

    def kernel(x_ref, tgt1_ref, w1_ref, b1_ref, mask_ref, w2_ref, b2_ref,
               tgt2_ref, wm_ref, bm_ref, o_ref, h_scr):
        x = x_ref[0]                                                 # (Cin, H*W) f32

        # ---- upconv1 (stride-s transposed conv) --------------------------------
        # Build the dilated + zero-padded conv1 input entirely in VMEM with a
        # one-hot scatter matmul; structural zeros never come from HBM.
        lane1 = lax.broadcasted_iota(jnp.int32, (HW, L1), 1)
        scatter1 = (lane1 == tgt1_ref[...]).astype(jnp.float32)      # (HW, L1) one-hot
        x1p = jnp.dot(x, scatter1, preferred_element_type=jnp.float32)   # (Cin, L1)

        # KxK-tap correlation as shifted-slice matmuls (im2col folded in-kernel).
        acc = jnp.zeros((Cout, M), jnp.float32)
        for t in range(K * K):
            off = (t // K) * Wp + (t % K)
            acc = acc + jnp.dot(w1_ref[t], x1p[:, off:off + M],
                                preferred_element_type=jnp.float32)
        # bias + ReLU, then zero the over-wide "garbage" columns so they become the
        # zero padding ring that upconv2 expects.
        h = jnp.maximum(acc + b1_ref[...], 0.0) * mask_ref[...]

        # ---- hand h to upconv2 through a zero-padded VMEM plane (never in HBM) --
        h_scr[...] = jnp.zeros((Cout, Lscr), jnp.float32)
        h_scr[:, pl.ds(base, M)] = h                                 # lane-aligned place

        # ---- upconv2 (stride 1) ------------------------------------------------
        acc = jnp.zeros((Cout, M), jnp.float32)
        for t in range(K * K):
            off = base - lead2 + (t // K) * Wp + (t % K)
            acc = acc + jnp.dot(w2_ref[t], h_scr[:, pl.ds(off, M)],
                                preferred_element_type=jnp.float32)
        out = acc + b2_ref[...]

        # ---- fused match_dim skip (1x1 stride-s transposed conv on x) -----------
        if fuse_match:
            y = jnp.dot(wm_ref[...], x, preferred_element_type=jnp.float32)  # (Cout, HW)
            lane2 = lax.broadcasted_iota(jnp.int32, (HW, M), 1)
            scatter2 = (lane2 == tgt2_ref[...]).astype(jnp.float32)           # (HW, M)
            out = out + jnp.dot(y, scatter2, preferred_element_type=jnp.float32)
            out = out + bm_ref[...]

        o_ref[0] = out.astype(o_ref.dtype)

    return kernel


# --------------------------------------------------------------------------- #
# UpConvBlock forward (NCHW in, NCHW out)                                      #
# --------------------------------------------------------------------------- #
def init_upconv_block(key, in_dim, out_dim, kernel_size):
    ks = jax.random.split(key, 6)
    scale = 0.1
    return {
        "w1": scale * jax.random.normal(ks[0], (in_dim, out_dim, kernel_size, kernel_size), jnp.float32),
        "b1": scale * jax.random.normal(ks[1], (out_dim,), jnp.float32),
        "w2": scale * jax.random.normal(ks[2], (out_dim, out_dim, kernel_size, kernel_size), jnp.float32),
        "b2": scale * jax.random.normal(ks[3], (out_dim,), jnp.float32),
        "wm": scale * jax.random.normal(ks[4], (in_dim, out_dim, 1, 1), jnp.float32),
        "bm": scale * jax.random.normal(ks[5], (out_dim,), jnp.float32),
    }


def upconv_block_forward(params, x, *, in_dim, out_dim, kernel_size, stride,
                         padding, output_padding):
    N, Cin, H, W = x.shape
    K = kernel_size
    if Cin != in_dim:
        raise ValueError("input channel count does not match in_dim")
    if not (0 <= output_padding < stride):
        raise ValueError("ConvTranspose2d requires 0 <= output_padding < stride")
    if padding > K - 1:
        raise ValueError("padding > kernel_size - 1 is not supported")
    if K != 2 * padding + 1:
        raise ValueError("UpConvBlock's residual add requires kernel_size == 2*padding + 1 "
                         "(the PyTorch module itself raises a shape mismatch otherwise)")
    fuse_match = (in_dim != out_dim)
    if fuse_match and output_padding != 1:
        raise ValueError("match_dim skip requires output_padding == 1 "
                         "(the PyTorch module itself raises a shape mismatch otherwise)")

    # Output spatial size (conv2 with K == 2*padding + 1 preserves it).
    Ho = (H - 1) * stride - 2 * padding + K + output_padding
    Wo = (W - 1) * stride - 2 * padding + K + output_padding

    HW = H * W
    # Wide row stride: >= Wo + K - 1 (needed by the shifted-slice correlation) and,
    # if cheaply possible, rounded up so the flat spatial axis M is lane-dense.
    Wp_min = Wo + K - 1
    Wp = next((c for c in range(Wp_min, Wp_min + 129) if (Ho * c) % 128 == 0), Wp_min)
    M = Ho * Wp                            # flattened wide output / h length
    L1 = (Ho + K) * Wp                     # flat dilated+padded conv1 input (+ safety row)
    pad1 = K - 1 - padding                 # correlation-form edge padding
    lead2 = pad1 * (Wp + 1)                # flat offset of h inside conv2's padded plane
    base = ((lead2 + 127) // 128) * 128    # lane-aligned placement of h in the scratch
    Lscr = base + M + K * Wp               # scratch length (leading + trailing zero pad)

    f32 = jnp.float32
    x_flat = x.reshape(N, Cin, HW).astype(f32)

    # Per-tap correlation matrices: spatially flipped, (Cout, Cin) per (kh, kw).
    w1c = jnp.transpose(params["w1"][:, :, ::-1, ::-1], (2, 3, 1, 0)).reshape(K * K, out_dim, in_dim).astype(f32)
    w2c = jnp.transpose(params["w2"][:, :, ::-1, ::-1], (2, 3, 1, 0)).reshape(K * K, out_dim, out_dim).astype(f32)
    b1 = params["b1"].reshape(out_dim, 1).astype(f32)
    b2 = params["b2"].reshape(out_dim, 1).astype(f32)
    if fuse_match:
        wm = params["wm"][:, :, 0, 0].T.astype(f32)              # (Cout, Cin)
        bm = params["bm"].reshape(out_dim, 1).astype(f32)
    else:
        wm = jnp.zeros((out_dim, in_dim), f32)
        bm = jnp.zeros((out_dim, 1), f32)

    # One-hot scatter targets (tiny int32 vectors; the dense one-hot matrices are
    # built inside the kernel in VMEM and never touch HBM).
    kk = jnp.arange(HW, dtype=jnp.int32)
    ii, jj = kk // W, kk % W
    tgt1 = ((stride * ii + pad1) * Wp + stride * jj + pad1).reshape(HW, 1)   # dilation+pad
    tgt2 = (stride * ii * Wp + stride * jj).reshape(HW, 1)                   # match upsample
    colmask = jnp.tile((jnp.arange(Wp) < Wo).astype(f32), (Ho,)).reshape(1, M)

    kernel = _build_kernel(Cout=out_dim, HW=HW, K=K, Wp=Wp, M=M, L1=L1,
                           base=base, lead2=lead2, Lscr=Lscr, fuse_match=fuse_match)

    flops = N * (2 * in_dim * HW * L1
                 + 2 * K * K * out_dim * in_dim * M
                 + 2 * K * K * out_dim * out_dim * M
                 + (2 * out_dim * in_dim * HW + 2 * out_dim * HW * M if fuse_match else 0))
    bytes_accessed = 4 * (N * in_dim * HW + N * out_dim * M
                          + K * K * out_dim * (in_dim + out_dim)
                          + out_dim * (3 + in_dim) + 2 * HW + M)

    out_wide = pl.pallas_call(
        kernel,
        out_shape=jax.ShapeDtypeStruct((N, out_dim, M), f32),
        grid=(N,),
        in_specs=[
            pl.BlockSpec((1, in_dim, HW), lambda n: (n, 0, 0)),
            pl.BlockSpec((HW, 1), lambda n: (0, 0)),
            pl.BlockSpec((K * K, out_dim, in_dim), lambda n: (0, 0, 0)),
            pl.BlockSpec((out_dim, 1), lambda n: (0, 0)),
            pl.BlockSpec((1, M), lambda n: (0, 0)),
            pl.BlockSpec((K * K, out_dim, out_dim), lambda n: (0, 0, 0)),
            pl.BlockSpec((out_dim, 1), lambda n: (0, 0)),
            pl.BlockSpec((HW, 1), lambda n: (0, 0)),
            pl.BlockSpec((out_dim, in_dim), lambda n: (0, 0)),
            pl.BlockSpec((out_dim, 1), lambda n: (0, 0)),
        ],
        out_specs=pl.BlockSpec((1, out_dim, M), lambda n: (n, 0, 0)),
        scratch_shapes=[pltpu.VMEM((out_dim, Lscr), f32)],
        compiler_params=pltpu.CompilerParams(
            dimension_semantics=("parallel",),
            vmem_limit_bytes=32 * 1024 * 1024),
        cost_estimate=pl.CostEstimate(flops=int(flops), transcendentals=0,
                                      bytes_accessed=int(bytes_accessed)),
    )(x_flat, tgt1, w1c, b1, colmask, w2c, b2, tgt2, wm, bm)

    # Drop the over-wide columns -> exact NCHW output. No transpose needed.
    out = out_wide.reshape(N, out_dim, Ho, Wp)[:, :, :, :Wo]

    if not fuse_match:
        if (Ho, Wo) != (H, W):
            raise ValueError("in_dim == out_dim identity skip requires matching spatial "
                             "dims (the PyTorch module raises the same shape error)")
        out = out + x.astype(out.dtype)
    return out


# --------------------------------------------------------------------------- #
# Pure-JAX reference (lax.conv_general_dilated) for verification               #
# --------------------------------------------------------------------------- #
def _ref_conv_transpose(x, w, b, *, stride, padding, output_padding):
    Cout, KH, KW = w.shape[1], w.shape[2], w.shape[3]
    w_oihw = jnp.transpose(w[:, :, ::-1, ::-1], (1, 0, 2, 3))
    out = lax.conv_general_dilated(
        x, w_oihw, window_strides=(1, 1),
        padding=((KH - 1 - padding, KH - 1 - padding + output_padding),
                 (KW - 1 - padding, KW - 1 - padding + output_padding)),
        lhs_dilation=(stride, stride),
        dimension_numbers=("NCHW", "OIHW", "NCHW"),
        precision=lax.Precision.HIGHEST)
    return out + b.reshape(1, Cout, 1, 1)


def _ref_forward(params, x, *, in_dim, out_dim, stride, padding, output_padding):
    h = jnp.maximum(
        _ref_conv_transpose(x, params["w1"], params["b1"], stride=stride,
                            padding=padding, output_padding=output_padding), 0.0)
    out = _ref_conv_transpose(h, params["w2"], params["b2"], stride=1,
                              padding=padding, output_padding=0)
    if in_dim == out_dim:
        out = out + x
    else:
        out = out + _ref_conv_transpose(x, params["wm"], params["bm"], stride=stride,
                                        padding=0, output_padding=1)
    return out


if __name__ == "__main__":
    # Small config consistent with the module (output_padding=1 requires stride >= 2).
    in_dim, out_dim, kernel_size = 4, 8, 3
    stride, padding, output_padding = 2, 1, 1

    key = jax.random.PRNGKey(0)
    kp, kx = jax.random.split(key)
    params = init_upconv_block(kp, in_dim, out_dim, kernel_size)
    x = jax.random.normal(kx, (2, in_dim, 16, 16), jnp.float32)   # NCHW, like PyTorch

    fwd = functools.partial(upconv_block_forward, in_dim=in_dim, out_dim=out_dim,
                            kernel_size=kernel_size, stride=stride, padding=padding,
                            output_padding=output_padding)
    out = jax.block_until_ready(jax.jit(fwd)(params, x))

    ref = _ref_forward(params, x, in_dim=in_dim, out_dim=out_dim, stride=stride,
                       padding=padding, output_padding=output_padding)
    assert out.shape == (2, out_dim, 32, 32), out.shape
    np.testing.assert_allclose(np.asarray(out), np.asarray(ref), rtol=2e-2, atol=2e-2)
    print("KERNEL_OK")
</pallas_src>

<mosaic_0001>
module attributes {stable_mosaic.version = 11 : i64} {
  func.func @kernel(%arg0: i32, %arg1: memref<1x4x256xf32, #tpu.memory_space<vmem>>, %arg2: memref<256x1xi32, #tpu.memory_space<vmem>>, %arg3: memref<9x8x4xf32, #tpu.memory_space<vmem>>, %arg4: memref<8x1xf32, #tpu.memory_space<vmem>>, %arg5: memref<1x1152xf32, #tpu.memory_space<vmem>>, %arg6: memref<9x8x8xf32, #tpu.memory_space<vmem>>, %arg7: memref<8x1xf32, #tpu.memory_space<vmem>>, %arg8: memref<256x1xi32, #tpu.memory_space<vmem>>, %arg9: memref<8x4xf32, #tpu.memory_space<vmem>>, %arg10: memref<8x1xf32, #tpu.memory_space<vmem>>, %arg11: memref<1x8x1152xf32, #tpu.memory_space<vmem>>, %arg12: memref<8x1388xf32, #tpu.memory_space<vmem>>) attributes {dimension_semantics = [#tpu.dimension_semantics<parallel>], iteration_bounds = array<i64: 2>, scalar_prefetch = 0 : i64, scratch_operands = 1 : i64, tpu.core_type = #tpu.core_type<tc>, window_params = [{transform_indices = @transform_0, window_bounds = array<i64: 1, 4, 256>}, {pipeline_mode = #tpu.pipeline_mode<synchronous>, transform_indices = @transform_1, window_bounds = array<i64: 256, 1>}, {pipeline_mode = #tpu.pipeline_mode<synchronous>, transform_indices = @transform_2, window_bounds = array<i64: 9, 8, 4>}, {pipeline_mode = #tpu.pipeline_mode<synchronous>, transform_indices = @transform_3, window_bounds = array<i64: 8, 1>}, {pipeline_mode = #tpu.pipeline_mode<synchronous>, transform_indices = @transform_4, window_bounds = array<i64: 1, 1152>}, {pipeline_mode = #tpu.pipeline_mode<synchronous>, transform_indices = @transform_5, window_bounds = array<i64: 9, 8, 8>}, {pipeline_mode = #tpu.pipeline_mode<synchronous>, transform_indices = @transform_6, window_bounds = array<i64: 8, 1>}, {pipeline_mode = #tpu.pipeline_mode<synchronous>, transform_indices = @transform_7, window_bounds = array<i64: 256, 1>}, {pipeline_mode = #tpu.pipeline_mode<synchronous>, transform_indices = @transform_8, window_bounds = array<i64: 8, 4>}, {pipeline_mode = #tpu.pipeline_mode<synchronous>, transform_indices = @transform_9, window_bounds = array<i64: 8, 1>}, {transform_indices = @transform_10, window_bounds = array<i64: 1, 8, 1152>}]} {
    %c0 = arith.constant 0 : index
    %c0_0 = arith.constant 0 : index
    %c0_1 = arith.constant 0 : index
    %0 = vector.load %arg1[%c0, %c0_0, %c0_1] : memref<1x4x256xf32, #tpu.memory_space<vmem>>, vector<1x4x256xf32>
    %1 = vector.shape_cast %0 : vector<1x4x256xf32> to vector<4x256xf32>
    %2 = tpu.iota {dimensions = array<i32: 1>} : vector<256x1260xi32>
    %c0_2 = arith.constant 0 : index
    %c0_3 = arith.constant 0 : index
    %3 = vector.load %arg2[%c0_2, %c0_3] : memref<256x1xi32, #tpu.memory_space<vmem>>, vector<256x1xi32>
    %4 = vector.broadcast %3 : vector<256x1xi32> to vector<256x1260xi32>
    %5 = arith.cmpi eq, %2, %4 : vector<256x1260xi32>
    %6 = arith.extui %5 : vector<256x1260xi1> to vector<256x1260xi32>
    %7 = arith.sitofp %6 : vector<256x1260xi32> to vector<256x1260xf32>
    %cst = arith.constant dense<0.000000e+00> : vector<4x1260xf32>
    %8 = tpu.matmul %1, %7, %cst {dimension_numbers = #tpu.dot_dimension_numbers<[1], [0], [0], [1], [0, 0, 1, 1], [], []>} : vector<4x256xf32>, vector<256x1260xf32>, vector<4x1260xf32> -> vector<4x1260xf32>
    %cst_4 = arith.constant 0.000000e+00 : f32
    %9 = vector.broadcast %cst_4 : f32 to vector<8x1152xf32>
    %c0_5 = arith.constant 0 : index
    %c0_6 = arith.constant 0 : index
    %c0_7 = arith.constant 0 : index
    %10 = vector.load %arg3[%c0_5, %c0_6, %c0_7] : memref<9x8x4xf32, #tpu.memory_space<vmem>>, vector<1x8x4xf32>
    %11 = vector.shape_cast %10 : vector<1x8x4xf32> to vector<8x4xf32>
    %12 = vector.extract_strided_slice %8 {offsets = [0, 0], sizes = [4, 1152], strides = [1, 1]} : vector<4x1260xf32> to vector<4x1152xf32>
    %cst_8 = arith.constant dense<0.000000e+00> : vector<8x1152xf32>
    %13 = tpu.matmul %11, %12, %cst_8 {dimension_numbers = #tpu.dot_dimension_numbers<[1], [0], [0], [1], [0, 0, 1, 1], [], []>} : vector<8x4xf32>, vector<4x1152xf32>, vector<8x1152xf32> -> vector<8x1152xf32>
    %14 = arith.addf %9, %13 : vector<8x1152xf32>
    %c1 = arith.constant 1 : index
    %c0_9 = arith.constant 0 : index
    %c0_10 = arith.constant 0 : index
    %15 = vector.load %arg3[%c1, %c0_9, %c0_10] : memref<9x8x4xf32, #tpu.memory_space<vmem>>, vector<1x8x4xf32>
    %16 = vector.shape_cast %15 : vector<1x8x4xf32> to vector<8x4xf32>
    %17 = vector.extract_strided_slice %8 {offsets = [0, 1], sizes = [4, 1152], strides = [1, 1]} : vector<4x1260xf32> to vector<4x1152xf32>
    %cst_11 = arith.constant dense<0.000000e+00> : vector<8x1152xf32>
    %18 = tpu.matmul %16, %17, %cst_11 {dimension_numbers = #tpu.dot_dimension_numbers<[1], [0], [0], [1], [0, 0, 1, 1], [], []>} : vector<8x4xf32>, vector<4x1152xf32>, vector<8x1152xf32> -> vector<8x1152xf32>
    %19 = arith.addf %14, %18 : vector<8x1152xf32>
    %c2 = arith.constant 2 : index
    %c0_12 = arith.constant 0 : index
    %c0_13 = arith.constant 0 : index
    %20 = vector.load %arg3[%c2, %c0_12, %c0_13] : memref<9x8x4xf32, #tpu.memory_space<vmem>>, vector<1x8x4xf32>
    %21 = vector.shape_cast %20 : vector<1x8x4xf32> to vector<8x4xf32>
    %22 = vector.extract_strided_slice %8 {offsets = [0, 2], sizes = [4, 1152], strides = [1, 1]} : vector<4x1260xf32> to vector<4x1152xf32>
    %cst_14 = arith.constant dense<0.000000e+00> : vector<8x1152xf32>
    %23 = tpu.matmul %21, %22, %cst_14 {dimension_numbers = #tpu.dot_dimension_numbers<[1], [0], [0], [1], [0, 0, 1, 1], [], []>} : vector<8x4xf32>, vector<4x1152xf32>, vector<8x1152xf32> -> vector<8x1152xf32>
    %24 = arith.addf %19, %23 : vector<8x1152xf32>
    %c3 = arith.constant 3 : index
    %c0_15 = arith.constant 0 : index
    %c0_16 = arith.constant 0 : index
    %25 = vector.load %arg3[%c3, %c0_15, %c0_16] : memref<9x8x4xf32, #tpu.memory_space<vmem>>, vector<1x8x4xf32>
    %26 = vector.shape_cast %25 : vector<1x8x4xf32> to vector<8x4xf32>
    %27 = vector.extract_strided_slice %8 {offsets = [0, 36], sizes = [4, 1152], strides = [1, 1]} : vector<4x1260xf32> to vector<4x1152xf32>
    %cst_17 = arith.constant dense<0.000000e+00> : vector<8x1152xf32>
    %28 = tpu.matmul %26, %27, %cst_17 {dimension_numbers = #tpu.dot_dimension_numbers<[1], [0], [0], [1], [0, 0, 1, 1], [], []>} : vector<8x4xf32>, vector<4x1152xf32>, vector<8x1152xf32> -> vector<8x1152xf32>
    %29 = arith.addf %24, %28 : vector<8x1152xf32>
    %c4 = arith.constant 4 : index
    %c0_18 = arith.constant 0 : index
    %c0_19 = arith.constant 0 : index
    %30 = vector.load %arg3[%c4, %c0_18, %c0_19] : memref<9x8x4xf32, #tpu.memory_space<vmem>>, vector<1x8x4xf32>
    %31 = vector.shape_cast %30 : vector<1x8x4xf32> to vector<8x4xf32>
    %32 = vector.extract_strided_slice %8 {offsets = [0, 37], sizes = [4, 1152], strides = [1, 1]} : vector<4x1260xf32> to vector<4x1152xf32>
    %cst_20 = arith.constant dense<0.000000e+00> : vector<8x1152xf32>
    %33 = tpu.matmul %31, %32, %cst_20 {dimension_numbers = #tpu.dot_dimension_numbers<[1], [0], [0], [1], [0, 0, 1, 1], [], []>} : vector<8x4xf32>, vector<4x1152xf32>, vector<8x1152xf32> -> vector<8x1152xf32>
    %34 = arith.addf %29, %33 : vector<8x1152xf32>
    %c5 = arith.constant 5 : index
    %c0_21 = arith.constant 0 : index
    %c0_22 = arith.constant 0 : index
    %35 = vector.load %arg3[%c5, %c0_21, %c0_22] : memref<9x8x4xf32, #tpu.memory_space<vmem>>, vector<1x8x4xf32>
    %36 = vector.shape_cast %35 : vector<1x8x4xf32> to vector<8x4xf32>
    %37 = vector.extract_strided_slice %8 {offsets = [0, 38], sizes = [4, 1152], strides = [1, 1]} : vector<4x1260xf32> to vector<4x1152xf32>
    %cst_23 = arith.constant dense<0.000000e+00> : vector<8x1152xf32>
    %38 = tpu.matmul %36, %37, %cst_23 {dimension_numbers = #tpu.dot_dimension_numbers<[1], [0], [0], [1], [0, 0, 1, 1], [], []>} : vector<8x4xf32>, vector<4x1152xf32>, vector<8x1152xf32> -> vector<8x1152xf32>
    %39 = arith.addf %34, %38 : vector<8x1152xf32>
    %c6 = arith.constant 6 : index
    %c0_24 = arith.constant 0 : index
    %c0_25 = arith.constant 0 : index
    %40 = vector.load %arg3[%c6, %c0_24, %c0_25] : memref<9x8x4xf32, #tpu.memory_space<vmem>>, vector<1x8x4xf32>
    %41 = vector.shape_cast %40 : vector<1x8x4xf32> to vector<8x4xf32>
    %42 = vector.extract_strided_slice %8 {offsets = [0, 72], sizes = [4, 1152], strides = [1, 1]} : vector<4x1260xf32> to vector<4x1152xf32>
    %cst_26 = arith.constant dense<0.000000e+00> : vector<8x1152xf32>
    %43 = tpu.matmul %41, %42, %cst_26 {dimension_numbers = #tpu.dot_dimension_numbers<[1], [0], [0], [1], [0, 0, 1, 1], [], []>} : vector<8x4xf32>, vector<4x1152xf32>, vector<8x1152xf32> -> vector<8x1152xf32>
    %44 = arith.addf %39, %43 : vector<8x1152xf32>
    %c7 = arith.constant 7 : index
    %c0_27 = arith.constant 0 : index
    %c0_28 = arith.constant 0 : index
    %45 = vector.load %arg3[%c7, %c0_27, %c0_28] : memref<9x8x4xf32, #tpu.memory_space<vmem>>, vector<1x8x4xf32>
    %46 = vector.shape_cast %45 : vector<1x8x4xf32> to vector<8x4xf32>
    %47 = vector.extract_strided_slice %8 {offsets = [0, 73], sizes = [4, 1152], strides = [1, 1]} : vector<4x1260xf32> to vector<4x1152xf32>
    %cst_29 = arith.constant dense<0.000000e+00> : vector<8x1152xf32>
    %48 = tpu.matmul %46, %47, %cst_29 {dimension_numbers = #tpu.dot_dimension_numbers<[1], [0], [0], [1], [0, 0, 1, 1], [], []>} : vector<8x4xf32>, vector<4x1152xf32>, vector<8x1152xf32> -> vector<8x1152xf32>
    %49 = arith.addf %44, %48 : vector<8x1152xf32>
    %c8 = arith.constant 8 : index
    %c0_30 = arith.constant 0 : index
    %c0_31 = arith.constant 0 : index
    %50 = vector.load %arg3[%c8, %c0_30, %c0_31] : memref<9x8x4xf32, #tpu.memory_space<vmem>>, vector<1x8x4xf32>
    %51 = vector.shape_cast %50 : vector<1x8x4xf32> to vector<8x4xf32>
    %52 = vector.extract_strided_slice %8 {offsets = [0, 74], sizes = [4, 1152], strides = [1, 1]} : vector<4x1260xf32> to vector<4x1152xf32>
    %cst_32 = arith.constant dense<0.000000e+00> : vector<8x1152xf32>
    %53 = tpu.matmul %51, %52, %cst_32 {dimension_numbers = #tpu.dot_dimension_numbers<[1], [0], [0], [1], [0, 0, 1, 1], [], []>} : vector<8x4xf32>, vector<4x1152xf32>, vector<8x1152xf32> -> vector<8x1152xf32>
    %54 = arith.addf %49, %53 : vector<8x1152xf32>
    %c0_33 = arith.constant 0 : index
    %c0_34 = arith.constant 0 : index
    %55 = vector.load %arg4[%c0_33, %c0_34] : memref<8x1xf32, #tpu.memory_space<vmem>>, vector<8x1xf32>
    %56 = vector.broadcast %55 : vector<8x1xf32> to vector<8x1152xf32>
    %57 = arith.addf %54, %56 : vector<8x1152xf32>
    %cst_35 = arith.constant 0.000000e+00 : f32
    %58 = vector.broadcast %cst_35 : f32 to vector<8x1152xf32>
    %59 = arith.maximumf %57, %58 : vector<8x1152xf32>
    %c0_36 = arith.constant 0 : index
    %c0_37 = arith.constant 0 : index
    %60 = vector.load %arg5[%c0_36, %c0_37] : memref<1x1152xf32, #tpu.memory_space<vmem>>, vector<1x1152xf32>
    %61 = vector.broadcast %60 : vector<1x1152xf32> to vector<8x1152xf32>
    %62 = arith.mulf %59, %61 : vector<8x1152xf32>
    %cst_38 = arith.constant 0.000000e+00 : f32
    %63 = vector.broadcast %cst_38 : f32 to vector<8x1388xf32>
    %c0_39 = arith.constant 0 : index
    %c0_40 = arith.constant 0 : index
    %64 = vector.load %arg12[%c0_39, %c0_40] : memref<8x1388xf32, #tpu.memory_space<vmem>>, vector<8x1388xf32>
    tpu.vector_store %arg12[%c0_39, %c0_40], %63 {strides = array<i32>} : memref<8x1388xf32, #tpu.memory_space<vmem>>, vector<8x1388xf32>,
    %c0_41 = arith.constant 0 : index
    %c128 = arith.constant 128 : index
    %65 = vector.load %arg12[%c0_41, %c128] : memref<8x1388xf32, #tpu.memory_space<vmem>>, vector<8x1152xf32>
    tpu.vector_store %arg12[%c0_41, %c128], %62 {strides = array<i32>} : memref<8x1388xf32, #tpu.memory_space<vmem>>, vector<8x1152xf32>,
    %cst_42 = arith.constant 0.000000e+00 : f32
    %66 = vector.broadcast %cst_42 : f32 to vector<8x1152xf32>
    %c0_43 = arith.constant 0 : index
    %c0_44 = arith.constant 0 : index
    %c0_45 = arith.constant 0 : index
    %67 = vector.load %arg6[%c0_43, %c0_44, %c0_45] : memref<9x8x8xf32, #tpu.memory_space<vmem>>, vector<1x8x8xf32>
    %68 = vector.shape_cast %67 : vector<1x8x8xf32> to vector<8x8xf32>
    %c0_46 = arith.constant 0 : index
    %c91 = arith.constant 91 : index
    %69 = vector.load %arg12[%c0_46, %c91] : memref<8x1388xf32, #tpu.memory_space<vmem>>, vector<8x1152xf32>
    %cst_47 = arith.constant dense<0.000000e+00> : vector<8x1152xf32>
    %70 = tpu.matmul %68, %69, %cst_47 {dimension_numbers = #tpu.dot_dimension_numbers<[1], [0], [0], [1], [0, 0, 1, 1], [], []>} : vector<8x8xf32>, vector<8x1152xf32>, vector<8x1152xf32> -> vector<8x1152xf32>
    %71 = arith.addf %66, %70 : vector<8x1152xf32>
    %c1_48 = arith.constant 1 : index
    %c0_49 = arith.constant 0 : index
    %c0_50 = arith.constant 0 : index
    %72 = vector.load %arg6[%c1_48, %c0_49, %c0_50] : memref<9x8x8xf32, #tpu.memory_space<vmem>>, vector<1x8x8xf32>
    %73 = vector.shape_cast %72 : vector<1x8x8xf32> to vector<8x8xf32>
    %c0_51 = arith.constant 0 : index
    %c92 = arith.constant 92 : index
    %74 = vector.load %arg12[%c0_51, %c92] : memref<8x1388xf32, #tpu.memory_space<vmem>>, vector<8x1152xf32>
    %cst_52 = arith.constant dense<0.000000e+00> : vector<8x1152xf32>
    %75 = tpu.matmul %73, %74, %cst_52 {dimension_numbers = #tpu.dot_dimension_numbers<[1], [0], [0], [1], [0, 0, 1, 1], [], []>} : vector<8x8xf32>, vector<8x1152xf32>, vector<8x1152xf32> -> vector<8x1152xf32>
    %76 = arith.addf %71, %75 : vector<8x1152xf32>
    %c2_53 = arith.constant 2 : index
    %c0_54 = arith.constant 0 : index
    %c0_55 = arith.constant 0 : index
    %77 = vector.load %arg6[%c2_53, %c0_54, %c0_55] : memref<9x8x8xf32, #tpu.memory_space<vmem>>, vector<1x8x8xf32>
    %78 = vector.shape_cast %77 : vector<1x8x8xf32> to vector<8x8xf32>
    %c0_56 = arith.constant 0 : index
    %c93 = arith.constant 93 : index
    %79 = vector.load %arg12[%c0_56, %c93] : memref<8x1388xf32, #tpu.memory_space<vmem>>, vector<8x1152xf32>
    %cst_57 = arith.constant dense<0.000000e+00> : vector<8x1152xf32>
    %80 = tpu.matmul %78, %79, %cst_57 {dimension_numbers = #tpu.dot_dimension_numbers<[1], [0], [0], [1], [0, 0, 1, 1], [], []>} : vector<8x8xf32>, vector<8x1152xf32>, vector<8x1152xf32> -> vector<8x1152xf32>
    %81 = arith.addf %76, %80 : vector<8x1152xf32>
    %c3_58 = arith.constant 3 : index
    %c0_59 = arith.constant 0 : index
    %c0_60 = arith.constant 0 : index
    %82 = vector.load %arg6[%c3_58, %c0_59, %c0_60] : memref<9x8x8xf32, #tpu.memory_space<vmem>>, vector<1x8x8xf32>
    %83 = vector.shape_cast %82 : vector<1x8x8xf32> to vector<8x8xf32>
    %c0_61 = arith.constant 0 : index
    %c127 = arith.constant 127 : index
    %84 = vector.load %arg12[%c0_61, %c127] : memref<8x1388xf32, #tpu.memory_space<vmem>>, vector<8x1152xf32>
    %cst_62 = arith.constant dense<0.000000e+00> : vector<8x1152xf32>
    %85 = tpu.matmul %83, %84, %cst_62 {dimension_numbers = #tpu.dot_dimension_numbers<[1], [0], [0], [1], [0, 0, 1, 1], [], []>} : vector<8x8xf32>, vector<8x1152xf32>, vector<8x1152xf32> -> vector<8x1152xf32>
    %86 = arith.addf %81, %85 : vector<8x1152xf32>
    %c4_63 = arith.constant 4 : index
    %c0_64 = arith.constant 0 : index
    %c0_65 = arith.constant 0 : index
    %87 = vector.load %arg6[%c4_63, %c0_64, %c0_65] : memref<9x8x8xf32, #tpu.memory_space<vmem>>, vector<1x8x8xf32>
    %88 = vector.shape_cast %87 : vector<1x8x8xf32> to vector<8x8xf32>
    %c0_66 = arith.constant 0 : index
    %c128_67 = arith.constant 128 : index
    %89 = vector.load %arg12[%c0_66, %c128_67] : memref<8x1388xf32, #tpu.memory_space<vmem>>, vector<8x1152xf32>
    %cst_68 = arith.constant dense<0.000000e+00> : vector<8x1152xf32>
    %90 = tpu.matmul %88, %89, %cst_68 {dimension_numbers = #tpu.dot_dimension_numbers<[1], [0], [0], [1], [0, 0, 1, 1], [], []>} : vector<8x8xf32>, vector<8x1152xf32>, vector<8x1152xf32> -> vector<8x1152xf32>
    %91 = arith.addf %86, %90 : vector<8x1152xf32>
    %c5_69 = arith.constant 5 : index
    %c0_70 = arith.constant 0 : index
    %c0_71 = arith.constant 0 : index
    %92 = vector.load %arg6[%c5_69, %c0_70, %c0_71] : memref<9x8x8xf32, #tpu.memory_space<vmem>>, vector<1x8x8xf32>
    %93 = vector.shape_cast %92 : vector<1x8x8xf32> to vector<8x8xf32>
    %c0_72 = arith.constant 0 : index
    %c129 = arith.constant 129 : index
    %94 = vector.load %arg12[%c0_72, %c129] : memref<8x1388xf32, #tpu.memory_space<vmem>>, vector<8x1152xf32>
    %cst_73 = arith.constant dense<0.000000e+00> : vector<8x1152xf32>
    %95 = tpu.matmul %93, %94, %cst_73 {dimension_numbers = #tpu.dot_dimension_numbers<[1], [0], [0], [1], [0, 0, 1, 1], [], []>} : vector<8x8xf32>, vector<8x1152xf32>, vector<8x1152xf32> -> vector<8x1152xf32>
    %96 = arith.addf %91, %95 : vector<8x1152xf32>
    %c6_74 = arith.constant 6 : index
    %c0_75 = arith.constant 0 : index
    %c0_76 = arith.constant 0 : index
    %97 = vector.load %arg6[%c6_74, %c0_75, %c0_76] : memref<9x8x8xf32, #tpu.memory_space<vmem>>, vector<1x8x8xf32>
    %98 = vector.shape_cast %97 : vector<1x8x8xf32> to vector<8x8xf32>
    %c0_77 = arith.constant 0 : index
    %c163 = arith.constant 163 : index
    %99 = vector.load %arg12[%c0_77, %c163] : memref<8x1388xf32, #tpu.memory_space<vmem>>, vector<8x1152xf32>
    %cst_78 = arith.constant dense<0.000000e+00> : vector<8x1152xf32>
    %100 = tpu.matmul %98, %99, %cst_78 {dimension_numbers = #tpu.dot_dimension_numbers<[1], [0], [0], [1], [0, 0, 1, 1], [], []>} : vector<8x8xf32>, vector<8x1152xf32>, vector<8x1152xf32> -> vector<8x1152xf32>
    %101 = arith.addf %96, %100 : vector<8x1152xf32>
    %c7_79 = arith.constant 7 : index
    %c0_80 = arith.constant 0 : index
    %c0_81 = arith.constant 0 : index
    %102 = vector.load %arg6[%c7_79, %c0_80, %c0_81] : memref<9x8x8xf32, #tpu.memory_space<vmem>>, vector<1x8x8xf32>
    %103 = vector.shape_cast %102 : vector<1x8x8xf32> to vector<8x8xf32>
    %c0_82 = arith.constant 0 : index
    %c164 = arith.constant 164 : index
    %104 = vector.load %arg12[%c0_82, %c164] : memref<8x1388xf32, #tpu.memory_space<vmem>>, vector<8x1152xf32>
    %cst_83 = arith.constant dense<0.000000e+00> : vector<8x1152xf32>
    %105 = tpu.matmul %103, %104, %cst_83 {dimension_numbers = #tpu.dot_dimension_numbers<[1], [0], [0], [1], [0, 0, 1, 1], [], []>} : vector<8x8xf32>, vector<8x1152xf32>, vector<8x1152xf32> -> vector<8x1152xf32>
    %106 = arith.addf %101, %105 : vector<8x1152xf32>
    %c8_84 = arith.constant 8 : index
    %c0_85 = arith.constant 0 : index
    %c0_86 = arith.constant 0 : index
    %107 = vector.load %arg6[%c8_84, %c0_85, %c0_86] : memref<9x8x8xf32, #tpu.memory_space<vmem>>, vector<1x8x8xf32>
    %108 = vector.shape_cast %107 : vector<1x8x8xf32> to vector<8x8xf32>
    %c0_87 = arith.constant 0 : index
    %c165 = arith.constant 165 : index
    %109 = vector.load %arg12[%c0_87, %c165] : memref<8x1388xf32, #tpu.memory_space<vmem>>, vector<8x1152xf32>
    %cst_88 = arith.constant dense<0.000000e+00> : vector<8x1152xf32>
    %110 = tpu.matmul %108, %109, %cst_88 {dimension_numbers = #tpu.dot_dimension_numbers<[1], [0], [0], [1], [0, 0, 1, 1], [], []>} : vector<8x8xf32>, vector<8x1152xf32>, vector<8x1152xf32> -> vector<8x1152xf32>
    %111 = arith.addf %106, %110 : vector<8x1152xf32>
    %c0_89 = arith.constant 0 : index
    %c0_90 = arith.constant 0 : index
    %112 = vector.load %arg7[%c0_89, %c0_90] : memref<8x1xf32, #tpu.memory_space<vmem>>, vector<8x1xf32>
    %113 = vector.broadcast %112 : vector<8x1xf32> to vector<8x1152xf32>
    %114 = arith.addf %111, %113 : vector<8x1152xf32>
    %c0_91 = arith.constant 0 : index
    %c0_92 = arith.constant 0 : index
    %115 = vector.load %arg9[%c0_91, %c0_92] : memref<8x4xf32, #tpu.memory_space<vmem>>, vector<8x4xf32>
    %cst_93 = arith.constant dense<0.000000e+00> : vector<8x256xf32>
    %116 = tpu.matmul %115, %1, %cst_93 {dimension_numbers = #tpu.dot_dimension_numbers<[1], [0], [0], [1], [0, 0, 1, 1], [], []>} : vector<8x4xf32>, vector<4x256xf32>, vector<8x256xf32> -> vector<8x256xf32>
    %117 = tpu.iota {dimensions = array<i32: 1>} : vector<256x1152xi32>
    %c0_94 = arith.constant 0 : index
    %c0_95 = arith.constant 0 : index
    %118 = vector.load %arg8[%c0_94, %c0_95] : memref<256x1xi32, #tpu.memory_space<vmem>>, vector<256x1xi32>
    %119 = vector.broadcast %118 : vector<256x1xi32> to vector<256x1152xi32>
    %120 = arith.cmpi eq, %117, %119 : vector<256x1152xi32>
    %121 = arith.extui %120 : vector<256x1152xi1> to vector<256x1152xi32>
    %122 = arith.sitofp %121 : vector<256x1152xi32> to vector<256x1152xf32>
    %cst_96 = arith.constant dense<0.000000e+00> : vector<8x1152xf32>
    %123 = tpu.matmul %116, %122, %cst_96 {dimension_numbers = #tpu.dot_dimension_numbers<[1], [0], [0], [1], [0, 0, 1, 1], [], []>} : vector<8x256xf32>, vector<256x1152xf32>, vector<8x1152xf32> -> vector<8x1152xf32>
    %124 = arith.addf %114, %123 : vector<8x1152xf32>
    %c0_97 = arith.constant 0 : index
    %c0_98 = arith.constant 0 : index
    %125 = vector.load %arg10[%c0_97, %c0_98] : memref<8x1xf32, #tpu.memory_space<vmem>>, vector<8x1xf32>
    %126 = vector.broadcast %125 : vector<8x1xf32> to vector<8x1152xf32>
    %127 = arith.addf %124, %126 : vector<8x1152xf32>
    %c0_99 = arith.constant 0 : index
    %c0_100 = arith.constant 0 : index
    %c0_101 = arith.constant 0 : index
    %128 = vector.load %arg11[%c0_99, %c0_100, %c0_101] : memref<1x8x1152xf32, #tpu.memory_space<vmem>>, vector<1x8x1152xf32>
    %129 = vector.shape_cast %128 : vector<1x8x1152xf32> to vector<8x1152xf32>
    %130 = vector.shape_cast %127 : vector<8x1152xf32> to vector<1x8x1152xf32>
    tpu.vector_store %arg11[%c0_99, %c0_100, %c0_101], %130 {strides = array<i32>} : memref<1x8x1152xf32, #tpu.memory_space<vmem>>, vector<1x8x1152xf32>,
    return
  }
  func.func @transform_0(%arg0: i32) -> (i32, i32, i32) {
    %c0_i32 = arith.constant 0 : i32
    %c0_i32_0 = arith.constant 0 : i32
    %c0_i32_1 = arith.constant 0 : i32
    return %arg0, %c0_i32, %c0_i32_0 : i32, i32, i32
  }
  func.func @transform_1(%arg0: i32) -> (i32, i32) {
    %c0_i32 = arith.constant 0 : i32
    %c0_i32_0 = arith.constant 0 : i32
    %c0_i32_1 = arith.constant 0 : i32
    return %c0_i32, %c0_i32_0 : i32, i32
  }
  func.func @transform_2(%arg0: i32) -> (i32, i32, i32) {
    %c0_i32 = arith.constant 0 : i32
    %c0_i32_0 = arith.constant 0 : i32
    %c0_i32_1 = arith.constant 0 : i32
    %c0_i32_2 = arith.constant 0 : i32
    return %c0_i32, %c0_i32_0, %c0_i32_1 : i32, i32, i32
  }
  func.func @transform_3(%arg0: i32) -> (i32, i32) {
    %c0_i32 = arith.constant 0 : i32
    %c0_i32_0 = arith.constant 0 : i32
    %c0_i32_1 = arith.constant 0 : i32
    return %c0_i32, %c0_i32_0 : i32, i32
  }
  func.func @transform_4(%arg0: i32) -> (i32, i32) {
    %c0_i32 = arith.constant 0 : i32
    %c0_i32_0 = arith.constant 0 : i32
    %c0_i32_1 = arith.constant 0 : i32
    return %c0_i32, %c0_i32_0 : i32, i32
  }
  func.func @transform_5(%arg0: i32) -> (i32, i32, i32) {
    %c0_i32 = arith.constant 0 : i32
    %c0_i32_0 = arith.constant 0 : i32
    %c0_i32_1 = arith.constant 0 : i32
    %c0_i32_2 = arith.constant 0 : i32
    return %c0_i32, %c0_i32_0, %c0_i32_1 : i32, i32, i32
  }
  func.func @transform_6(%arg0: i32) -> (i32, i32) {
    %c0_i32 = arith.constant 0 : i32
    %c0_i32_0 = arith.constant 0 : i32
    %c0_i32_1 = arith.constant 0 : i32
    return %c0_i32, %c0_i32_0 : i32, i32
  }
  func.func @transform_7(%arg0: i32) -> (i32, i32) {
    %c0_i32 = arith.constant 0 : i32
    %c0_i32_0 = arith.constant 0 : i32
    %c0_i32_1 = arith.constant 0 : i32
    return %c0_i32, %c0_i32_0 : i32, i32
  }
  func.func @transform_8(%arg0: i32) -> (i32, i32) {
    %c0_i32 = arith.constant 0 : i32
    %c0_i32_0 = arith.constant 0 : i32
    %c0_i32_1 = arith.constant 0 : i32
    return %c0_i32, %c0_i32_0 : i32, i32
  }
  func.func @transform_9(%arg0: i32) -> (i32, i32) {
    %c0_i32 = arith.constant 0 : i32
    %c0_i32_0 = arith.constant 0 : i32
    %c0_i32_1 = arith.constant 0 : i32
    return %c0_i32, %c0_i32_0 : i32, i32
  }
  func.func @transform_10(%arg0: i32) -> (i32, i32, i32) {
    %c0_i32 = arith.constant 0 : i32
    %c0_i32_0 = arith.constant 0 : i32
    %c0_i32_1 = arith.constant 0 : i32
    return %arg0, %c0_i32, %c0_i32_0 : i32, i32, i32
  }
}

</mosaic_0001>

<bundles_post_ra>
// kernel: tile.8
= control target key start
LH: loop header
LB: loop body
LE: loop exit
PB: predicated region body
PF: predicated region fallthrough
CT: control target
= control target key end

     0   :  { %s40_s0 = inlined_call_operand.vmem [shape: f32[36], index: 0, kind: input, shape index: {}]   ;;  %s41_s1 = inlined_call_operand.vmem [shape: f32[32,36], index: 1, kind: output, shape index: {}]  }
   0x1   :  { %v4_v0 = vld [vmem:[%s40_s0] ss:$0 sm:$0xff] }
   0x2   :  { %5 = vst [vmem:[%s41_s1] sm:$0xff] %v4_v0  ;;  %12 = vst [vmem:[%s41_s1 + $0x8] sm:$0xff] %v4_v0 }
   0x3   :  { %13 = vst [vmem:[%s41_s1 + $0x10] sm:$0xff] %v4_v0  ;;  %14 = vst [vmem:[%s41_s1 + $0x18] sm:$0xff] %v4_v0 }

// kernel: tile.9
= control target key start
LH: loop header
LB: loop body
LE: loop exit
PB: predicated region body
PF: predicated region fallthrough
CT: control target
= control target key end

     0   :  { %vm9_vm0 = vcmask 31744   ;;  %vm37_vm1 = vcmask 97280   ;;  %s413_s14 = smov 124   ;;  %vm23_vm2 = vcmask 64512   ;;  %s414_s19 = smov 116   ;;  %vm51_vm3 = vcmask 130048   ;;  %s617_s0 = inlined_call_operand.vmem [shape: f32[32,36], index: 0, kind: input, shape index: {}]   ;;  %s618_s1 = inlined_call_operand.vmem [shape: f32[1,1152], index: 1, kind: output, shape index: {}]  }
   0x1   :  { %v335_v0 = vld [vmem:[%s617_s0 + $0x7] sm:$0x1]   ;;  %v339_v3 = vld [vmem:[%s617_s0 + $0x15] sm:$0x1]   ;;  %v337_v6 = vld [vmem:[%s617_s0 + $0xe] sm:$0x1]  }
   0x2   :  { %v336_v1 = vld [vmem:[%s617_s0 + $0x7] sm:$0x1]   ;;  %v340_v4 = vld [vmem:[%s617_s0 + $0x15] sm:$0x1]   ;;  %v338_v7 = vld [vmem:[%s617_s0 + $0xe] sm:$0x1]  }
   0x3   :  { %v10_v2 = vsel %vm9_vm0, %v336_v1, %v335_v0  ;;  %v38_v5 = vsel %vm37_vm1, %v340_v4, %v339_v3  ;;  %v24_v8 = vsel %vm23_vm2, %v338_v7, %v337_v6  ;;  %v341_v9 = vld [vmem:[%s617_s0 + $0x1c] sm:$0x1]   ;;  %vm55_vm4 = vcmask 162816   ;;  %v343_v12 = vld [vmem:[%s617_s0 + $0x3] sm:$0x1]   ;;  %s415_s3 = smov 120  }
   0x4   :  { %11 = vrot.lane.b32.xlu0 %v10_v2, %s413_s14  ;;  %39 = vrot.lane.b32.xlu1 %v38_v5, %s414_s19  ;;  %v342_v10 = vld [vmem:[%s617_s0 + $0x1c] sm:$0x1]   ;;  %v344_v13 = vld [vmem:[%s617_s0 + $0x3] sm:$0x1]   ;;  %vm41_vm5 = vcmask 195584   ;;  %s416_s4 = smov 112  }
   0x5   :  { %v52_v11 = vsel %vm51_vm3, %v342_v10, %v341_v9  ;;  %v345_v14 = vld [vmem:[%s617_s0 + $0xa] sm:$0x1]   ;;  %v66_v16 = vsel %vm55_vm4, %v344_v13, %v343_v12  ;;  %vm27_vm6 = vcmask 228352   ;;  %v347_v18 = vld [vmem:[%s617_s0 + $0x11] sm:$0x1]   ;;  %vm13_vm7 = vcmask 261120  }
   0x6   :  { %v346_v15 = vld [vmem:[%s617_s0 + $0xa] sm:$0x1]   ;;  %v348_v19 = vld [vmem:[%s617_s0 + $0x11] sm:$0x1]   ;;  %v349_v20 = vld [vmem:[%s617_s0 + $0x18] sm:$0x1]  }
   0x7   :  { %v79_v17 = vsel %vm41_vm5, %v346_v15, %v345_v14  ;;  %v350_v21 = vld [vmem:[%s617_s0 + $0x18] sm:$0x1]   ;;  %s417_s13 = smov 108   ;;  %s418_s14 = smov 104   ;;  %v93_v22 = vsel %vm27_vm6, %v348_v19, %v347_v18  ;;  %v351_v24 = vld [vmem:[%s617_s0 + $0x1f] sm:$0x1]  }
   0x8   :  { %25 = vrot.lane.b32.xlu0 %v24_v8, %s415_s3  ;;  %53 = vrot.lane.b32.xlu1 %v52_v11, %s416_s4  ;;  %v107_v23 = vsel %vm13_vm7, %v350_v21, %v349_v20  ;;  %s419_s15 = smov 100   ;;  %s420_s16 = smov 96   ;;  %v352_v25 = vld [vmem:[%s617_s0 + $0x6] sm:$0x1]   ;;  %v353_v26 = vld [vmem:[%s617_s0 + $0xd] sm:$0x1]  }
   0x9   :  { %s421_s21 = smov 92   ;;  %s422_s22 = smov 88   ;;  %v354_v27 = vld [vmem:[%s617_s0 + $0x14] sm:$0x1]   ;;  %v2_v28 = vld [vmem:[%s617_s0] sm:$0x1]  }
   0xa   :  { %vm3_vm8 = vcmask 293888   ;;  %s423_s29 = smov 84   ;;  %s424_s30 = smov 80   ;;  %v355_v29 = vld [vmem:[%s617_s0 + $0x1b] sm:$0x1]   ;;  %vm16_vm9 = vcmask 1048544  }
   0xb   :  { %4 = vst.msk [vmem:[#allocation0] sm:$0x1] %vm3_vm8, %v2_v28   ;;  %v356_v30 = vld [vmem:[%s617_s0 + $0x2] sm:$0x1]   ;;  %s425_s6 = smov 76   ;;  %s426_s7 = smov 72  }
   0xc   :  { %67 = vrot.lane.b32.xlu0 %v66_v16, %s417_s13  ;;  %80 = vrot.lane.b32.xlu1 %v79_v17, %s418_s14  ;;  %v357_v31 = vld [vmem:[%s617_s0 + $0x9] sm:$0x1]   ;;  %v358_v32 = vld [vmem:[%s617_s0 + $0x10] sm:$0x1]   ;;  %s427_s12 = smov 68   ;;  %s428_s13 = smov 64  }
   0xd   :  { %v359_v33 = vld [vmem:[%s617_s0 + $0x17] sm:$0x1]   ;;  %v360_v34 = vld [vmem:[%s617_s0 + $0x1e] sm:$0x1]   ;;  %s429_s18 = smov 60   ;;  %s430_s19 = smov 56  }
   0xe   :  { %v361_v35 = vld [vmem:[%s617_s0 + $0x5] sm:$0x1]   ;;  %v362_v36 = vld [vmem:[%s617_s0 + $0xc] sm:$0x1]   ;;  %s431_s24 = smov 52   ;;  %s432_s25 = smov 48  }
   0xf   :  { %v363_v37 = vld [vmem:[%s617_s0 + $0x13] sm:$0x1]   ;;  %v364_v38 = vld [vmem:[%s617_s0 + $0x1a] sm:$0x1]   ;;  %s434_s2 = smov 40   ;;  %s436_s8 = smov 32  }
  0x10   :  { %94 = vrot.lane.b32.xlu0 %v93_v22, %s419_s15  ;;  %108 = vrot.lane.b32.xlu1 %v107_v23, %s420_s16  ;;  %v365_v39 = vld [vmem:[%s617_s0 + $0x1] sm:$0x1]   ;;  %v366_v40 = vld [vmem:[%s617_s0 + $0x8] sm:$0x1]   ;;  %s438_s14 = smov 24   ;;  %s440_s20 = smov 16  }
  0x11   :  { %v367_v41 = vld [vmem:[%s617_s0 + $0xf] sm:$0x1]   ;;  %v368_v42 = vld [vmem:[%s617_s0 + $0x16] sm:$0x1]   ;;  %v369_v43 = vld [vmem:[%s617_s0 + $0x1d] sm:$0x1]  }
  0x12   :  { %v370_v44 = vld [vmem:[%s617_s0 + $0x4] sm:$0x1]   ;;  %v371_v45 = vld [vmem:[%s617_s0 + $0xb] sm:$0x1]   ;;  %v372_v46 = vld [vmem:[%s617_s0 + $0x12] sm:$0x1]  }
  0x13   :  { %s442_s26 = smov 8   ;;  %v373_v47 = vld [vmem:[%s617_s0 + $0x19] sm:$0x1]   ;;  %s443_s0 = smov 4   ;;  %vm44_vm10 = vcmask 1048480   ;;  %vm30_vm11 = vcmask 1048512  }
  0x14   :  { %118 = vrot.lane.b32.xlu0 %v351_v24, %s421_s21  ;;  %125 = vrot.lane.b32.xlu1 %v352_v25, %s422_s22  ;;  %vm58_vm12 = vcmask 1048448   ;;  %vm72_vm13 = vcmask 1048416   ;;  %vm85_vm14 = vcmask 1048384   ;;  %vm99_vm15 = vcmask 1048352  }
  0x15   :  { %vm168_vm8 = vcmask 818688  }
  0x18   :  { %132 = vrot.lane.b32.xlu0 %v353_v26, %s423_s29  ;;  %139 = vrot.lane.b32.xlu1 %v354_v27, %s424_s30  ;;  %s433_s30 = smov 44  }
  0x1c   :  { %146 = vrot.lane.b32.xlu0 %v355_v29, %s425_s6  ;;  %153 = vrot.lane.b32.xlu1 %v356_v30, %s426_s7  ;;  %s435_s7 = smov 36  }
  0x20   :  { %159 = vrot.lane.b32.xlu0 %v357_v31, %s427_s12  ;;  %166 = vrot.lane.b32.xlu1 %v358_v32, %s428_s13  ;;  %s437_s13 = smov 28  }
  0x24   :  { %173 = vrot.lane.b32.xlu0 %v359_v33, %s429_s18  ;;  %180 = vrot.lane.b32.xlu1 %v360_v34, %s430_s19  ;;  %s439_s19 = smov 20  }
  0x28   :  { %187 = vrot.lane.b32.xlu0 %v361_v35, %s431_s24  ;;  %194 = vrot.lane.b32.xlu1 %v362_v36, %s432_s25  ;;  %s441_s25 = smov 12  }
  0x2c   :  { %201 = vrot.lane.b32.xlu0 %v363_v37, %s433_s30  ;;  %208 = vrot.lane.b32.xlu1 %v364_v38, %s434_s2 }
  0x30   :  { %215 = vrot.lane.b32.xlu0 %v365_v39, %s435_s7  ;;  %221 = vrot.lane.b32.xlu1 %v366_v40, %s436_s8 }
  0x34   :  { %228 = vrot.lane.b32.xlu0 %v367_v41, %s437_s13  ;;  %235 = vrot.lane.b32.xlu1 %v368_v42, %s438_s14 }
  0x38   :  { %242 = vrot.lane.b32.xlu0 %v369_v43, %s439_s19  ;;  %249 = vrot.lane.b32.xlu1 %v370_v44, %s440_s20 }
  0x3c   :  { %256 = vrot.lane.b32.xlu0 %v371_v45, %s441_s25  ;;  %263 = vrot.lane.b32.xlu1 %v372_v46, %s442_s26 }
  0x40   :  { %270 = vrot.lane.b32.xlu0 %v373_v47, %s443_s0 }
  0x76   :  { %v12_v48 = vpop.permute.xlu0 %11   ;;  %v40_v49 = vpop.permute.xlu1 %39  }
  0x77   :  { %15 = vst.msk [vmem:[#allocation0 + $0x10] sm:$0x1] %vm13_vm7, %v12_v48   ;;  %vm161_vm7 = vcmask 851488  }
  0x78   :  { %18 = vst.msk [vmem:[#allocation0 + $0x8] sm:$0x1] %vm16_vm9, %v12_v48   ;;  %vm175_vm9 = vcmask 785888  }
  0x79   :  { %43 = vst.msk [vmem:[#allocation0 + $0x30] sm:$0x1] %vm41_vm5, %v40_v49   ;;  %vm148_vm5 = vcmask 917088  }
  0x7a   :  { %46 = vst.msk [vmem:[#allocation0 + $0x28] sm:$0x1] %vm44_vm10, %v40_v49   ;;  %v26_v50 = vpop.permute.xlu0 %25   ;;  %v54_v51 = vpop.permute.xlu1 %53   ;;  %vm182_vm10 = vcmask 753088  }
  0x7b   :  { %29 = vst.msk [vmem:[#allocation0 + $0x20] sm:$0x1] %vm27_vm6, %v26_v50   ;;  %vm155_vm6 = vcmask 884288  }
  0x7c   :  { %32 = vst.msk [vmem:[#allocation0 + $0x18] sm:$0x1] %vm30_vm11, %v26_v50   ;;  %vm189_vm11 = vcmask 720288  }
  0x7d   :  { %57 = vst.msk [vmem:[#allocation0 + $0x40] sm:$0x1] %vm55_vm4, %v54_v51   ;;  %vm141_vm4 = vcmask 949888  }
  0x7e   :  { %60 = vst.msk [vmem:[#allocation0 + $0x38] sm:$0x1] %vm58_vm12, %v54_v51   ;;  %v68_v52 = vpop.permute.xlu0 %67   ;;  %v81_v53 = vpop.permute.xlu1 %80   ;;  %vm196_vm12 = vcmask 687488  }
  0x7f   :  { %71 = vst.msk [vmem:[#allocation0 + $0x8] sm:$0x1] %vm51_vm3, %v68_v52   ;;  %vm134_vm3 = vcmask 982688  }
  0x80   :  { %73 = vst.msk [vmem:[#allocation0] sm:$0x1] %vm72_vm13, %v68_v52   ;;  %vm203_vm13 = vcmask 654688  }
  0x81   :  { %84 = vst.msk [vmem:[#allocation0 + $0x18] sm:$0x1] %vm37_vm1, %v81_v53   ;;  %vm113_vm1 = vcmask 1048320  }
  0x82   :  { %87 = vst.msk [vmem:[#allocation0 + $0x10] sm:$0x1] %vm85_vm14, %v81_v53   ;;  %v95_v54 = vpop.permute.xlu0 %94   ;;  %v109_v55 = vpop.permute.xlu1 %108   ;;  %vm210_vm14 = vcmask 621888  }
  0x83   :  { %98 = vst.msk [vmem:[#allocation0 + $0x28] sm:$0x1] %vm23_vm2, %v95_v54   ;;  %vm127_vm2 = vcmask 1015488  }
  0x84   :  { %101 = vst.msk [vmem:[#allocation0 + $0x20] sm:$0x1] %vm99_vm15, %v95_v54   ;;  %vm217_vm15 = vcmask 589088  }
  0x85   :  { %112 = vst.msk [vmem:[#allocation0 + $0x38] sm:$0x1] %vm9_vm0, %v109_v55   ;;  %vm120_vm0 = vcmask 1048288  }
  0x86   :  { %115 = vst.msk [vmem:[#allocation0 + $0x30] sm:$0x1] %vm113_vm1, %v109_v55   ;;  %v119_v56 = vpop.permute.xlu0 %118   ;;  %v126_v57 = vpop.permute.xlu1 %125   ;;  %vm223_vm1 = vcmask 556288  }
  0x87   :  { %122 = vst.msk [vmem:[#allocation0 + $0x40] sm:$0x1] %vm120_vm0, %v119_v56   ;;  %vm230_vm0 = vcmask 523488  }
  0x88   :  { %129 = vst.msk [vmem:[#allocation0 + $0x8] sm:$0x1] %vm127_vm2, %v126_v57   ;;  %vm237_vm2 = vcmask 490688  }
  0x8a   :  { %v133_v58 = vpop.permute.xlu0 %132   ;;  %v140_v59 = vpop.permute.xlu1 %139  }
  0x8b   :  { %136 = vst.msk [vmem:[#allocation0 + $0x18] sm:$0x1] %vm134_vm3, %v133_v58   ;;  %vm244_vm3 = vcmask 457888  }
  0x8c   :  { %143 = vst.msk [vmem:[#allocation0 + $0x28] sm:$0x1] %vm141_vm4, %v140_v59   ;;  %vm251_vm4 = vcmask 425088  }
  0x8e   :  { %v147_v60 = vpop.permute.xlu0 %146   ;;  %v154_v61 = vpop.permute.xlu1 %153  }
  0x8f   :  { %150 = vst.msk [vmem:[#allocation0 + $0x38] sm:$0x1] %vm148_vm5, %v147_v60   ;;  %vm258_vm5 = vcmask 392288  }
  0x90   :  { %156 = vst.msk [vmem:[#allocation0] sm:$0x1] %vm155_vm6, %v154_v61   ;;  %vm265_vm6 = vcmask 359488  }
  0x92   :  { %v160_v62 = vpop.permute.xlu0 %159   ;;  %v167_v63 = vpop.permute.xlu1 %166  }
  0x93   :  { %163 = vst.msk [vmem:[#allocation0 + $0x10] sm:$0x1] %vm161_vm7, %v160_v62   ;;  %vm272_vm7 = vcmask 326688  }
  0x94   :  { %170 = vst.msk [vmem:[#allocation0 + $0x20] sm:$0x1] %vm168_vm8, %v167_v63  }
  0x96   :  { %v174_v0 = vpop.permute.xlu0 %173   ;;  %v181_v1 = vpop.permute.xlu1 %180  }
  0x97   :  { %177 = vst.msk [vmem:[#allocation0 + $0x30] sm:$0x1] %vm175_vm9, %v174_v0  }
  0x98   :  { %184 = vst.msk [vmem:[#allocation0 + $0x40] sm:$0x1] %vm182_vm10, %v181_v1  }
  0x9a   :  { %v188_v2 = vpop.permute.xlu0 %187   ;;  %v195_v3 = vpop.permute.xlu1 %194  }
  0x9b   :  { %191 = vst.msk [vmem:[#allocation0 + $0x8] sm:$0x1] %vm189_vm11, %v188_v2  }
  0x9c   :  { %198 = vst.msk [vmem:[#allocation0 + $0x18] sm:$0x1] %vm196_vm12, %v195_v3  }
  0x9e   :  { %v202_v4 = vpop.permute.xlu0 %201   ;;  %v209_v5 = vpop.permute.xlu1 %208  }
  0x9f   :  { %205 = vst.msk [vmem:[#allocation0 + $0x28] sm:$0x1] %vm203_vm13, %v202_v4  }
  0xa0   :  { %212 = vst.msk [vmem:[#allocation0 + $0x38] sm:$0x1] %vm210_vm14, %v209_v5  }
  0xa2   :  { %v216_v6 = vpop.permute.xlu0 %215   ;;  %v222_v7 = vpop.permute.xlu1 %221  }
  0xa3   :  { %218 = vst.msk [vmem:[#allocation0] sm:$0x1] %vm217_vm15, %v216_v6  }
  0xa4   :  { %225 = vst.msk [vmem:[#allocation0 + $0x10] sm:$0x1] %vm223_vm1, %v222_v7  }
  0xa6   :  { %v229_v8 = vpop.permute.xlu0 %228   ;;  %v236_v9 = vpop.permute.xlu1 %235  }
  0xa7   :  { %232 = vst.msk [vmem:[#allocation0 + $0x20] sm:$0x1] %vm230_vm0, %v229_v8  }
  0xa8   :  { %239 = vst.msk [vmem:[#allocation0 + $0x30] sm:$0x1] %vm237_vm2, %v236_v9  }
  0xaa   :  { %v278_v10 = vld [vmem:[#allocation0] sm:$0x1]  ;;  %v243_v11 = vpop.permute.xlu0 %242   ;;  %v250_v13 = vpop.permute.xlu1 %249  }
  0xab   :  { %280 = vst [vmem:[%s618_s1] sm:$0x1] %v278_v10  ;;  %v287_v12 = vld [vmem:[#allocation0 + $0x10] sm:$0x1]  ;;  %246 = vst.msk [vmem:[#allocation0 + $0x40] sm:$0x1] %vm244_vm3, %v243_v11  }
  0xac   :  { %375 = vst [vmem:[%s618_s1 + $0x2] sm:$0x1] %v287_v12  ;;  %253 = vst.msk [vmem:[#allocation0 + $0x8] sm:$0x1] %vm251_vm4, %v250_v13  }
  0xae   :  { %v299_v14 = vld [vmem:[#allocation0 + $0x20] sm:$0x1]  ;;  %v257_v15 = vpop.permute.xlu0 %256   ;;  %v264_v17 = vpop.permute.xlu1 %263  }
  0xaf   :  { %377 = vst [vmem:[%s618_s1 + $0x4] sm:$0x1] %v299_v14  ;;  %v311_v16 = vld [vmem:[#allocation0 + $0x30] sm:$0x1]  ;;  %260 = vst.msk [vmem:[#allocation0 + $0x18] sm:$0x1] %vm258_vm5, %v257_v15  }
  0xb0   :  { %379 = vst [vmem:[%s618_s1 + $0x6] sm:$0x1] %v311_v16  ;;  %267 = vst.msk [vmem:[#allocation0 + $0x28] sm:$0x1] %vm265_vm6, %v264_v17  }
  0xb2   :  { %v323_v18 = vld [vmem:[#allocation0 + $0x40] sm:$0x1]  ;;  %v271_v19 = vpop.permute.xlu0 %270  }
  0xb3   :  { %381 = vst [vmem:[%s618_s1 + $0x8] sm:$0x1] %v323_v18  ;;  %v282_v20 = vld [vmem:[#allocation0 + $0x8] sm:$0x1]  ;;  %274 = vst.msk [vmem:[#allocation0 + $0x38] sm:$0x1] %vm272_vm7, %v271_v19  }
  0xb4   :  { %374 = vst [vmem:[%s618_s1 + $0x1] sm:$0x1] %v282_v20 }
  0xb6   :  { %v293_v21 = vld [vmem:[#allocation0 + $0x18] sm:$0x1] }
  0xb7   :  { %376 = vst [vmem:[%s618_s1 + $0x3] sm:$0x1] %v293_v21  ;;  %v305_v22 = vld [vmem:[#allocation0 + $0x28] sm:$0x1] }
  0xb8   :  { %378 = vst [vmem:[%s618_s1 + $0x5] sm:$0x1] %v305_v22 }
  0xba   :  { %v317_v23 = vld [vmem:[#allocation0 + $0x38] sm:$0x1] }
  0xbb   :  { %380 = vst [vmem:[%s618_s1 + $0x7] sm:$0x1] %v317_v23 }

// kernel: upconv_block_forward.1
= control target key start
LH: loop header
LB: loop body
LE: loop exit
PB: predicated region body
PF: predicated region fallthrough
CT: control target
= control target key end

     0   :  { %s13242_s13 = smov 0   ;;  %s16936_s0 = inlined_call_operand.vmem [shape: f32[2,4,256], index: 0, kind: input, shape index: {}]   ;;  %s16937_s1 = inlined_call_operand.vmem [shape: s32[256,1], index: 1, kind: input, shape index: {}]   ;;  %s16938_s2 = inlined_call_operand.vmem [shape: f32[9,8,4], index: 2, kind: input, shape index: {}]   ;;  %s16939_s3 = inlined_call_operand.vmem [shape: f32[8,1], index: 3, kind: input, shape index: {}]   ;;  %s16940_s4 = inlined_call_operand.vmem [shape: f32[1,1152], index: 4, kind: input, shape index: {}]   ;;  %s16941_s5 = inlined_call_operand.vmem [shape: f32[9,8,8], index: 5, kind: input, shape index: {}]   ;;  %s16942_s6 = inlined_call_operand.vmem [shape: f32[8,1], index: 6, kind: input, shape index: {}]   ;;  %s16943_s7 = inlined_call_operand.vmem [shape: s32[256,1], index: 7, kind: input, shape index: {}]   ;;  %s16944_s8 = inlined_call_operand.vmem [shape: f32[8,4], index: 8, kind: input, shape index: {}]   ;;  %s16945_s9 = inlined_call_operand.vmem [shape: f32[8,1], index: 9, kind: input, shape index: {}]   ;;  %s16946_s10 = inlined_call_operand.vmem [shape: f32[2,8,1152], index: 10, kind: output, shape index: {}]  }
   0x1 LB: > { %s10799_s14 = sadd.s32 4294967295, %s13168_s13   ;;  %p10803_p0 = scmp.ge.s32.totalorder %s13168_s13, 1  ;;  %s13168_s13 = sphi %s13242_s13, %s20_s13  }
   0x2   : > { %p312_p1 = scmp.lt.s32.totalorder %s13168_s13, 3 }
   0x4   : > { %p313_p2 = pnand %p10803_p0, %p312_p1 }
   0x6   : > { %316 = sbr.rel (%p313_p2) target bundleno = 1892 (0x764), region = 60 }
   0xd   : > { %v374_v0 = vld [vmem:[%s16937_s1 + $0x10] sm:$0xff]  ;;  %v372_v1 = vld [vmem:[%s16937_s1] sm:$0xff]  ;;  %v13170_v2 = vmov 0   ;;  %v375_v3 = vld [vmem:[%s16937_s1 + $0x18] sm:$0xff]  ;;  %p350_p3 = scmp.lt.s32.totalorder %s10799_s14, 1  ;;  %v361_v35 = vlaneseq  ;;  %s13172_s29 = smov 127  }
   0xe   : > { %13157 = vset.pattern.permute.xlu1 %v13170_v2  ;;  %13156 = vset.pattern.permute.xlu0 %v13170_v2  ;;  %v373_v4 = vld [vmem:[%s16937_s1 + $0x8] sm:$0xff]  ;;  %v376_v6 = vld [vmem:[%s16937_s1 + $0x20] sm:$0xff]  ;;  %v379_v7 = vld [vmem:[%s16937_s1 + $0x38] sm:$0xff]  ;;  %v16949_v44 = vmov 1.0|1.0   ;;  %s13175_s12 = smov 126  }
   0xf   : > { %411 = vperm.xlu1 %13157, %v374_v0   ;;  %405 = vperm.xlu0 %13156, %v372_v1   ;;  %v377_v5 = vld [vmem:[%s16937_s1 + $0x28] sm:$0xff]  ;;  %v378_v8 = vld [vmem:[%s16937_s1 + $0x30] sm:$0xff]  ;;  %v380_v10 = vld [vmem:[%s16937_s1 + $0x40] sm:$0xff]  ;;  %s17353_s14 = smov (!%p350_p3, %s10799_s14), 1  ;;  %v13368_v36 = vand.u32 127, %v361_v35  ;;  %s13176_s15 = smov 92  }
  0x10   : > { %v381_v9 = vld [vmem:[%s16937_s1 + $0x48] sm:$0xff]  ;;  %v383_v11 = vld [vmem:[%s16937_s1 + $0x58] sm:$0xff]  ;;  %v382_v12 = vld [vmem:[%s16937_s1 + $0x50] sm:$0xff]  ;;  %s12216_s25 = sshll.u32 %s17353_s14, 3  ;;  %s13177_s16 = smov 91  }
  0x11   : > { %v385_v13 = vld [vmem:[%s16937_s1 + $0x68] sm:$0xff]  ;;  %v384_v14 = vld [vmem:[%s16937_s1 + $0x60] sm:$0xff]  ;;  %v387_v15 = vld [vmem:[%s16937_s1 + $0x78] sm:$0xff]  ;;  %s13356_s28 = scalar_lea.vmem %s16936_s0, %s12216_s25  ;;  %v13375_v39 = vadd.s32 128, %v13368_v36  ;;  %v13378_v40 = vadd.s32 1152, %v13368_v36  ;;  %v13385_v43 = vadd.s32 1024, %v13368_v36 }
  0x12   : > { %v386_v16 = vld [vmem:[%s16937_s1 + $0x70] sm:$0xff]  ;;  %v389_v17 = vld [vmem:[%s16937_s1 + $0x88] sm:$0xff]  ;;  %v388_v18 = vld [vmem:[%s16937_s1 + $0x80] sm:$0xff]  ;;  %s13178_s17 = smov 90   ;;  %s13179_s18 = smov 56  }
  0x13   : > { %414 = vperm.xlu1 %13157, %v375_v3   ;;  %408 = vperm.xlu0 %13156, %v373_v4   ;;  %v391_v19 = vld [vmem:[%s16937_s1 + $0x98] sm:$0xff]  ;;  %v390_v20 = vld [vmem:[%s16937_s1 + $0x90] sm:$0xff]  ;;  %v393_v21 = vld [vmem:[%s16937_s1 + $0xa8] sm:$0xff]  ;;  %s13180_s19 = smov 55   ;;  %s13181_s20 = smov 54  }
  0x14   : > { %v392_v22 = vld [vmem:[%s16937_s1 + $0xa0] sm:$0xff]  ;;  %v395_v23 = vld [vmem:[%s16937_s1 + $0xb8] sm:$0xff]  ;;  %v394_v24 = vld [vmem:[%s16937_s1 + $0xb0] sm:$0xff]  ;;  %s13182_s11 = smov 1   ;;  %s13130_s21 = smul.u32 72, %s17353_s14 }
  0x15   : > { %v397_v25 = vld [vmem:[%s16937_s1 + $0xc8] sm:$0xff]  ;;  %v396_v26 = vld [vmem:[%s16937_s1 + $0xc0] sm:$0xff]  ;;  %v399_v27 = vld [vmem:[%s16937_s1 + $0xd8] sm:$0xff] }
  0x16   : > { %v398_v28 = vld [vmem:[%s16937_s1 + $0xd0] sm:$0xff]  ;;  %v401_v29 = vld [vmem:[%s16937_s1 + $0xe8] sm:$0xff]  ;;  %v400_v30 = vld [vmem:[%s16937_s1 + $0xe0] sm:$0xff] }
  0x17   : > { %420 = vperm.xlu1 %13157, %v377_v5   ;;  %417 = vperm.xlu0 %13156, %v376_v6   ;;  %v403_v31 = vld [vmem:[%s16937_s1 + $0xf8] sm:$0xff]  ;;  %v402_v32 = vld [vmem:[%s16937_s1 + $0xf0] sm:$0xff]  ;;  %v13359_v33 = vld [vmem:[%s13356_s28] sm:$0xff] }
  0x18   : > { %v13363_v34 = vcombine.high %v13359_v33, %v13359_v33 }
  0x1a   : > { %1527 = vmatprep.mubr.f32.mxu1 %v13363_v34  ;;  %1811 = vmatprep.mubr.f32.mxu0 %v13363_v34 }
  0x1b   : > { %426 = vperm.xlu1 %13157, %v379_v7   ;;  %423 = vperm.xlu0 %13156, %v378_v8  }
  0x1f   : > { %432 = vperm.xlu1 %13157, %v381_v9   ;;  %429 = vperm.xlu0 %13156, %v380_v10   ;;  %v13758_v9 = vadd.s32 384, %v13368_v36  ;;  %v13769_v10 = vadd.s32 256, %v13368_v36 }
  0x23   : > { %438 = vperm.xlu1 %13157, %v383_v11   ;;  %435 = vperm.xlu0 %13156, %v382_v12   ;;  %v13929_v11 = vadd.s32 640, %v13368_v36  ;;  %v13940_v12 = vadd.s32 512, %v13368_v36 }
  0x27   : > { %444 = vperm.xlu1 %13157, %v385_v13   ;;  %441 = vperm.xlu0 %13156, %v384_v14   ;;  %v14097_v13 = vadd.s32 896, %v13368_v36  ;;  %v14108_v14 = vadd.s32 768, %v13368_v36 }
  0x2b   : > { %450 = vperm.xlu1 %13157, %v387_v15   ;;  %447 = vperm.xlu0 %13156, %v386_v16   ;;  %v14123_v15 = vld [vmem:[%s13356_s28] sm:$0xff] }
  0x2f   : > { %456 = vperm.xlu1 %13157, %v389_v17   ;;  %453 = vperm.xlu0 %13156, %v388_v18  }
  0x33   : > { %462 = vperm.xlu1 %13157, %v391_v19   ;;  %459 = vperm.xlu0 %13156, %v390_v20  }
  0x37   : > { %468 = vperm.xlu1 %13157, %v393_v21   ;;  %465 = vperm.xlu0 %13156, %v392_v22   ;;  %v13173_v22 = vmov 0.0  }
  0x38   : > { %5607 = vst [vmem:[#allocation2] sm:$0xff] %v13173_v22 }
  0x3b   : > { %474 = vperm.xlu1 %13157, %v395_v23   ;;  %471 = vperm.xlu0 %13156, %v394_v24  }
  0x3f   : > { %480 = vperm.xlu1 %13157, %v397_v25   ;;  %477 = vperm.xlu0 %13156, %v396_v26  }
  0x43   : > { %486 = vperm.xlu1 %13157, %v399_v27   ;;  %483 = vperm.xlu0 %13156, %v398_v28  }
  0x47   : > { %492 = vperm.xlu1 %13157, %v401_v29   ;;  %489 = vperm.xlu0 %13156, %v400_v30   ;;  %v14310_v29 = vld [vmem:[%s16938_s2 + $0x8] sm:$0xff] }
  0x4b   : > { %498 = vperm.xlu1 %13157, %v403_v31   ;;  %495 = vperm.xlu0 %13156, %v402_v32  }
  0x8e   : > { %v13370_v37 = vpop.permute.xlu1 %411  ;;  %v13372_v38 = vpop.permute.xlu0 %405 }
  0x8f   : > { %vm501_vm0 = vcmp.eq.s32.totalorder %v13375_v39, %v13372_v38  ;;  %vm509_vm5 = vcmp.eq.s32.totalorder %v13378_v40, %v13372_v38  ;;  %vm500_vm8 = vcmp.eq.s32.totalorder %v13368_v36, %v13372_v38  ;;  %vm521_vm9 = vcmp.eq.s32.totalorder %v13375_v39, %v13370_v37 }
  0x90   : > { %vm508_vm12 = vcmp.eq.s32.totalorder %v13385_v43, %v13372_v38  ;;  %vm529_vm13 = vcmp.eq.s32.totalorder %v13378_v40, %v13370_v37 }
  0x92   : > { %v13380_v41 = vpop.permute.xlu1 %414  ;;  %v13382_v42 = vpop.permute.xlu0 %408 }
  0x93   : > { %vm511_vm1 = vcmp.eq.s32.totalorder %v13375_v39, %v13382_v42  ;;  %vm519_vm2 = vcmp.eq.s32.totalorder %v13378_v40, %v13382_v42  ;;  %vm510_vm3 = vcmp.eq.s32.totalorder %v13368_v36, %v13382_v42  ;;  %vm518_vm6 = vcmp.eq.s32.totalorder %v13385_v43, %v13382_v42 }
  0x94   : > { %vm12378_vm4 = vmpackc.low %vm511_vm1, %vm501_vm0  ;;  %vm531_vm10 = vcmp.eq.s32.totalorder %v13375_v39, %v13380_v41  ;;  %vm539_vm14 = vcmp.eq.s32.totalorder %v13378_v40, %v13380_v41  ;;  %vm520_vm0 = vcmp.eq.s32.totalorder %v13368_v36, %v13370_v37  ;;  %vm530_vm1 = vcmp.eq.s32.totalorder %v13368_v36, %v13380_v41 }
  0x95   : > { %12379 = vmatprep.subr.msk.bf16.mxu1 %vm12378_vm4, %v16949_v44  ;;  %vm12634_vm7 = vmpackc.low %vm519_vm2, %vm509_vm5  ;;  %vm538_vm4 = vcmp.eq.s32.totalorder %v13385_v43, %v13380_v41 }
  0x96   : > { %12635 = vmatprep.subr.msk.bf16.mxu0 %vm12634_vm7, %v16949_v44  ;;  %v13407_v45 = vpop.permute.xlu1 %420  ;;  %v13409_v46 = vpop.permute.xlu0 %417  ;;  %vm12380_vm11 = vmpackc.low %vm510_vm3, %vm500_vm8  ;;  %vm528_vm3 = vcmp.eq.s32.totalorder %v13385_v43, %v13370_v37 }
  0x97   : > { %12381 = vmatpush1.bf16.msk.msra.mxu1 %vm12380_vm11, %v16949_v44  ;;  %vm12636_vm15 = vmpackc.low %vm518_vm6, %vm508_vm12  ;;  %vm541_vm6 = vcmp.eq.s32.totalorder %v13375_v39, %v13409_v46  ;;  %vm551_vm7 = vcmp.eq.s32.totalorder %v13375_v39, %v13407_v45  ;;  %vm540_vm12 = vcmp.eq.s32.totalorder %v13368_v36, %v13409_v46 }
  0x98   : > { %12637 = vmatpush1.bf16.msk.msra.mxu0 %vm12636_vm15, %v16949_v44  ;;  %vm12382_vm2 = vmpackc.low %vm531_vm10, %vm521_vm9  ;;  %vm549_vm9 = vcmp.eq.s32.totalorder %v13378_v40, %v13409_v46  ;;  %vm559_vm10 = vcmp.eq.s32.totalorder %v13378_v40, %v13407_v45  ;;  %vm548_vm15 = vcmp.eq.s32.totalorder %v13385_v43, %v13409_v46 }
  0x99   : > { %12383 = vmatprep.subr.msk.bf16.mxu1 %vm12382_vm2, %v16949_v44  ;;  %vm12638_vm5 = vmpackc.low %vm539_vm14, %vm529_vm13  ;;  %vm550_vm13 = vcmp.eq.s32.totalorder %v13368_v36, %v13407_v45 }
  0x9a   : > { %12639 = vmatprep.subr.msk.bf16.mxu0 %vm12638_vm5, %v16949_v44  ;;  %v13436_v47 = vpop.permute.xlu1 %426  ;;  %v13438_v48 = vpop.permute.xlu0 %423  ;;  %vm12384_vm8 = vmpackc.low %vm530_vm1, %vm520_vm0  ;;  %vm558_vm0 = vcmp.eq.s32.totalorder %v13385_v43, %v13407_v45 }
  0x9b   : > { %12385 = vmatpush1.bf16.msk.msra.mxu1 %vm12384_vm8, %v16949_v44  ;;  %vm12640_vm11 = vmpackc.low %vm538_vm4, %vm528_vm3  ;;  %vm561_vm2 = vcmp.eq.s32.totalorder %v13375_v39, %v13438_v48  ;;  %vm571_vm3 = vcmp.eq.s32.totalorder %v13375_v39, %v13436_v47  ;;  %vm569_vm5 = vcmp.eq.s32.totalorder %v13378_v40, %v13438_v48  ;;  %vm560_vm8 = vcmp.eq.s32.totalorder %v13368_v36, %v13438_v48 }
  0x9c   : > { %12641 = vmatpush1.bf16.msk.msra.mxu0 %vm12640_vm11, %v16949_v44  ;;  %vm12386_vm14 = vmpackc.low %vm551_vm7, %vm541_vm6  ;;  %vm579_vm6 = vcmp.eq.s32.totalorder %v13378_v40, %v13436_v47  ;;  %vm568_vm11 = vcmp.eq.s32.totalorder %v13385_v43, %v13438_v48 }
  0x9d   : > { %12387 = vmatprep.subr.msk.bf16.mxu1 %vm12386_vm14, %v16949_v44  ;;  %vm12642_vm1 = vmpackc.low %vm559_vm10, %vm549_vm9  ;;  %vm570_vm9 = vcmp.eq.s32.totalorder %v13368_v36, %v13436_v47 }
  0x9e   : > { %12643 = vmatprep.subr.msk.bf16.mxu0 %vm12642_vm1, %v16949_v44  ;;  %v13460_v49 = vpop.permute.xlu1 %432  ;;  %v13462_v50 = vpop.permute.xlu0 %429  ;;  %vm12388_vm4 = vmpackc.low %vm550_vm13, %vm540_vm12  ;;  %vm578_vm12 = vcmp.eq.s32.totalorder %v13385_v43, %v13436_v47 }
  0x9f   : > { %12389 = vmatpush1.bf16.msk.msra.mxu1 %vm12388_vm4, %v16949_v44  ;;  %vm12644_vm7 = vmpackc.low %vm558_vm0, %vm548_vm15  ;;  %vm581_vm14 = vcmp.eq.s32.totalorder %v13375_v39, %v13462_v50  ;;  %vm591_vm15 = vcmp.eq.s32.totalorder %v13375_v39, %v13460_v49  ;;  %vm589_vm1 = vcmp.eq.s32.totalorder %v13378_v40, %v13462_v50  ;;  %vm580_vm4 = vcmp.eq.s32.totalorder %v13368_v36, %v13462_v50 }
  0xa0   : > { %12645 = vmatpush1.bf16.msk.msra.mxu0 %vm12644_vm7, %v16949_v44  ;;  %vm12390_vm10 = vmpackc.low %vm571_vm3, %vm561_vm2  ;;  %vm599_vm2 = vcmp.eq.s32.totalorder %v13378_v40, %v13460_v49  ;;  %vm588_vm7 = vcmp.eq.s32.totalorder %v13385_v43, %v13462_v50 }
  0xa1   : > { %12391 = vmatprep.subr.msk.bf16.mxu1 %vm12390_vm10, %v16949_v44  ;;  %vm12646_vm13 = vmpackc.low %vm579_vm6, %vm569_vm5  ;;  %vm590_vm5 = vcmp.eq.s32.totalorder %v13368_v36, %v13460_v49 }
  0xa2   : > { %12647 = vmatprep.subr.msk.bf16.mxu0 %vm12646_vm13, %v16949_v44  ;;  %v13484_v51 = vpop.permute.xlu1 %438  ;;  %v13486_v52 = vpop.permute.xlu0 %435  ;;  %vm12392_vm0 = vmpackc.low %vm570_vm9, %vm560_vm8  ;;  %vm598_vm8 = vcmp.eq.s32.totalorder %v13385_v43, %v13460_v49 }
  0xa3   : > { %12393 = vmatpush1.bf16.msk.msra.mxu1 %vm12392_vm0, %v16949_v44  ;;  %vm12648_vm3 = vmpackc.low %vm578_vm12, %vm568_vm11  ;;  %vm601_vm10 = vcmp.eq.s32.totalorder %v13375_v39, %v13486_v52  ;;  %vm611_vm11 = vcmp.eq.s32.totalorder %v13375_v39, %v13484_v51  ;;  %vm609_vm13 = vcmp.eq.s32.totalorder %v13378_v40, %v13486_v52  ;;  %vm600_vm0 = vcmp.eq.s32.totalorder %v13368_v36, %v13486_v52 }
  0xa4   : > { %12649 = vmatpush1.bf16.msk.msra.mxu0 %vm12648_vm3, %v16949_v44  ;;  %vm12394_vm6 = vmpackc.low %vm591_vm15, %vm581_vm14  ;;  %vm619_vm14 = vcmp.eq.s32.totalorder %v13378_v40, %v13484_v51  ;;  %vm608_vm3 = vcmp.eq.s32.totalorder %v13385_v43, %v13486_v52 }
  0xa5   : > { %12395 = vmatprep.subr.msk.bf16.mxu1 %vm12394_vm6, %v16949_v44  ;;  %vm12650_vm9 = vmpackc.low %vm599_vm2, %vm589_vm1  ;;  %vm610_vm1 = vcmp.eq.s32.totalorder %v13368_v36, %v13484_v51 }
  0xa6   : > { %12651 = vmatprep.subr.msk.bf16.mxu0 %vm12650_vm9, %v16949_v44  ;;  %v13508_v53 = vpop.permute.xlu1 %444  ;;  %v13510_v54 = vpop.permute.xlu0 %441  ;;  %vm12396_vm12 = vmpackc.low %vm590_vm5, %vm580_vm4  ;;  %vm618_vm4 = vcmp.eq.s32.totalorder %v13385_v43, %v13484_v51 }
  0xa7   : > { %12397 = vmatpush1.bf16.msk.msra.mxu1 %vm12396_vm12, %v16949_v44  ;;  %vm12652_vm15 = vmpackc.low %vm598_vm8, %vm588_vm7  ;;  %vm621_vm6 = vcmp.eq.s32.totalorder %v13375_v39, %v13510_v54  ;;  %vm631_vm7 = vcmp.eq.s32.totalorder %v13375_v39, %v13508_v53  ;;  %vm629_vm9 = vcmp.eq.s32.totalorder %v13378_v40, %v13510_v54  ;;  %vm620_vm12 = vcmp.eq.s32.totalorder %v13368_v36, %v13510_v54 }
  0xa8   : > { %12653 = vmatpush1.bf16.msk.msra.mxu0 %vm12652_vm15, %v16949_v44  ;;  %vm12398_vm2 = vmpackc.low %vm611_vm11, %vm601_vm10  ;;  %vm639_vm10 = vcmp.eq.s32.totalorder %v13378_v40, %v13508_v53  ;;  %vm628_vm15 = vcmp.eq.s32.totalorder %v13385_v43, %v13510_v54 }
  0xa9   : > { %12399 = vmatprep.subr.msk.bf16.mxu1 %vm12398_vm2, %v16949_v44  ;;  %vm12654_vm5 = vmpackc.low %vm619_vm14, %vm609_vm13  ;;  %vm630_vm13 = vcmp.eq.s32.totalorder %v13368_v36, %v13508_v53 }
  0xaa   : > { %12655 = vmatprep.subr.msk.bf16.mxu0 %vm12654_vm5, %v16949_v44  ;;  %v13532_v55 = vpop.permute.xlu1 %450  ;;  %v13534_v56 = vpop.permute.xlu0 %447  ;;  %vm12400_vm8 = vmpackc.low %vm610_vm1, %vm600_vm0  ;;  %vm638_vm0 = vcmp.eq.s32.totalorder %v13385_v43, %v13508_v53 }
  0xab   : > { %12401 = vmatpush1.bf16.msk.msra.mxu1 %vm12400_vm8, %v16949_v44  ;;  %vm12656_vm11 = vmpackc.low %vm618_vm4, %vm608_vm3  ;;  %vm641_vm2 = vcmp.eq.s32.totalorder %v13375_v39, %v13534_v56  ;;  %vm651_vm3 = vcmp.eq.s32.totalorder %v13375_v39, %v13532_v55  ;;  %vm649_vm5 = vcmp.eq.s32.totalorder %v13378_v40, %v13534_v56  ;;  %vm640_vm8 = vcmp.eq.s32.totalorder %v13368_v36, %v13534_v56 }
  0xac   : > { %12657 = vmatpush1.bf16.msk.msra.mxu0 %vm12656_vm11, %v16949_v44  ;;  %vm12402_vm14 = vmpackc.low %vm631_vm7, %vm621_vm6  ;;  %vm659_vm6 = vcmp.eq.s32.totalorder %v13378_v40, %v13532_v55  ;;  %vm648_vm11 = vcmp.eq.s32.totalorder %v13385_v43, %v13534_v56 }
  0xad   : > { %12403 = vmatprep.subr.msk.bf16.mxu1 %vm12402_vm14, %v16949_v44  ;;  %vm12658_vm1 = vmpackc.low %vm639_vm10, %vm629_vm9  ;;  %vm650_vm9 = vcmp.eq.s32.totalorder %v13368_v36, %v13532_v55 }
  0xae   : > { %12659 = vmatprep.subr.msk.bf16.mxu0 %vm12658_vm1, %v16949_v44  ;;  %v13556_v57 = vpop.permute.xlu1 %456  ;;  %v13558_v58 = vpop.permute.xlu0 %453  ;;  %vm12404_vm4 = vmpackc.low %vm630_vm13, %vm620_vm12  ;;  %vm658_vm12 = vcmp.eq.s32.totalorder %v13385_v43, %v13532_v55 }
  0xaf   : > { %12405 = vmatpush1.bf16.msk.msra.mxu1 %vm12404_vm4, %v16949_v44  ;;  %vm12660_vm7 = vmpackc.low %vm638_vm0, %vm628_vm15  ;;  %vm661_vm14 = vcmp.eq.s32.totalorder %v13375_v39, %v13558_v58  ;;  %vm671_vm15 = vcmp.eq.s32.totalorder %v13375_v39, %v13556_v57  ;;  %vm669_vm1 = vcmp.eq.s32.totalorder %v13378_v40, %v13558_v58  ;;  %vm660_vm4 = vcmp.eq.s32.totalorder %v13368_v36, %v13558_v58 }
  0xb0   : > { %12661 = vmatpush1.bf16.msk.msra.mxu0 %vm12660_vm7, %v16949_v44  ;;  %vm12406_vm10 = vmpackc.low %vm651_vm3, %vm641_vm2  ;;  %vm679_vm2 = vcmp.eq.s32.totalorder %v13378_v40, %v13556_v57  ;;  %vm668_vm7 = vcmp.eq.s32.totalorder %v13385_v43, %v13558_v58 }
  0xb1   : > { %12407 = vmatprep.subr.msk.bf16.mxu1 %vm12406_vm10, %v16949_v44  ;;  %vm12662_vm13 = vmpackc.low %vm659_vm6, %vm649_vm5  ;;  %vm670_vm5 = vcmp.eq.s32.totalorder %v13368_v36, %v13556_v57 }
  0xb2   : > { %12663 = vmatprep.subr.msk.bf16.mxu0 %vm12662_vm13, %v16949_v44  ;;  %v13580_v59 = vpop.permute.xlu1 %462  ;;  %v13582_v60 = vpop.permute.xlu0 %459  ;;  %vm12408_vm0 = vmpackc.low %vm650_vm9, %vm640_vm8  ;;  %vm678_vm8 = vcmp.eq.s32.totalorder %v13385_v43, %v13556_v57 }
  0xb3   : > { %12409 = vmatpush1.bf16.msk.msra.mxu1 %vm12408_vm0, %v16949_v44  ;;  %vm12664_vm3 = vmpackc.low %vm658_vm12, %vm648_vm11  ;;  %vm681_vm10 = vcmp.eq.s32.totalorder %v13375_v39, %v13582_v60  ;;  %vm691_vm11 = vcmp.eq.s32.totalorder %v13375_v39, %v13580_v59  ;;  %vm689_vm13 = vcmp.eq.s32.totalorder %v13378_v40, %v13582_v60  ;;  %vm680_vm0 = vcmp.eq.s32.totalorder %v13368_v36, %v13582_v60 }
  0xb4   : > { %12665 = vmatpush1.bf16.msk.msra.mxu0 %vm12664_vm3, %v16949_v44  ;;  %vm12410_vm6 = vmpackc.low %vm671_vm15, %vm661_vm14  ;;  %vm699_vm14 = vcmp.eq.s32.totalorder %v13378_v40, %v13580_v59  ;;  %vm688_vm3 = vcmp.eq.s32.totalorder %v13385_v43, %v13582_v60 }
  0xb5   : > { %12411 = vmatprep.subr.msk.bf16.mxu1 %vm12410_vm6, %v16949_v44  ;;  %vm12666_vm9 = vmpackc.low %vm679_vm2, %vm669_vm1  ;;  %vm690_vm1 = vcmp.eq.s32.totalorder %v13368_v36, %v13580_v59 }
  0xb6   : > { %12667 = vmatprep.subr.msk.bf16.mxu0 %vm12666_vm9, %v16949_v44  ;;  %v13604_v61 = vpop.permute.xlu1 %468  ;;  %v13606_v62 = vpop.permute.xlu0 %465  ;;  %vm12412_vm12 = vmpackc.low %vm670_vm5, %vm660_vm4  ;;  %vm698_vm4 = vcmp.eq.s32.totalorder %v13385_v43, %v13580_v59 }
  0xb7   : > { %12413 = vmatpush1.bf16.msk.msra.mxu1 %vm12412_vm12, %v16949_v44  ;;  %vm12668_vm15 = vmpackc.low %vm678_vm8, %vm668_vm7  ;;  %vm701_vm6 = vcmp.eq.s32.totalorder %v13375_v39, %v13606_v62  ;;  %vm711_vm7 = vcmp.eq.s32.totalorder %v13375_v39, %v13604_v61  ;;  %vm709_vm9 = vcmp.eq.s32.totalorder %v13378_v40, %v13606_v62  ;;  %vm700_vm12 = vcmp.eq.s32.totalorder %v13368_v36, %v13606_v62 }
  0xb8   : > { %12669 = vmatpush1.bf16.msk.msra.mxu0 %vm12668_vm15, %v16949_v44  ;;  %vm12414_vm2 = vmpackc.low %vm691_vm11, %vm681_vm10  ;;  %vm719_vm10 = vcmp.eq.s32.totalorder %v13378_v40, %v13604_v61  ;;  %vm708_vm15 = vcmp.eq.s32.totalorder %v13385_v43, %v13606_v62 }
  0xb9   : > { %12415 = vmatprep.subr.msk.bf16.mxu1 %vm12414_vm2, %v16949_v44  ;;  %vm12670_vm5 = vmpackc.low %vm699_vm14, %vm689_vm13  ;;  %vm710_vm13 = vcmp.eq.s32.totalorder %v13368_v36, %v13604_v61 }
  0xba   : > { %12671 = vmatprep.subr.msk.bf16.mxu0 %vm12670_vm5, %v16949_v44  ;;  %v13628_v63 = vpop.permute.xlu1 %474  ;;  %v13630_v0 = vpop.permute.xlu0 %471  ;;  %vm12416_vm8 = vmpackc.low %vm690_vm1, %vm680_vm0  ;;  %vm718_vm0 = vcmp.eq.s32.totalorder %v13385_v43, %v13604_v61 }
  0xbb   : > { %12417 = vmatpush1.bf16.msk.msra.mxu1 %vm12416_vm8, %v16949_v44  ;;  %vm12672_vm11 = vmpackc.low %vm698_vm4, %vm688_vm3  ;;  %vm721_vm2 = vcmp.eq.s32.totalorder %v13375_v39, %v13630_v0  ;;  %vm731_vm3 = vcmp.eq.s32.totalorder %v13375_v39, %v13628_v63  ;;  %vm729_vm5 = vcmp.eq.s32.totalorder %v13378_v40, %v13630_v0  ;;  %vm720_vm8 = vcmp.eq.s32.totalorder %v13368_v36, %v13630_v0 }
  0xbc   : > { %12673 = vmatpush1.bf16.msk.msra.mxu0 %vm12672_vm11, %v16949_v44  ;;  %vm12418_vm14 = vmpackc.low %vm711_vm7, %vm701_vm6  ;;  %vm739_vm6 = vcmp.eq.s32.totalorder %v13378_v40, %v13628_v63  ;;  %vm728_vm11 = vcmp.eq.s32.totalorder %v13385_v43, %v13630_v0 }
  0xbd   : > { %12419 = vmatprep.subr.msk.bf16.mxu1 %vm12418_vm14, %v16949_v44  ;;  %vm12674_vm1 = vmpackc.low %vm719_vm10, %vm709_vm9  ;;  %vm730_vm9 = vcmp.eq.s32.totalorder %v13368_v36, %v13628_v63 }
  0xbe   : > { %12675 = vmatprep.subr.msk.bf16.mxu0 %vm12674_vm1, %v16949_v44  ;;  %v13652_v1 = vpop.permute.xlu1 %480  ;;  %v13654_v2 = vpop.permute.xlu0 %477  ;;  %vm12420_vm4 = vmpackc.low %vm710_vm13, %vm700_vm12  ;;  %vm738_vm12 = vcmp.eq.s32.totalorder %v13385_v43, %v13628_v63 }
  0xbf   : > { %12421 = vmatpush1.bf16.msk.msra.mxu1 %vm12420_vm4, %v16949_v44  ;;  %vm12676_vm7 = vmpackc.low %vm718_vm0, %vm708_vm15  ;;  %vm741_vm14 = vcmp.eq.s32.totalorder %v13375_v39, %v13654_v2  ;;  %vm751_vm15 = vcmp.eq.s32.totalorder %v13375_v39, %v13652_v1  ;;  %vm749_vm1 = vcmp.eq.s32.totalorder %v13378_v40, %v13654_v2  ;;  %vm740_vm4 = vcmp.eq.s32.totalorder %v13368_v36, %v13654_v2 }
  0xc0   : > { %12677 = vmatpush1.bf16.msk.msra.mxu0 %vm12676_vm7, %v16949_v44  ;;  %vm12422_vm10 = vmpackc.low %vm731_vm3, %vm721_vm2  ;;  %vm759_vm2 = vcmp.eq.s32.totalorder %v13378_v40, %v13652_v1  ;;  %vm748_vm7 = vcmp.eq.s32.totalorder %v13385_v43, %v13654_v2 }
  0xc1   : > { %12423 = vmatprep.subr.msk.bf16.mxu1 %vm12422_vm10, %v16949_v44  ;;  %vm12678_vm13 = vmpackc.low %vm739_vm6, %vm729_vm5  ;;  %vm750_vm5 = vcmp.eq.s32.totalorder %v13368_v36, %v13652_v1 }
  0xc2   : > { %12679 = vmatprep.subr.msk.bf16.mxu0 %vm12678_vm13, %v16949_v44  ;;  %v13676_v3 = vpop.permute.xlu1 %486  ;;  %v13678_v4 = vpop.permute.xlu0 %483  ;;  %vm12424_vm0 = vmpackc.low %vm730_vm9, %vm720_vm8  ;;  %vm758_vm8 = vcmp.eq.s32.totalorder %v13385_v43, %v13652_v1 }
  0xc3   : > { %12425 = vmatpush1.bf16.msk.msra.mxu1 %vm12424_vm0, %v16949_v44  ;;  %vm12680_vm3 = vmpackc.low %vm738_vm12, %vm728_vm11  ;;  %vm761_vm10 = vcmp.eq.s32.totalorder %v13375_v39, %v13678_v4  ;;  %vm771_vm11 = vcmp.eq.s32.totalorder %v13375_v39, %v13676_v3  ;;  %vm769_vm13 = vcmp.eq.s32.totalorder %v13378_v40, %v13678_v4  ;;  %vm760_vm0 = vcmp.eq.s32.totalorder %v13368_v36, %v13678_v4 }
  0xc4   : > { %12681 = vmatpush1.bf16.msk.msra.mxu0 %vm12680_vm3, %v16949_v44  ;;  %vm12426_vm6 = vmpackc.low %vm751_vm15, %vm741_vm14  ;;  %vm779_vm14 = vcmp.eq.s32.totalorder %v13378_v40, %v13676_v3  ;;  %vm768_vm3 = vcmp.eq.s32.totalorder %v13385_v43, %v13678_v4 }
  0xc5   : > { %12427 = vmatprep.subr.msk.bf16.mxu1 %vm12426_vm6, %v16949_v44  ;;  %vm12682_vm9 = vmpackc.low %vm759_vm2, %vm749_vm1  ;;  %vm770_vm1 = vcmp.eq.s32.totalorder %v13368_v36, %v13676_v3 }
  0xc6   : > { %12683 = vmatprep.subr.msk.bf16.mxu0 %vm12682_vm9, %v16949_v44  ;;  %v13700_v5 = vpop.permute.xlu1 %492  ;;  %v13702_v6 = vpop.permute.xlu0 %489  ;;  %vm12428_vm12 = vmpackc.low %vm750_vm5, %vm740_vm4  ;;  %vm778_vm4 = vcmp.eq.s32.totalorder %v13385_v43, %v13676_v3 }
  0xc7   : > { %12429 = vmatpush1.bf16.msk.msra.mxu1 %vm12428_vm12, %v16949_v44  ;;  %vm12684_vm15 = vmpackc.low %vm758_vm8, %vm748_vm7  ;;  %vm781_vm6 = vcmp.eq.s32.totalorder %v13375_v39, %v13702_v6  ;;  %vm791_vm7 = vcmp.eq.s32.totalorder %v13375_v39, %v13700_v5  ;;  %vm789_vm9 = vcmp.eq.s32.totalorder %v13378_v40, %v13702_v6  ;;  %vm780_vm12 = vcmp.eq.s32.totalorder %v13368_v36, %v13702_v6 }
  0xc8   : > { %12685 = vmatpush1.bf16.msk.msra.mxu0 %vm12684_vm15, %v16949_v44  ;;  %vm12430_vm2 = vmpackc.low %vm771_vm11, %vm761_vm10  ;;  %vm799_vm10 = vcmp.eq.s32.totalorder %v13378_v40, %v13700_v5  ;;  %vm788_vm15 = vcmp.eq.s32.totalorder %v13385_v43, %v13702_v6 }
  0xc9   : > { %12431 = vmatprep.subr.msk.bf16.mxu1 %vm12430_vm2, %v16949_v44  ;;  %vm12686_vm5 = vmpackc.low %vm779_vm14, %vm769_vm13  ;;  %vm790_vm13 = vcmp.eq.s32.totalorder %v13368_v36, %v13700_v5 }
  0xca   : > { %12687 = vmatprep.subr.msk.bf16.mxu0 %vm12686_vm5, %v16949_v44  ;;  %v13724_v7 = vpop.permute.xlu1 %498  ;;  %v13726_v8 = vpop.permute.xlu0 %495  ;;  %vm12432_vm8 = vmpackc.low %vm770_vm1, %vm760_vm0  ;;  %vm798_vm0 = vcmp.eq.s32.totalorder %v13385_v43, %v13700_v5 }
  0xcb   : > { %12433 = vmatpush1.bf16.msk.msra.mxu1 %vm12432_vm8, %v16949_v44  ;;  %vm12688_vm11 = vmpackc.low %vm778_vm4, %vm768_vm3  ;;  %vm801_vm2 = vcmp.eq.s32.totalorder %v13375_v39, %v13726_v8  ;;  %vm811_vm3 = vcmp.eq.s32.totalorder %v13375_v39, %v13724_v7  ;;  %vm809_vm5 = vcmp.eq.s32.totalorder %v13378_v40, %v13726_v8  ;;  %vm800_vm8 = vcmp.eq.s32.totalorder %v13368_v36, %v13726_v8 }
  0xcc   : > { %12689 = vmatpush1.bf16.msk.msra.mxu0 %vm12688_vm11, %v16949_v44  ;;  %vm12434_vm14 = vmpackc.low %vm791_vm7, %vm781_vm6  ;;  %vm819_vm6 = vcmp.eq.s32.totalorder %v13378_v40, %v13724_v7  ;;  %vm808_vm11 = vcmp.eq.s32.totalorder %v13385_v43, %v13726_v8 }
  0xcd   : > { %12435 = vmatprep.subr.msk.bf16.mxu1 %vm12434_vm14, %v16949_v44  ;;  %vm12690_vm1 = vmpackc.low %vm799_vm10, %vm789_vm9  ;;  %vm810_vm9 = vcmp.eq.s32.totalorder %v13368_v36, %v13724_v7  ;;  %vm513_vm14 = vcmp.eq.s32.totalorder %v13758_v9, %v13382_v42 }
  0xce   : > { %12691 = vmatprep.subr.msk.bf16.mxu0 %vm12690_vm1, %v16949_v44  ;;  %vm12436_vm4 = vmpackc.low %vm790_vm13, %vm780_vm12  ;;  %vm818_vm12 = vcmp.eq.s32.totalorder %v13385_v43, %v13724_v7  ;;  %vm503_vm1 = vcmp.eq.s32.totalorder %v13758_v9, %v13372_v38 }
  0xcf   : > { %12437 = vmatpush1.bf16.msk.msra.mxu1 %vm12436_vm4, %v16949_v44  ;;  %vm12692_vm7 = vmpackc.low %vm798_vm0, %vm788_vm15  ;;  %vm523_vm4 = vcmp.eq.s32.totalorder %v13758_v9, %v13370_v37 }
  0xd0   : > { %12693 = vmatpush1.bf16.msk.msra.mxu0 %vm12692_vm7, %v16949_v44  ;;  %vm12438_vm10 = vmpackc.low %vm811_vm3, %vm801_vm2  ;;  %vm512_vm2 = vcmp.eq.s32.totalorder %v13769_v10, %v13382_v42 }
  0xd1   : > { %12439 = vmatprep.subr.msk.bf16.mxu1 %vm12438_vm10, %v16949_v44  ;;  %vm12694_vm13 = vmpackc.low %vm819_vm6, %vm809_vm5  ;;  %vm533_vm5 = vcmp.eq.s32.totalorder %v13758_v9, %v13380_v41  ;;  %vm502_vm6 = vcmp.eq.s32.totalorder %v13769_v10, %v13372_v38  ;;  %vm532_vm10 = vcmp.eq.s32.totalorder %v13769_v10, %v13380_v41 }
  0xd2   : > { %12695 = vmatprep.subr.msk.bf16.mxu0 %vm12694_vm13, %v16949_v44  ;;  %vm12440_vm15 = vmpackc.low %vm810_vm9, %vm800_vm8  ;;  %vm522_vm9 = vcmp.eq.s32.totalorder %v13769_v10, %v13370_v37 }
  0xd3   : > { %12441 = vmatpush1.bf16.msk.msra.mxu1 %vm12440_vm15, %v16949_v44  ;;  %vm12696_vm0 = vmpackc.low %vm818_vm12, %vm808_vm11  ;;  %vm543_vm11 = vcmp.eq.s32.totalorder %v13758_v9, %v13409_v46  ;;  %vm553_vm12 = vcmp.eq.s32.totalorder %v13758_v9, %v13407_v45  ;;  %vm542_vm15 = vcmp.eq.s32.totalorder %v13769_v10, %v13409_v46 }
  0xd4   : > { %12697 = vmatpush1.bf16.msk.msra.mxu0 %vm12696_vm0, %v16949_v44  ;;  %vm12442_vm3 = vmpackc.low %vm513_vm14, %vm503_vm1  ;;  %vm552_vm0 = vcmp.eq.s32.totalorder %v13769_v10, %v13407_v45  ;;  %vm563_vm1 = vcmp.eq.s32.totalorder %v13758_v9, %v13438_v48 }
  0xd5   : > { %12443 = vmatprep.subr.msk.bf16.mxu1 %vm12442_vm3, %v16949_v44  ;;  %vm12444_vm7 = vmpackc.low %vm512_vm2, %vm502_vm6  ;;  %vm573_vm2 = vcmp.eq.s32.totalorder %v13758_v9, %v13436_v47  ;;  %vm572_vm6 = vcmp.eq.s32.totalorder %v13769_v10, %v13436_v47  ;;  %12318 = vmatprep.subr.mxu0 %v13173_v22 }
  0xd6   : > { %1528 = vmatmul.mubr.f32.vlgmr.msra.gmra.mrb[0].mxu1 %v13359_v33  ;;  %vm12446_vm8 = vmpackc.low %vm533_vm5, %vm523_vm4  ;;  %vm562_vm5 = vcmp.eq.s32.totalorder %v13769_v10, %v13438_v48 }
  0xd7   : > { %12445 = vmatpush1.bf16.msk.msra.mxu1 %vm12444_vm7, %v16949_v44  ;;  %1598 = vmatprep.mubr.f32.mxu1 %v13363_v34  ;;  %vm12448_vm13 = vmpackc.low %vm532_vm10, %vm522_vm9  ;;  %vm583_vm7 = vcmp.eq.s32.totalorder %v13758_v9, %v13462_v50 }
  0xd8   : > { %12447 = vmatprep.subr.msk.bf16.mxu1 %vm12446_vm8, %v16949_v44  ;;  %1812 = vmatmul.mubr.f32.vlgmr.msra.gmra.mrb[0].mxu0 %v13359_v33  ;;  %vm12450_vm14 = vmpackc.low %vm553_vm12, %vm543_vm11  ;;  %vm593_vm8 = vcmp.eq.s32.totalorder %v13758_v9, %v13460_v49  ;;  %vm582_vm11 = vcmp.eq.s32.totalorder %v13769_v10, %v13462_v50  ;;  %vm592_vm12 = vcmp.eq.s32.totalorder %v13769_v10, %v13460_v49 }
  0xd9   : > { %vm12452_vm3 = vmpackc.low %vm552_vm0, %vm542_vm15 }
  0xda   : > { %vm12454_vm4 = vmpackc.low %vm573_vm2, %vm563_vm1  ;;  %vm602_vm1 = vcmp.eq.s32.totalorder %v13769_v10, %v13486_v52  ;;  %vm612_vm2 = vcmp.eq.s32.totalorder %v13769_v10, %v13484_v51 }
  0xdb   : > { %12449 = vmatpush1.bf16.msk.msra.mxu1 %vm12448_vm13, %v16949_v44  ;;  %vm12456_vm9 = vmpackc.low %vm572_vm6, %vm562_vm5  ;;  %vm603_vm13 = vcmp.eq.s32.totalorder %v13758_v9, %v13486_v52 }
  0xdc   : > { %12451 = vmatprep.subr.msk.bf16.mxu1 %vm12450_vm14, %v16949_v44  ;;  %vm12458_vm10 = vmpackc.low %vm593_vm8, %vm583_vm7  ;;  %vm613_vm14 = vcmp.eq.s32.totalorder %v13758_v9, %v13484_v51  ;;  %vm622_vm7 = vcmp.eq.s32.totalorder %v13769_v10, %v13510_v54  ;;  %vm632_vm8 = vcmp.eq.s32.totalorder %v13769_v10, %v13508_v53 }
  0xdd   : > { %vm12460_vm15 = vmpackc.low %vm592_vm12, %vm582_vm11 }
  0xde   : > { %vm12462_vm0 = vmpackc.low %vm613_vm14, %vm603_vm13  ;;  %vm642_vm13 = vcmp.eq.s32.totalorder %v13769_v10, %v13534_v56  ;;  %vm652_vm14 = vcmp.eq.s32.totalorder %v13769_v10, %v13532_v55 }
  0xdf   : > { %12453 = vmatpush1.bf16.msk.msra.mxu1 %vm12452_vm3, %v16949_v44  ;;  %vm623_vm3 = vcmp.eq.s32.totalorder %v13758_v9, %v13510_v54  ;;  %vm12464_vm5 = vmpackc.low %vm612_vm2, %vm602_vm1 }
  0xe0   : > { %12455 = vmatprep.subr.msk.bf16.mxu1 %vm12454_vm4, %v16949_v44  ;;  %vm633_vm4 = vcmp.eq.s32.totalorder %v13758_v9, %v13508_v53  ;;  %vm12468_vm11 = vmpackc.low %vm632_vm8, %vm622_vm7 }
  0xe1   : > { %vm12466_vm6 = vmpackc.low %vm633_vm4, %vm623_vm3  ;;  %vm662_vm3 = vcmp.eq.s32.totalorder %v13769_v10, %v13558_v58  ;;  %vm672_vm4 = vcmp.eq.s32.totalorder %v13769_v10, %v13556_v57 }
  0xe2   : > { %vm12472_vm1 = vmpackc.low %vm652_vm14, %vm642_vm13 }
  0xe3   : > { %12457 = vmatpush1.bf16.msk.msra.mxu1 %vm12456_vm9, %v16949_v44  ;;  %vm643_vm9 = vcmp.eq.s32.totalorder %v13758_v9, %v13534_v56  ;;  %vm12476_vm7 = vmpackc.low %vm672_vm4, %vm662_vm3 }
  0xe4   : > { %12459 = vmatprep.subr.msk.bf16.mxu1 %vm12458_vm10, %v16949_v44  ;;  %vm653_vm10 = vcmp.eq.s32.totalorder %v13758_v9, %v13532_v55 }
  0xe5   : > { %vm12470_vm12 = vmpackc.low %vm653_vm10, %vm643_vm9  ;;  %vm682_vm9 = vcmp.eq.s32.totalorder %v13769_v10, %v13582_v60  ;;  %vm692_vm10 = vcmp.eq.s32.totalorder %v13769_v10, %v13580_v59 }
  0xe6   : > { %vm12480_vm13 = vmpackc.low %vm692_vm10, %vm682_vm9 }
  0xe7   : > { %12461 = vmatpush1.bf16.msk.msra.mxu1 %vm12460_vm15, %v16949_v44  ;;  %vm663_vm15 = vcmp.eq.s32.totalorder %v13758_v9, %v13558_v58 }
  0xe8   : > { %12463 = vmatprep.subr.msk.bf16.mxu1 %vm12462_vm0, %v16949_v44  ;;  %vm673_vm0 = vcmp.eq.s32.totalorder %v13758_v9, %v13556_v57 }
  0xe9   : > { %vm12474_vm2 = vmpackc.low %vm673_vm0, %vm663_vm15  ;;  %vm702_vm15 = vcmp.eq.s32.totalorder %v13769_v10, %v13606_v62  ;;  %vm712_vm0 = vcmp.eq.s32.totalorder %v13769_v10, %v13604_v61 }
  0xea   : > { %vm12484_vm3 = vmpackc.low %vm712_vm0, %vm702_vm15 }
  0xeb   : > { %12465 = vmatpush1.bf16.msk.msra.mxu1 %vm12464_vm5, %v16949_v44  ;;  %vm683_vm5 = vcmp.eq.s32.totalorder %v13758_v9, %v13582_v60 }
  0xec   : > { %12467 = vmatprep.subr.msk.bf16.mxu1 %vm12466_vm6, %v16949_v44  ;;  %vm693_vm6 = vcmp.eq.s32.totalorder %v13758_v9, %v13580_v59 }
  0xed   : > { %vm12478_vm8 = vmpackc.low %vm693_vm6, %vm683_vm5  ;;  %vm722_vm5 = vcmp.eq.s32.totalorder %v13769_v10, %v13630_v0  ;;  %vm732_vm6 = vcmp.eq.s32.totalorder %v13769_v10, %v13628_v63 }
  0xee   : > { %vm12488_vm9 = vmpackc.low %vm732_vm6, %vm722_vm5 }
  0xef   : > { %12469 = vmatpush1.bf16.msk.msra.mxu1 %vm12468_vm11, %v16949_v44  ;;  %vm703_vm11 = vcmp.eq.s32.totalorder %v13758_v9, %v13606_v62 }
  0xf0   : > { %12471 = vmatprep.subr.msk.bf16.mxu1 %vm12470_vm12, %v16949_v44  ;;  %vm713_vm12 = vcmp.eq.s32.totalorder %v13758_v9, %v13604_v61 }
  0xf1   : > { %vm12482_vm14 = vmpackc.low %vm713_vm12, %vm703_vm11  ;;  %vm742_vm11 = vcmp.eq.s32.totalorder %v13769_v10, %v13654_v2  ;;  %vm752_vm12 = vcmp.eq.s32.totalorder %v13769_v10, %v13652_v1 }
  0xf2   : > { %vm12492_vm15 = vmpackc.low %vm752_vm12, %vm742_vm11 }
  0xf3   : > { %12473 = vmatpush1.bf16.msk.msra.mxu1 %vm12472_vm1, %v16949_v44  ;;  %vm723_vm1 = vcmp.eq.s32.totalorder %v13758_v9, %v13630_v0 }
  0xf4   : > { %12475 = vmatprep.subr.msk.bf16.mxu1 %vm12474_vm2, %v16949_v44  ;;  %vm733_vm2 = vcmp.eq.s32.totalorder %v13758_v9, %v13628_v63 }
  0xf5   : > { %vm12486_vm4 = vmpackc.low %vm733_vm2, %vm723_vm1  ;;  %vm762_vm1 = vcmp.eq.s32.totalorder %v13769_v10, %v13678_v4  ;;  %vm772_vm2 = vcmp.eq.s32.totalorder %v13769_v10, %v13676_v3 }
  0xf6   : > { %vm12496_vm5 = vmpackc.low %vm772_vm2, %vm762_vm1  ;;  %vm505_vm1 = vcmp.eq.s32.totalorder %v13929_v11, %v13372_v38 }
  0xf7   : > { %12477 = vmatpush1.bf16.msk.msra.mxu1 %vm12476_vm7, %v16949_v44  ;;  %vm743_vm7 = vcmp.eq.s32.totalorder %v13758_v9, %v13654_v2 }
  0xf8   : > { %12479 = vmatprep.subr.msk.bf16.mxu1 %vm12478_vm8, %v16949_v44  ;;  %vm753_vm8 = vcmp.eq.s32.totalorder %v13758_v9, %v13652_v1 }
  0xf9   : > { %vm12490_vm10 = vmpackc.low %vm753_vm8, %vm743_vm7  ;;  %vm782_vm7 = vcmp.eq.s32.totalorder %v13769_v10, %v13702_v6  ;;  %vm792_vm8 = vcmp.eq.s32.totalorder %v13769_v10, %v13700_v5 }
  0xfa   : > { %vm12500_vm11 = vmpackc.low %vm792_vm8, %vm782_vm7 }
  0xfb   : > { %12481 = vmatpush1.bf16.msk.msra.mxu1 %vm12480_vm13, %v16949_v44  ;;  %vm763_vm13 = vcmp.eq.s32.totalorder %v13758_v9, %v13678_v4 }
  0xfc   : > { %12483 = vmatprep.subr.msk.bf16.mxu1 %vm12482_vm14, %v16949_v44  ;;  %vm773_vm14 = vcmp.eq.s32.totalorder %v13758_v9, %v13676_v3 }
  0xfd   : > { %vm12494_vm0 = vmpackc.low %vm773_vm14, %vm763_vm13  ;;  %vm802_vm13 = vcmp.eq.s32.totalorder %v13769_v10, %v13726_v8  ;;  %vm812_vm14 = vcmp.eq.s32.totalorder %v13769_v10, %v13724_v7 }
  0xff   : > { %12485 = vmatpush1.bf16.msk.msra.mxu1 %vm12484_vm3, %v16949_v44  ;;  %vm783_vm3 = vcmp.eq.s32.totalorder %v13758_v9, %v13702_v6 }
 0x100   : > { %12487 = vmatprep.subr.msk.bf16.mxu1 %vm12486_vm4, %v16949_v44  ;;  %vm793_vm4 = vcmp.eq.s32.totalorder %v13758_v9, %v13700_v5 }
 0x101   : > { %vm12498_vm6 = vmpackc.low %vm793_vm4, %vm783_vm3  ;;  %vm514_vm3 = vcmp.eq.s32.totalorder %v13940_v12, %v13382_v42  ;;  %vm525_vm4 = vcmp.eq.s32.totalorder %v13929_v11, %v13370_v37 }
 0x103   : > { %12489 = vmatpush1.bf16.msk.msra.mxu1 %vm12488_vm9, %v16949_v44  ;;  %vm803_vm9 = vcmp.eq.s32.totalorder %v13758_v9, %v13726_v8 }
 0x104   : > { %12491 = vmatprep.subr.msk.bf16.mxu1 %vm12490_vm10, %v16949_v44  ;;  %vm813_vm10 = vcmp.eq.s32.totalorder %v13758_v9, %v13724_v7 }
 0x105   : > { %vm12502_vm12 = vmpackc.low %vm813_vm10, %vm803_vm9  ;;  %vm524_vm9 = vcmp.eq.s32.totalorder %v13940_v12, %v13370_v37  ;;  %vm534_vm10 = vcmp.eq.s32.totalorder %v13940_v12, %v13380_v41 }
 0x107   : > { %12493 = vmatpush1.bf16.msk.msra.mxu1 %vm12492_vm15, %v16949_v44  ;;  %vm515_vm15 = vcmp.eq.s32.totalorder %v13929_v11, %v13382_v42 }
 0x108   : > { %12495 = vmatprep.subr.msk.bf16.mxu1 %vm12494_vm0, %v16949_v44  ;;  %vm12504_vm0 = vmpackc.low %vm812_vm14, %vm802_vm13 }
 0x109   : > { %vm12506_vm2 = vmpackc.low %vm515_vm15, %vm505_vm1  ;;  %vm544_vm15 = vcmp.eq.s32.totalorder %v13940_v12, %v13409_v46  ;;  %vm565_vm1 = vcmp.eq.s32.totalorder %v13929_v11, %v13438_v48 }
 0x10a   : > { %vm12512_vm13 = vmpackc.low %vm534_vm10, %vm524_vm9 }
 0x10b   : > { %12497 = vmatpush1.bf16.msk.msra.mxu1 %vm12496_vm5, %v16949_v44  ;;  %vm535_vm5 = vcmp.eq.s32.totalorder %v13929_v11, %v13380_v41 }
 0x10c   : > { %12499 = vmatprep.subr.msk.bf16.mxu1 %vm12498_vm6, %v16949_v44  ;;  %vm504_vm6 = vcmp.eq.s32.totalorder %v13940_v12, %v13372_v38  ;;  %vm12510_vm8 = vmpackc.low %vm535_vm5, %vm525_vm4  ;;  %vm564_vm5 = vcmp.eq.s32.totalorder %v13940_v12, %v13438_v48 }
 0x10d   : > { %vm12508_vm7 = vmpackc.low %vm514_vm3, %vm504_vm6  ;;  %vm574_vm6 = vcmp.eq.s32.totalorder %v13940_v12, %v13436_v47 }
 0x10e   : > { %vm12520_vm9 = vmpackc.low %vm574_vm6, %vm564_vm5 }
 0x10f   : > { %12501 = vmatpush1.bf16.msk.msra.mxu1 %vm12500_vm11, %v16949_v44  ;;  %vm545_vm11 = vcmp.eq.s32.totalorder %v13929_v11, %v13409_v46 }
 0x110   : > { %12503 = vmatprep.subr.msk.bf16.mxu1 %vm12502_vm12, %v16949_v44  ;;  %vm555_vm12 = vcmp.eq.s32.totalorder %v13929_v11, %v13407_v45 }
 0x111   : > { %vm12514_vm14 = vmpackc.low %vm555_vm12, %vm545_vm11  ;;  %vm584_vm11 = vcmp.eq.s32.totalorder %v13940_v12, %v13462_v50  ;;  %vm594_vm12 = vcmp.eq.s32.totalorder %v13940_v12, %v13460_v49 }
 0x113   : > { %12505 = vmatpush1.bf16.msk.msra.mxu1 %vm12504_vm0, %v16949_v44  ;;  %vm554_vm0 = vcmp.eq.s32.totalorder %v13940_v12, %v13407_v45 }
 0x114   : > { %12507 = vmatprep.subr.msk.bf16.mxu1 %vm12506_vm2, %v16949_v44  ;;  %vm575_vm2 = vcmp.eq.s32.totalorder %v13929_v11, %v13436_v47  ;;  %vm12516_vm3 = vmpackc.low %vm554_vm0, %vm544_vm15 }
 0x115   : > { %vm12518_vm4 = vmpackc.low %vm575_vm2, %vm565_vm1  ;;  %vm604_vm1 = vcmp.eq.s32.totalorder %v13940_v12, %v13486_v52  ;;  %vm614_vm2 = vcmp.eq.s32.totalorder %v13940_v12, %v13484_v51 }
 0x116   : > { %1599 = vmatmul.mubr.f32.vlgmr.msra.gmra.mrb[2].mxu1 %v13359_v33  ;;  %vm12524_vm15 = vmpackc.low %vm594_vm12, %vm584_vm11 }
 0x117   : > { %12509 = vmatpush1.bf16.msk.msra.mxu1 %vm12508_vm7, %v16949_v44  ;;  %1669 = vmatprep.mubr.f32.mxu1 %v13363_v34  ;;  %vm585_vm7 = vcmp.eq.s32.totalorder %v13929_v11, %v13462_v50  ;;  %vm12528_vm5 = vmpackc.low %vm614_vm2, %vm604_vm1 }
 0x118   : > { %12511 = vmatprep.subr.msk.bf16.mxu1 %vm12510_vm8, %v16949_v44  ;;  %vm595_vm8 = vcmp.eq.s32.totalorder %v13929_v11, %v13460_v49 }
 0x119   : > { %vm12522_vm10 = vmpackc.low %vm595_vm8, %vm585_vm7  ;;  %vm624_vm7 = vcmp.eq.s32.totalorder %v13940_v12, %v13510_v54  ;;  %vm634_vm8 = vcmp.eq.s32.totalorder %v13940_v12, %v13508_v53 }
 0x11a   : > { %vm12532_vm11 = vmpackc.low %vm634_vm8, %vm624_vm7 }
 0x11b   : > { %12513 = vmatpush1.bf16.msk.msra.mxu1 %vm12512_vm13, %v16949_v44  ;;  %vm605_vm13 = vcmp.eq.s32.totalorder %v13929_v11, %v13486_v52 }
 0x11c   : > { %12515 = vmatprep.subr.msk.bf16.mxu1 %vm12514_vm14, %v16949_v44  ;;  %vm615_vm14 = vcmp.eq.s32.totalorder %v13929_v11, %v13484_v51 }
 0x11d   : > { %vm12526_vm0 = vmpackc.low %vm615_vm14, %vm605_vm13  ;;  %vm644_vm13 = vcmp.eq.s32.totalorder %v13940_v12, %v13534_v56  ;;  %vm654_vm14 = vcmp.eq.s32.totalorder %v13940_v12, %v13532_v55 }
 0x11e   : > { %vm12536_vm1 = vmpackc.low %vm654_vm14, %vm644_vm13 }
 0x11f   : > { %12517 = vmatpush1.bf16.msk.msra.mxu1 %vm12516_vm3, %v16949_v44  ;;  %vm625_vm3 = vcmp.eq.s32.totalorder %v13929_v11, %v13510_v54 }
 0x120   : > { %12519 = vmatprep.subr.msk.bf16.mxu1 %vm12518_vm4, %v16949_v44  ;;  %vm635_vm4 = vcmp.eq.s32.totalorder %v13929_v11, %v13508_v53 }
 0x121   : > { %vm12530_vm6 = vmpackc.low %vm635_vm4, %vm625_vm3  ;;  %vm664_vm3 = vcmp.eq.s32.totalorder %v13940_v12, %v13558_v58  ;;  %vm674_vm4 = vcmp.eq.s32.totalorder %v13940_v12, %v13556_v57 }
 0x122   : > { %vm12540_vm7 = vmpackc.low %vm674_vm4, %vm664_vm3 }
 0x123   : > { %12521 = vmatpush1.bf16.msk.msra.mxu1 %vm12520_vm9, %v16949_v44  ;;  %vm645_vm9 = vcmp.eq.s32.totalorder %v13929_v11, %v13534_v56 }
 0x124   : > { %12523 = vmatprep.subr.msk.bf16.mxu1 %vm12522_vm10, %v16949_v44  ;;  %vm655_vm10 = vcmp.eq.s32.totalorder %v13929_v11, %v13532_v55 }
 0x125   : > { %vm12534_vm12 = vmpackc.low %vm655_vm10, %vm645_vm9  ;;  %vm684_vm9 = vcmp.eq.s32.totalorder %v13940_v12, %v13582_v60  ;;  %vm694_vm10 = vcmp.eq.s32.totalorder %v13940_v12, %v13580_v59 }
 0x126   : > { %vm12544_vm13 = vmpackc.low %vm694_vm10, %vm684_vm9 }
 0x127   : > { %12525 = vmatpush1.bf16.msk.msra.mxu1 %vm12524_vm15, %v16949_v44  ;;  %vm665_vm15 = vcmp.eq.s32.totalorder %v13929_v11, %v13558_v58 }
 0x128   : > { %12527 = vmatprep.subr.msk.bf16.mxu1 %vm12526_vm0, %v16949_v44  ;;  %vm675_vm0 = vcmp.eq.s32.totalorder %v13929_v11, %v13556_v57 }
 0x129   : > { %vm12538_vm2 = vmpackc.low %vm675_vm0, %vm665_vm15  ;;  %vm704_vm15 = vcmp.eq.s32.totalorder %v13940_v12, %v13606_v62  ;;  %vm714_vm0 = vcmp.eq.s32.totalorder %v13940_v12, %v13604_v61 }
 0x12a   : > { %vm12548_vm3 = vmpackc.low %vm714_vm0, %vm704_vm15 }
 0x12b   : > { %12529 = vmatpush1.bf16.msk.msra.mxu1 %vm12528_vm5, %v16949_v44  ;;  %vm685_vm5 = vcmp.eq.s32.totalorder %v13929_v11, %v13582_v60 }
 0x12c   : > { %12531 = vmatprep.subr.msk.bf16.mxu1 %vm12530_vm6, %v16949_v44  ;;  %vm695_vm6 = vcmp.eq.s32.totalorder %v13929_v11, %v13580_v59 }
 0x12d   : > { %vm12542_vm8 = vmpackc.low %vm695_vm6, %vm685_vm5  ;;  %vm724_vm5 = vcmp.eq.s32.totalorder %v13940_v12, %v13630_v0  ;;  %vm734_vm6 = vcmp.eq.s32.totalorder %v13940_v12, %v13628_v63 }
 0x12e   : > { %vm12552_vm9 = vmpackc.low %vm734_vm6, %vm724_vm5 }
 0x12f   : > { %12533 = vmatpush1.bf16.msk.msra.mxu1 %vm12532_vm11, %v16949_v44  ;;  %vm705_vm11 = vcmp.eq.s32.totalorder %v13929_v11, %v13606_v62 }
 0x130   : > { %12535 = vmatprep.subr.msk.bf16.mxu1 %vm12534_vm12, %v16949_v44  ;;  %vm715_vm12 = vcmp.eq.s32.totalorder %v13929_v11, %v13604_v61 }
 0x131   : > { %vm12546_vm14 = vmpackc.low %vm715_vm12, %vm705_vm11  ;;  %vm744_vm11 = vcmp.eq.s32.totalorder %v13940_v12, %v13654_v2  ;;  %vm754_vm12 = vcmp.eq.s32.totalorder %v13940_v12, %v13652_v1 }
 0x132   : > { %vm12556_vm15 = vmpackc.low %vm754_vm12, %vm744_vm11 }
 0x133   : > { %12537 = vmatpush1.bf16.msk.msra.mxu1 %vm12536_vm1, %v16949_v44  ;;  %vm725_vm1 = vcmp.eq.s32.totalorder %v13929_v11, %v13630_v0 }
 0x134   : > { %12539 = vmatprep.subr.msk.bf16.mxu1 %vm12538_vm2, %v16949_v44  ;;  %vm735_vm2 = vcmp.eq.s32.totalorder %v13929_v11, %v13628_v63 }
 0x135   : > { %vm12550_vm4 = vmpackc.low %vm735_vm2, %vm725_vm1  ;;  %vm764_vm1 = vcmp.eq.s32.totalorder %v13940_v12, %v13678_v4  ;;  %vm774_vm2 = vcmp.eq.s32.totalorder %v13940_v12, %v13676_v3 }
 0x136   : > { %vm12560_vm5 = vmpackc.low %vm774_vm2, %vm764_vm1  ;;  %vm507_vm1 = vcmp.eq.s32.totalorder %v14097_v13, %v13372_v38 }
 0x137   : > { %12541 = vmatpush1.bf16.msk.msra.mxu1 %vm12540_vm7, %v16949_v44  ;;  %vm745_vm7 = vcmp.eq.s32.totalorder %v13929_v11, %v13654_v2 }
 0x138   : > { %12543 = vmatprep.subr.msk.bf16.mxu1 %vm12542_vm8, %v16949_v44  ;;  %vm755_vm8 = vcmp.eq.s32.totalorder %v13929_v11, %v13652_v1 }
 0x139   : > { %vm12554_vm10 = vmpackc.low %vm755_vm8, %vm745_vm7  ;;  %vm784_vm7 = vcmp.eq.s32.totalorder %v13940_v12, %v13702_v6  ;;  %vm794_vm8 = vcmp.eq.s32.totalorder %v13940_v12, %v13700_v5 }
 0x13a   : > { %vm12564_vm11 = vmpackc.low %vm794_vm8, %vm784_vm7 }
 0x13b   : > { %12545 = vmatpush1.bf16.msk.msra.mxu1 %vm12544_vm13, %v16949_v44  ;;  %vm765_vm13 = vcmp.eq.s32.totalorder %v13929_v11, %v13678_v4 }
 0x13c   : > { %12547 = vmatprep.subr.msk.bf16.mxu1 %vm12546_vm14, %v16949_v44  ;;  %vm775_vm14 = vcmp.eq.s32.totalorder %v13929_v11, %v13676_v3 }
 0x13d   : > { %vm12558_vm0 = vmpackc.low %vm775_vm14, %vm765_vm13  ;;  %vm804_vm13 = vcmp.eq.s32.totalorder %v13940_v12, %v13726_v8  ;;  %vm814_vm14 = vcmp.eq.s32.totalorder %v13940_v12, %v13724_v7 }
 0x13f   : > { %12549 = vmatpush1.bf16.msk.msra.mxu1 %vm12548_vm3, %v16949_v44  ;;  %vm785_vm3 = vcmp.eq.s32.totalorder %v13929_v11, %v13702_v6 }
 0x140   : > { %12551 = vmatprep.subr.msk.bf16.mxu1 %vm12550_vm4, %v16949_v44  ;;  %vm795_vm4 = vcmp.eq.s32.totalorder %v13929_v11, %v13700_v5 }
 0x141   : > { %vm12562_vm6 = vmpackc.low %vm795_vm4, %vm785_vm3  ;;  %vm516_vm3 = vcmp.eq.s32.totalorder %v14108_v14, %v13382_v42  ;;  %vm527_vm4 = vcmp.eq.s32.totalorder %v14097_v13, %v13370_v37 }
 0x143   : > { %12553 = vmatpush1.bf16.msk.msra.mxu1 %vm12552_vm9, %v16949_v44  ;;  %vm805_vm9 = vcmp.eq.s32.totalorder %v13929_v11, %v13726_v8 }
 0x144   : > { %12555 = vmatprep.subr.msk.bf16.mxu1 %vm12554_vm10, %v16949_v44  ;;  %vm815_vm10 = vcmp.eq.s32.totalorder %v13929_v11, %v13724_v7 }
 0x145   : > { %vm12566_vm12 = vmpackc.low %vm815_vm10, %vm805_vm9  ;;  %vm526_vm9 = vcmp.eq.s32.totalorder %v14108_v14, %v13370_v37  ;;  %vm536_vm10 = vcmp.eq.s32.totalorder %v14108_v14, %v13380_v41 }
 0x147   : > { %12557 = vmatpush1.bf16.msk.msra.mxu1 %vm12556_vm15, %v16949_v44  ;;  %vm517_vm15 = vcmp.eq.s32.totalorder %v14097_v13, %v13382_v42 }
 0x148   : > { %12559 = vmatprep.subr.msk.bf16.mxu1 %vm12558_vm0, %v16949_v44  ;;  %vm12568_vm0 = vmpackc.low %vm814_vm14, %vm804_vm13 }
 0x149   : > { %vm12570_vm2 = vmpackc.low %vm517_vm15, %vm507_vm1  ;;  %vm546_vm15 = vcmp.eq.s32.totalorder %v14108_v14, %v13409_v46  ;;  %vm567_vm1 = vcmp.eq.s32.totalorder %v14097_v13, %v13438_v48 }
 0x14a   : > { %vm12576_vm13 = vmpackc.low %vm536_vm10, %vm526_vm9 }
 0x14b   : > { %12561 = vmatpush1.bf16.msk.msra.mxu1 %vm12560_vm5, %v16949_v44  ;;  %vm537_vm5 = vcmp.eq.s32.totalorder %v14097_v13, %v13380_v41 }
 0x14c   : > { %12563 = vmatprep.subr.msk.bf16.mxu1 %vm12562_vm6, %v16949_v44  ;;  %vm506_vm6 = vcmp.eq.s32.totalorder %v14108_v14, %v13372_v38  ;;  %vm12574_vm8 = vmpackc.low %vm537_vm5, %vm527_vm4  ;;  %vm566_vm5 = vcmp.eq.s32.totalorder %v14108_v14, %v13438_v48 }
 0x14d   : > { %vm12572_vm7 = vmpackc.low %vm516_vm3, %vm506_vm6  ;;  %vm576_vm6 = vcmp.eq.s32.totalorder %v14108_v14, %v13436_v47 }
 0x14e   : > { %vm12584_vm9 = vmpackc.low %vm576_vm6, %vm566_vm5 }
 0x14f   : > { %12565 = vmatpush1.bf16.msk.msra.mxu1 %vm12564_vm11, %v16949_v44  ;;  %vm547_vm11 = vcmp.eq.s32.totalorder %v14097_v13, %v13409_v46 }
 0x150   : > { %12567 = vmatprep.subr.msk.bf16.mxu1 %vm12566_vm12, %v16949_v44  ;;  %vm557_vm12 = vcmp.eq.s32.totalorder %v14097_v13, %v13407_v45 }
 0x151   : > { %vm12578_vm14 = vmpackc.low %vm557_vm12, %vm547_vm11  ;;  %vm586_vm11 = vcmp.eq.s32.totalorder %v14108_v14, %v13462_v50  ;;  %vm596_vm12 = vcmp.eq.s32.totalorder %v14108_v14, %v13460_v49 }
 0x153   : > { %12569 = vmatpush1.bf16.msk.msra.mxu1 %vm12568_vm0, %v16949_v44  ;;  %vm556_vm0 = vcmp.eq.s32.totalorder %v14108_v14, %v13407_v45 }
 0x154   : > { %12571 = vmatprep.subr.msk.bf16.mxu1 %vm12570_vm2, %v16949_v44  ;;  %vm577_vm2 = vcmp.eq.s32.totalorder %v14097_v13, %v13436_v47  ;;  %vm12580_vm3 = vmpackc.low %vm556_vm0, %vm546_vm15 }
 0x155   : > { %vm12582_vm4 = vmpackc.low %vm577_vm2, %vm567_vm1  ;;  %vm606_vm1 = vcmp.eq.s32.totalorder %v14108_v14, %v13486_v52  ;;  %vm616_vm2 = vcmp.eq.s32.totalorder %v14108_v14, %v13484_v51 }
 0x156   : > { %1670 = vmatmul.mubr.f32.vlgmr.msra.gmra.mrb[4].mxu1 %v14123_v15  ;;  %vm12588_vm15 = vmpackc.low %vm596_vm12, %vm586_vm11 }
 0x157   : > { %12573 = vmatpush1.bf16.msk.msra.mxu1 %vm12572_vm7, %v16949_v44  ;;  %1740 = vmatprep.mubr.f32.mxu1 %v13363_v34  ;;  %vm587_vm7 = vcmp.eq.s32.totalorder %v14097_v13, %v13462_v50  ;;  %vm12592_vm5 = vmpackc.low %vm616_vm2, %vm606_vm1 }
 0x158   : > { %12575 = vmatprep.subr.msk.bf16.mxu1 %vm12574_vm8, %v16949_v44  ;;  %vm597_vm8 = vcmp.eq.s32.totalorder %v14097_v13, %v13460_v49 }
 0x159   : > { %vm12586_vm10 = vmpackc.low %vm597_vm8, %vm587_vm7  ;;  %vm626_vm7 = vcmp.eq.s32.totalorder %v14108_v14, %v13510_v54  ;;  %vm636_vm8 = vcmp.eq.s32.totalorder %v14108_v14, %v13508_v53 }
 0x15a   : > { %vm12596_vm11 = vmpackc.low %vm636_vm8, %vm626_vm7 }
 0x15b   : > { %12577 = vmatpush1.bf16.msk.msra.mxu1 %vm12576_vm13, %v16949_v44  ;;  %vm607_vm13 = vcmp.eq.s32.totalorder %v14097_v13, %v13486_v52 }
 0x15c   : > { %12579 = vmatprep.subr.msk.bf16.mxu1 %vm12578_vm14, %v16949_v44  ;;  %vm617_vm14 = vcmp.eq.s32.totalorder %v14097_v13, %v13484_v51 }
 0x15d   : > { %vm12590_vm0 = vmpackc.low %vm617_vm14, %vm607_vm13  ;;  %vm646_vm13 = vcmp.eq.s32.totalorder %v14108_v14, %v13534_v56  ;;  %vm656_vm14 = vcmp.eq.s32.totalorder %v14108_v14, %v13532_v55 }
 0x15e   : > { %vm12600_vm1 = vmpackc.low %vm656_vm14, %vm646_vm13 }
 0x15f   : > { %12581 = vmatpush1.bf16.msk.msra.mxu1 %vm12580_vm3, %v16949_v44  ;;  %vm627_vm3 = vcmp.eq.s32.totalorder %v14097_v13, %v13510_v54 }
 0x160   : > { %12583 = vmatprep.subr.msk.bf16.mxu1 %vm12582_vm4, %v16949_v44  ;;  %vm637_vm4 = vcmp.eq.s32.totalorder %v14097_v13, %v13508_v53 }
 0x161   : > { %vm12594_vm6 = vmpackc.low %vm637_vm4, %vm627_vm3  ;;  %vm666_vm3 = vcmp.eq.s32.totalorder %v14108_v14, %v13558_v58  ;;  %vm676_vm4 = vcmp.eq.s32.totalorder %v14108_v14, %v13556_v57 }
 0x162   : > { %vm12604_vm7 = vmpackc.low %vm676_vm4, %vm666_vm3 }
 0x163   : > { %12585 = vmatpush1.bf16.msk.msra.mxu1 %vm12584_vm9, %v16949_v44  ;;  %vm647_vm9 = vcmp.eq.s32.totalorder %v14097_v13, %v13534_v56 }
 0x164   : > { %12587 = vmatprep.subr.msk.bf16.mxu1 %vm12586_vm10, %v16949_v44  ;;  %vm657_vm10 = vcmp.eq.s32.totalorder %v14097_v13, %v13532_v55 }
 0x165   : > { %vm12598_vm12 = vmpackc.low %vm657_vm10, %vm647_vm9  ;;  %vm686_vm9 = vcmp.eq.s32.totalorder %v14108_v14, %v13582_v60  ;;  %vm696_vm10 = vcmp.eq.s32.totalorder %v14108_v14, %v13580_v59 }
 0x166   : > { %vm12608_vm13 = vmpackc.low %vm696_vm10, %vm686_vm9 }
 0x167   : > { %12589 = vmatpush1.bf16.msk.msra.mxu1 %vm12588_vm15, %v16949_v44  ;;  %vm667_vm15 = vcmp.eq.s32.totalorder %v14097_v13, %v13558_v58 }
 0x168   : > { %12591 = vmatprep.subr.msk.bf16.mxu1 %vm12590_vm0, %v16949_v44  ;;  %vm677_vm0 = vcmp.eq.s32.totalorder %v14097_v13, %v13556_v57  ;;  %v1818_v57 = vld [vmem:[%s16938_s2] sm:$0xff] }
 0x169   : > { %vm12602_vm2 = vmpackc.low %vm677_vm0, %vm667_vm15  ;;  %vm706_vm15 = vcmp.eq.s32.totalorder %v14108_v14, %v13606_v62  ;;  %vm716_vm0 = vcmp.eq.s32.totalorder %v14108_v14, %v13604_v61 }
 0x16a   : > { %vm12612_vm3 = vmpackc.low %vm716_vm0, %vm706_vm15 }
 0x16b   : > { %12593 = vmatpush1.bf16.msk.msra.mxu1 %vm12592_vm5, %v16949_v44  ;;  %vm687_vm5 = vcmp.eq.s32.totalorder %v14097_v13, %v13582_v60 }
 0x16c   : > { %12595 = vmatprep.subr.msk.bf16.mxu1 %vm12594_vm6, %v16949_v44  ;;  %vm697_vm6 = vcmp.eq.s32.totalorder %v14097_v13, %v13580_v59 }
 0x16d   : > { %vm12606_vm8 = vmpackc.low %vm697_vm6, %vm687_vm5  ;;  %vm726_vm5 = vcmp.eq.s32.totalorder %v14108_v14, %v13630_v0  ;;  %vm736_vm6 = vcmp.eq.s32.totalorder %v14108_v14, %v13628_v63 }
 0x16e   : > { %vm12616_vm9 = vmpackc.low %vm736_vm6, %vm726_vm5 }
 0x16f   : > { %12597 = vmatpush1.bf16.msk.msra.mxu1 %vm12596_vm11, %v16949_v44  ;;  %vm707_vm11 = vcmp.eq.s32.totalorder %v14097_v13, %v13606_v62 }
 0x170   : > { %12599 = vmatprep.subr.msk.bf16.mxu1 %vm12598_vm12, %v16949_v44  ;;  %vm717_vm12 = vcmp.eq.s32.totalorder %v14097_v13, %v13604_v61 }
 0x171   : > { %vm12610_vm14 = vmpackc.low %vm717_vm12, %vm707_vm11  ;;  %vm746_vm11 = vcmp.eq.s32.totalorder %v14108_v14, %v13654_v2  ;;  %vm756_vm12 = vcmp.eq.s32.totalorder %v14108_v14, %v13652_v1 }
 0x172   : > { %vm12620_vm15 = vmpackc.low %vm756_vm12, %vm746_vm11 }
 0x173   : > { %12601 = vmatpush1.bf16.msk.msra.mxu1 %vm12600_vm1, %v16949_v44  ;;  %vm727_vm1 = vcmp.eq.s32.totalorder %v14097_v13, %v13630_v0 }
 0x174   : > { %12603 = vmatprep.subr.msk.bf16.mxu1 %vm12602_vm2, %v16949_v44  ;;  %vm737_vm2 = vcmp.eq.s32.totalorder %v14097_v13, %v13628_v63 }
 0x175   : > { %vm12614_vm4 = vmpackc.low %vm737_vm2, %vm727_vm1  ;;  %vm766_vm1 = vcmp.eq.s32.totalorder %v14108_v14, %v13678_v4  ;;  %vm776_vm2 = vcmp.eq.s32.totalorder %v14108_v14, %v13676_v3 }
 0x176   : > { %vm12624_vm5 = vmpackc.low %vm776_vm2, %vm766_vm1  ;;  %vm1865_vm1 = vcmask 1043456   ;;  %vm1861_vm2 = vcmask 31744  }
 0x177   : > { %12605 = vmatpush1.bf16.msk.msra.mxu1 %vm12604_vm7, %v16949_v44  ;;  %vm747_vm7 = vcmp.eq.s32.totalorder %v14097_v13, %v13654_v2 }
 0x178   : > { %12607 = vmatprep.subr.msk.bf16.mxu1 %vm12606_vm8, %v16949_v44  ;;  %vm757_vm8 = vcmp.eq.s32.totalorder %v14097_v13, %v13652_v1 }
 0x179   : > { %vm12618_vm10 = vmpackc.low %vm757_vm8, %vm747_vm7  ;;  %vm786_vm7 = vcmp.eq.s32.totalorder %v14108_v14, %v13702_v6  ;;  %vm796_vm8 = vcmp.eq.s32.totalorder %v14108_v14, %v13700_v5 }
 0x17a   : > { %vm12628_vm11 = vmpackc.low %vm796_vm8, %vm786_vm7  ;;  %vm3883_vm7 = vcmask 736256   ;;  %vm4299_vm8 = vcmask 457728  }
 0x17b   : > { %12609 = vmatpush1.bf16.msk.msra.mxu1 %vm12608_vm13, %v16949_v44  ;;  %vm767_vm13 = vcmp.eq.s32.totalorder %v14097_v13, %v13678_v4 }
 0x17c   : > { %12611 = vmatprep.subr.msk.bf16.mxu1 %vm12610_vm14, %v16949_v44  ;;  %vm777_vm14 = vcmp.eq.s32.totalorder %v14097_v13, %v13676_v3  ;;  %v5525_v3 = vld [vmem:[%s16939_s3] sm:$0xff] }
 0x17d   : > { %vm12622_vm0 = vmpackc.low %vm777_vm14, %vm767_vm13  ;;  %vm806_vm13 = vcmp.eq.s32.totalorder %v14108_v14, %v13726_v8  ;;  %vm816_vm14 = vcmp.eq.s32.totalorder %v14108_v14, %v13724_v7 }
 0x17f   : > { %12613 = vmatpush1.bf16.msk.msra.mxu1 %vm12612_vm3, %v16949_v44  ;;  %vm787_vm3 = vcmp.eq.s32.totalorder %v14097_v13, %v13702_v6 }
 0x180   : > { %12615 = vmatprep.subr.msk.bf16.mxu1 %vm12614_vm4, %v16949_v44  ;;  %vm797_vm4 = vcmp.eq.s32.totalorder %v14097_v13, %v13700_v5 }
 0x181   : > { %vm12626_vm6 = vmpackc.low %vm797_vm4, %vm787_vm3  ;;  %vm13174_vm3 = vmmov 0   ;;  %vm2635_vm4 = vcmask 1031168  }
 0x182   : > { %12320 = vmatprep.mubr.msk.f32.mxu0 %vm13174_vm3, %v13173_v22 }
 0x183   : > { %12617 = vmatpush1.bf16.msk.msra.mxu1 %vm12616_vm9, %v16949_v44  ;;  %vm807_vm9 = vcmp.eq.s32.totalorder %v14097_v13, %v13726_v8  ;;  %v11476_v8 = vld [vmem:[%s16938_s2 + $0x10] sm:$0xff] }
 0x184   : > { %12619 = vmatprep.subr.msk.bf16.mxu1 %vm12618_vm10, %v16949_v44  ;;  %vm817_vm10 = vcmp.eq.s32.totalorder %v14097_v13, %v13724_v7 }
 0x185   : > { %vm12630_vm12 = vmpackc.low %vm817_vm10, %vm807_vm9  ;;  %vm4715_vm9 = vcmask 449536   ;;  %vm5131_vm10 = vcmask 441344  }
 0x187   : > { %12621 = vmatpush1.bf16.msk.msra.mxu1 %vm12620_vm15, %v16949_v44  ;;  %vm12632_vm15 = vmpackc.low %vm816_vm14, %vm806_vm13  ;;  %vm5690_vm13 = vcmask 64512   ;;  %vm8074_vm14 = vcmask 760832  }
 0x188   : > { %12623 = vmatprep.subr.msk.bf16.mxu1 %vm12622_vm0, %v16949_v44  ;;  %vm1851_vm0 = vcmask 1039360  }
 0x18b   : > { %12625 = vmatpush1.bf16.msk.msra.mxu1 %vm12624_vm5, %v16949_v44  ;;  %vm3051_vm5 = vcmask 752640  }
 0x18c   : > { %12627 = vmatprep.subr.msk.bf16.mxu1 %vm12626_vm6, %v16949_v44  ;;  %vm3467_vm6 = vcmask 744448  }
 0x18f   : > { %12629 = vmatpush1.bf16.msk.msra.mxu1 %vm12628_vm11, %v16949_v44  ;;  %vm5617_vm11 = vcmask 883712  }
 0x190   : > { %12631 = vmatprep.subr.msk.bf16.mxu1 %vm12630_vm12, %v16949_v44  ;;  %5618 = vst.msk [vmem:[#allocation2 + $0x50] sm:$0xff] %vm5617_vm11, %v13173_v22  ;;  %vm6873_vm12 = vcmask 7168  }
 0x193   : > { %12633 = vmatpush1.bf16.msk.msra.mxu1 %vm12632_vm15, %v16949_v44  ;;  %vm5671_vm15 = vcmask 293888  }
 0x196   : > { %1741 = vmatmul.mubr.f32.vlgmr.msra.gmra.mrb[6].mxu1 %v14123_v15 }
 0x197   : > { %1948 = vmatprep.mubr.f32.mxu1 %v13173_v22 }
 0x1a9   : > { %v14275_v16 = vpop.f32.mrb[0].mxu1 }
 0x1aa   : > { %1831 = vrot.lane.b32.xlu0 %v14275_v16, %s13172_s29  ;;  %v14279_v17 = vpop.f32.mrb[1].mxu1 }
 0x1ab   : > { %v14289_v20 = vpop.f32.mrb[0].mxu0 }
 0x1ac   : > { %v14291_v21 = vpop.f32.mrb[1].mxu0 }
 0x1ae   : > { %1833 = vrot.lane.b32.xlu0 %v14279_v17, %s13172_s29 }
 0x1e9   : > { %v14283_v18 = vpop.f32.mrb[2].mxu1 }
 0x1ea   : > { %1835 = vrot.lane.b32.xlu1 %v14283_v18, %s13172_s29  ;;  %v14287_v19 = vpop.f32.mrb[3].mxu1 }
 0x1ee   : > { %1837 = vrot.lane.b32.xlu1 %v14287_v19, %s13172_s29 }
 0x21c   : > { %v1832_v25 = vpop.permute.xlu0 %1831 }
 0x220   : > { %v1834_v26 = vpop.permute.xlu0 %1833 }
 0x221   : > { %v1852_v30 = vsel %vm1851_vm0, %v1832_v25, %v1834_v26 }
 0x229   : > { %v14298_v23 = vpop.f32.mrb[4].mxu1 }
 0x22a   : > { %1839 = vrot.lane.b32.xlu0 %v14298_v23, %s13172_s29  ;;  %v14302_v24 = vpop.f32.mrb[5].mxu1 }
 0x22b   : > { %1841 = vrot.lane.b32.xlu1 %v14302_v24, %s13172_s29 }
 0x25c   : > { %v1836_v27 = vpop.permute.xlu1 %1835 }
 0x25d   : > { %v1853_v28 = vsel %vm1851_vm0, %v1834_v26, %v1836_v27 }
 0x25e   : > { %11448 = vmatprep.subr.msk.mxu1 %vm1865_vm1, %v1853_v28 }
 0x25f   : > { %11449 = vmatpush1.msk.msra.mxu1 %vm1865_vm1, %v1852_v30 }
 0x260   : > { %11450 = vmatmul.mubr.msk.f32.vlgmr.msra.gmra.mrb[8].mxu1 %vm1861_vm2, %v14310_v29  ;;  %v1838_v33 = vpop.permute.xlu1 %1837 }
 0x261   : > { %2019 = vmatprep.mubr.f32.mxu1 %v13173_v22  ;;  %v1854_v40 = vsel %vm1851_vm0, %v1836_v27, %v1838_v33 }
 0x269   : > { %v14320_v31 = vpop.f32.mrb[6].mxu1 }
 0x26a   : > { %1843 = vrot.lane.b32.xlu0 %v14320_v31, %s13172_s29  ;;  %v14324_v32 = vpop.f32.mrb[7].mxu1 }
 0x26b   : > { %1845 = vrot.lane.b32.xlu1 %v14324_v32, %s13172_s29 }
 0x26e   : > { %1847 = vrot.lane.b32.xlu0 %v14289_v20, %s13172_s29 }
 0x26f   : > { %1849 = vrot.lane.b32.xlu1 %v14291_v21, %s13172_s29 }
 0x272   : > { %2617 = vrot.lane.b32.xlu0 %v14279_v17, %s13175_s12 }
 0x273   : > { %2619 = vrot.lane.b32.xlu1 %v14283_v18, %s13175_s12 }
 0x276   : > { %2615 = vrot.lane.b32.xlu0 %v14275_v16, %s13175_s12 }
 0x277   : > { %2621 = vrot.lane.b32.xlu1 %v14287_v19, %s13175_s12 }
 0x27a   : > { %2623 = vrot.lane.b32.xlu0 %v14298_v23, %s13175_s12 }
 0x27b   : > { %2625 = vrot.lane.b32.xlu1 %v14302_v24, %s13175_s12 }
 0x27e   : > { %2627 = vrot.lane.b32.xlu0 %v14320_v31, %s13175_s12 }
 0x27f   : > { %2633 = vrot.lane.b32.xlu1 %v14291_v21, %s13175_s12 }
 0x282   : > { %2631 = vrot.lane.b32.xlu0 %v14289_v20, %s13175_s12 }
 0x283   : > { %3035 = vrot.lane.b32.xlu1 %v14283_v18, %s13176_s15 }
 0x286   : > { %3033 = vrot.lane.b32.xlu0 %v14279_v17, %s13176_s15 }
 0x287   : > { %3037 = vrot.lane.b32.xlu1 %v14287_v19, %s13176_s15 }
 0x28a   : > { %3031 = vrot.lane.b32.xlu0 %v14275_v16, %s13176_s15 }
 0x28b   : > { %2629 = vrot.lane.b32.xlu1 %v14324_v32, %s13175_s12  ;;  %s13183_s12 = smov 93  }
 0x28e   : > { %3039 = vrot.lane.b32.xlu0 %v14298_v23, %s13176_s15 }
 0x28f   : > { %3041 = vrot.lane.b32.xlu1 %v14302_v24, %s13176_s15 }
 0x292   : > { %3043 = vrot.lane.b32.xlu0 %v14320_v31, %s13176_s15 }
 0x293   : > { %3049 = vrot.lane.b32.xlu1 %v14291_v21, %s13176_s15 }
 0x296   : > { %3047 = vrot.lane.b32.xlu0 %v14289_v20, %s13176_s15 }
 0x297   : > { %3451 = vrot.lane.b32.xlu1 %v14283_v18, %s13177_s16 }
 0x29a   : > { %3449 = vrot.lane.b32.xlu0 %v14279_v17, %s13177_s16 }
 0x29b   : > { %3453 = vrot.lane.b32.xlu1 %v14287_v19, %s13177_s16 }
 0x29c   : > { %v1840_v37 = vpop.permute.xlu0 %1839 }
 0x29d   : > { %v1855_v38 = vsel %vm1851_vm0, %v1838_v33, %v1840_v37  ;;  %v1842_v41 = vpop.permute.xlu1 %1841 }
 0x29e   : > { %11451 = vmatprep.subr.msk.mxu1 %vm1865_vm1, %v1855_v38  ;;  %3447 = vrot.lane.b32.xlu0 %v14275_v16, %s13177_s16  ;;  %v1856_v47 = vsel %vm1851_vm0, %v1840_v37, %v1842_v41  ;;  %v11491_v38 = vld [vmem:[%s16938_s2 + $0x18] sm:$0xff] }
 0x29f   : > { %11452 = vmatpush1.msk.msra.mxu1 %vm1865_vm1, %v1854_v40  ;;  %3045 = vrot.lane.b32.xlu1 %v14324_v32, %s13176_s15 }
 0x2a0   : > { %11453 = vmatmul.mubr.msk.f32.vlgmr.msra.gmra.mrb[10].mxu1 %vm1861_vm2, %v14310_v29 }
 0x2a1   : > { %2090 = vmatprep.mubr.f32.mxu1 %v13173_v22 }
 0x2a2   : > { %3455 = vrot.lane.b32.xlu0 %v14298_v23, %s13177_s16 }
 0x2a3   : > { %3457 = vrot.lane.b32.xlu1 %v14302_v24, %s13177_s16 }
 0x2a6   : > { %3459 = vrot.lane.b32.xlu0 %v14320_v31, %s13177_s16 }
 0x2a7   : > { %3465 = vrot.lane.b32.xlu1 %v14291_v21, %s13177_s16 }
 0x2aa   : > { %3463 = vrot.lane.b32.xlu0 %v14289_v20, %s13177_s16 }
 0x2ab   : > { %3867 = vrot.lane.b32.xlu1 %v14283_v18, %s13178_s17 }
 0x2ae   : > { %3865 = vrot.lane.b32.xlu0 %v14279_v17, %s13178_s17 }
 0x2af   : > { %3869 = vrot.lane.b32.xlu1 %v14287_v19, %s13178_s17 }
 0x2b2   : > { %3863 = vrot.lane.b32.xlu0 %v14275_v16, %s13178_s17 }
 0x2b3   : > { %3461 = vrot.lane.b32.xlu1 %v14324_v32, %s13177_s16 }
 0x2b6   : > { %3871 = vrot.lane.b32.xlu0 %v14298_v23, %s13178_s17 }
 0x2b7   : > { %3873 = vrot.lane.b32.xlu1 %v14302_v24, %s13178_s17 }
 0x2ba   : > { %3875 = vrot.lane.b32.xlu0 %v14320_v31, %s13178_s17 }
 0x2bb   : > { %3881 = vrot.lane.b32.xlu1 %v14291_v21, %s13178_s17 }
 0x2be   : > { %3879 = vrot.lane.b32.xlu0 %v14289_v20, %s13178_s17 }
 0x2bf   : > { %4283 = vrot.lane.b32.xlu1 %v14283_v18, %s13179_s18 }
 0x2c2   : > { %4281 = vrot.lane.b32.xlu0 %v14279_v17, %s13179_s18 }
 0x2c3   : > { %4285 = vrot.lane.b32.xlu1 %v14287_v19, %s13179_s18 }
 0x2c6   : > { %4279 = vrot.lane.b32.xlu0 %v14275_v16, %s13179_s18 }
 0x2c7   : > { %3877 = vrot.lane.b32.xlu1 %v14324_v32, %s13178_s17  ;;  %s13184_s17 = smov 36  }
 0x2ca   : > { %4287 = vrot.lane.b32.xlu0 %v14298_v23, %s13179_s18 }
 0x2cb   : > { %4289 = vrot.lane.b32.xlu1 %v14302_v24, %s13179_s18 }
 0x2ce   : > { %4291 = vrot.lane.b32.xlu0 %v14320_v31, %s13179_s18 }
 0x2cf   : > { %4697 = vrot.lane.b32.xlu1 %v14279_v17, %s13180_s19 }
 0x2d2   : > { %4295 = vrot.lane.b32.xlu0 %v14289_v20, %s13179_s18 }
 0x2d3   : > { %4695 = vrot.lane.b32.xlu1 %v14275_v16, %s13180_s19 }
 0x2d6   : > { %4699 = vrot.lane.b32.xlu0 %v14283_v18, %s13180_s19 }
 0x2d7   : > { %4703 = vrot.lane.b32.xlu1 %v14298_v23, %s13180_s19 }
 0x2da   : > { %4701 = vrot.lane.b32.xlu0 %v14287_v19, %s13180_s19 }
 0x2db   : > { %4293 = vrot.lane.b32.xlu1 %v14324_v32, %s13179_s18 }
 0x2dc   : > { %v1844_v42 = vpop.permute.xlu0 %1843 }
 0x2dd   : > { %v1846_v45 = vpop.permute.xlu1 %1845  ;;  %v1857_v46 = vsel %vm1851_vm0, %v1842_v41, %v1844_v42 }
 0x2de   : > { %4705 = vrot.lane.b32.xlu0 %v14302_v24, %s13180_s19  ;;  %11454 = vmatprep.subr.msk.mxu1 %vm1865_vm1, %v1857_v46  ;;  %v1858_v51 = vsel %vm1851_vm0, %v1844_v42, %v1846_v45 }
 0x2df   : > { %11455 = vmatpush1.msk.msra.mxu1 %vm1865_vm1, %v1856_v47  ;;  %4707 = vrot.lane.b32.xlu1 %v14320_v31, %s13180_s19 }
 0x2e0   : > { %11456 = vmatmul.mubr.msk.f32.vlgmr.msra.gmra.mrb[12].mxu1 %vm1861_vm2, %v14310_v29  ;;  %v1848_v48 = vpop.permute.xlu0 %1847 }
 0x2e1   : > { %v1850_v49 = vpop.permute.xlu1 %1849  ;;  %v1859_v50 = vsel %vm1851_vm0, %v1846_v45, %v1848_v48  ;;  %2161 = vmatprep.mubr.f32.mxu1 %v13173_v22 }
 0x2e2   : > { %5113 = vrot.lane.b32.xlu0 %v14279_v17, %s13181_s20  ;;  %11457 = vmatprep.subr.msk.mxu1 %vm1865_vm1, %v1859_v50  ;;  %v1860_v52 = vsel %vm1851_vm0, %v1848_v48, %v1850_v49 }
 0x2e3   : > { %4711 = vrot.lane.b32.xlu1 %v14289_v20, %s13180_s19  ;;  %11458 = vmatpush1.msk.msra.mxu1 %vm1865_vm1, %v1858_v51 }
 0x2e4   : > { %v2618_v53 = vpop.permute.xlu0 %2617  ;;  %11459 = vmatmul.mubr.msk.f32.vlgmr.msra.gmra.mrb[14].mxu1 %vm1861_vm2, %v14310_v29  ;;  %12288 = vmatprep.subr.mxu1 %v13173_v22 }
 0x2e5   : > { %12289 = vmatpush3.msk.msra.mxu1 %vm1865_vm1, %v1860_v52  ;;  %v2620_v54 = vpop.permute.xlu1 %2619  ;;  %12290 = vmatprep.mubr.msk.f32.mxu1 %vm13174_vm3, %v13173_v22 }
 0x2e6   : > { %5111 = vrot.lane.b32.xlu0 %v14275_v16, %s13181_s20  ;;  %11462 = vmatprep.subr.msk.mxu1 %vm1865_vm1, %v14279_v17  ;;  %v2637_v1 = vsel %vm2635_vm4, %v2618_v53, %v2620_v54 }
 0x2e7   : > { %5115 = vrot.lane.b32.xlu1 %v14283_v18, %s13181_s20 }
 0x2e8   : > { %v2616_v55 = vpop.permute.xlu0 %2615  ;;  %12291 = vmatmul.mubr.msk.f32.vlgmr.msra.gmra.mrb[16].mxu1 %vm1861_vm2, %v14310_v29 }
 0x2e9   : > { %11463 = vmatpush1.msk.msra.mxu1 %vm1865_vm1, %v14275_v16  ;;  %v2622_v56 = vpop.permute.xlu1 %2621  ;;  %2323 = vmatprep.mubr.f32.mxu1 %v13173_v22  ;;  %v2636_v4 = vsel %vm2635_vm4, %v2616_v55, %v2618_v53 }
 0x2ea   : > { %11465 = vmatprep.subr.msk.mxu1 %vm1865_vm1, %v14287_v19  ;;  %4709 = vrot.lane.b32.xlu0 %v14324_v32, %s13180_s19  ;;  %v2638_v15 = vsel %vm2635_vm4, %v2620_v54, %v2622_v56 }
 0x2eb   : > { %4297 = vrot.lane.b32.xlu1 %v14291_v21, %s13179_s18  ;;  %s13185_s18 = smov 37  }
 0x2ec   : > { %v2624_v58 = vpop.permute.xlu0 %2623  ;;  %11464 = vmatmul.mubr.msk.f32.vlgmr.msra.gmra.mrb[8].mxu1 %vm1861_vm2, %v1818_v57 }
 0x2ed   : > { %11466 = vmatpush1.msk.msra.mxu1 %vm1865_vm1, %v14283_v18  ;;  %v2626_v59 = vpop.permute.xlu1 %2625  ;;  %2394 = vmatprep.mubr.f32.mxu1 %v13173_v22  ;;  %v2639_v6 = vsel %vm2635_vm4, %v2622_v56, %v2624_v58 }
 0x2ee   : > { %11468 = vmatprep.subr.msk.mxu1 %vm1865_vm1, %v14302_v24  ;;  %5117 = vrot.lane.b32.xlu0 %v14287_v19, %s13181_s20  ;;  %v2640_v19 = vsel %vm2635_vm4, %v2624_v58, %v2626_v59 }
 0x2ef   : > { %5119 = vrot.lane.b32.xlu1 %v14298_v23, %s13181_s20 }
 0x2f0   : > { %v2628_v60 = vpop.permute.xlu0 %2627  ;;  %11467 = vmatmul.mubr.msk.f32.vlgmr.msra.gmra.mrb[10].mxu1 %vm1861_vm2, %v1818_v57 }
 0x2f1   : > { %11469 = vmatpush1.msk.msra.mxu1 %vm1865_vm1, %v14298_v23  ;;  %v2634_v61 = vpop.permute.xlu1 %2633  ;;  %2465 = vmatprep.mubr.f32.mxu1 %v13173_v22  ;;  %v2641_v17 = vsel %vm2635_vm4, %v2626_v59, %v2628_v60 }
 0x2f2   : > { %11471 = vmatprep.subr.msk.mxu1 %vm1865_vm1, %v14324_v32  ;;  %4713 = vrot.lane.b32.xlu0 %v14291_v21, %s13180_s19  ;;  %s13186_s19 = smov 35  }
 0x2f3   : > { %5121 = vrot.lane.b32.xlu1 %v14302_v24, %s13181_s20 }
 0x2f4   : > { %v2632_v62 = vpop.permute.xlu0 %2631  ;;  %11470 = vmatmul.mubr.msk.f32.vlgmr.msra.gmra.mrb[12].mxu1 %vm1861_vm2, %v1818_v57 }
 0x2f5   : > { %11472 = vmatpush1.msk.msra.mxu1 %vm1865_vm1, %v14320_v31  ;;  %v14496_v63 = vpop.permute.xlu1 %3035  ;;  %2536 = vmatprep.mubr.f32.mxu1 %v13173_v22  ;;  %v2644_v27 = vsel %vm2635_vm4, %v2632_v62, %v2634_v61  ;;  %v11506_v61 = vld [vmem:[%s16938_s2 + $0x20] sm:$0xff] }
 0x2f6   : > { %5123 = vrot.lane.b32.xlu0 %v14320_v31, %s13181_s20  ;;  %12293 = vmatprep.subr.mxu1 %v13173_v22 }
 0x2f7   : > { %5125 = vrot.lane.b32.xlu1 %v14324_v32, %s13181_s20 }
 0x2f8   : > { %v3034_v0 = vpop.permute.xlu0 %3033  ;;  %11473 = vmatmul.mubr.msk.f32.vlgmr.msra.gmra.mrb[14].mxu1 %vm1861_vm2, %v1818_v57 }
 0x2f9   : > { %12294 = vmatpush3.msk.msra.mxu1 %vm1865_vm1, %v14289_v20  ;;  %v3038_v2 = vpop.permute.xlu1 %3037  ;;  %12295 = vmatprep.mubr.msk.f32.mxu1 %vm13174_vm3, %v13173_v22  ;;  %v3053_v29 = vsel %vm3051_vm5, %v3034_v0, %v14496_v63 }
 0x2fa   : > { %11477 = vmatprep.subr.msk.mxu1 %vm1865_vm1, %v2637_v1  ;;  %5127 = vrot.lane.b32.xlu0 %v14289_v20, %s13181_s20  ;;  %v3054_v40 = vsel %vm3051_vm5, %v14496_v63, %v3038_v2 }
 0x2fb   : > { %5129 = vrot.lane.b32.xlu1 %v14291_v21, %s13181_s20 }
 0x2fc   : > { %v3032_v5 = vpop.permute.xlu0 %3031  ;;  %12296 = vmatmul.mubr.msk.f32.vlgmr.msra.gmra.mrb[18].mxu1 %vm1861_vm2, %v1818_v57 }
 0x2fd   : > { %11478 = vmatpush1.msk.msra.mxu1 %vm1865_vm1, %v2636_v4  ;;  %v2630_v7 = vpop.permute.xlu1 %2629  ;;  %2730 = vmatprep.mubr.f32.mxu1 %v13173_v22  ;;  %v3052_v31 = vsel %vm3051_vm5, %v3032_v5, %v3034_v0 }
 0x2fe   : > { %11480 = vmatprep.subr.msk.mxu1 %vm1865_vm1, %v2639_v6  ;;  %5528 = vperm.xlu0 %13156, %v5525_v3   ;;  %v2643_v21 = vsel %vm2635_vm4, %v2630_v7, %v2632_v62  ;;  %v2642_v24 = vsel %vm2635_vm4, %v2628_v60, %v2630_v7 }
 0x300   : > { %v3040_v16 = vpop.permute.xlu0 %3039  ;;  %11479 = vmatmul.mubr.msk.f32.vlgmr.msra.gmra.mrb[8].mxu1 %vm1861_vm2, %v11476_v8 }
 0x301   : > { %11481 = vmatpush1.msk.msra.mxu1 %vm1865_vm1, %v2638_v15  ;;  %v3042_v18 = vpop.permute.xlu1 %3041  ;;  %2801 = vmatprep.mubr.f32.mxu1 %v13173_v22  ;;  %v3055_v33 = vsel %vm3051_vm5, %v3038_v2, %v3040_v16 }
 0x302   : > { %11483 = vmatprep.subr.msk.mxu1 %vm1865_vm1, %v2641_v17  ;;  %v3056_v46 = vsel %vm3051_vm5, %v3040_v16, %v3042_v18 }
 0x304   : > { %v3044_v20 = vpop.permute.xlu0 %3043  ;;  %11482 = vmatmul.mubr.msk.f32.vlgmr.msra.gmra.mrb[10].mxu1 %vm1861_vm2, %v11476_v8 }
 0x305   : > { %11484 = vmatpush1.msk.msra.mxu1 %vm1865_vm1, %v2640_v19  ;;  %v3050_v23 = vpop.permute.xlu1 %3049  ;;  %2872 = vmatprep.mubr.f32.mxu1 %v13173_v22  ;;  %v3057_v42 = vsel %vm3051_vm5, %v3042_v18, %v3044_v20 }
 0x306   : > { %11486 = vmatprep.subr.msk.mxu1 %vm1865_vm1, %v2643_v21 }
 0x308   : > { %v3048_v25 = vpop.permute.xlu0 %3047  ;;  %11485 = vmatmul.mubr.msk.f32.vlgmr.msra.gmra.mrb[12].mxu1 %vm1861_vm2, %v11476_v8 }
 0x309   : > { %11487 = vmatpush1.msk.msra.mxu1 %vm1865_vm1, %v2642_v24  ;;  %v14542_v26 = vpop.permute.xlu1 %3451  ;;  %2943 = vmatprep.mubr.f32.mxu1 %v13173_v22  ;;  %v3060_v53 = vsel %vm3051_vm5, %v3048_v25, %v3050_v23  ;;  %v11521_v24 = vld [vmem:[%s16938_s2 + $0x28] sm:$0xff] }
 0x30a   : > { %12298 = vmatprep.subr.mxu1 %v13173_v22 }
 0x30c   : > { %v3450_v28 = vpop.permute.xlu0 %3449  ;;  %11488 = vmatmul.mubr.msk.f32.vlgmr.msra.gmra.mrb[14].mxu1 %vm1861_vm2, %v11476_v8 }
 0x30d   : > { %12299 = vmatpush3.msk.msra.mxu1 %vm1865_vm1, %v2644_v27  ;;  %v3454_v30 = vpop.permute.xlu1 %3453  ;;  %12300 = vmatprep.mubr.msk.f32.mxu1 %vm13174_vm3, %v13173_v22  ;;  %v3469_v55 = vsel %vm3467_vm6, %v3450_v28, %v14542_v26 }
 0x30e   : > { %11492 = vmatprep.subr.msk.mxu1 %vm1865_vm1, %v3053_v29  ;;  %v3470_v62 = vsel %vm3467_vm6, %v14542_v26, %v3454_v30 }
 0x310   : > { %v3448_v32 = vpop.permute.xlu0 %3447  ;;  %12301 = vmatmul.mubr.msk.f32.vlgmr.msra.gmra.mrb[20].mxu1 %vm1861_vm2, %v11476_v8 }
 0x311   : > { %11493 = vmatpush1.msk.msra.mxu1 %vm1865_vm1, %v3052_v31  ;;  %v3046_v37 = vpop.permute.xlu1 %3045  ;;  %3146 = vmatprep.mubr.f32.mxu1 %v13173_v22  ;;  %v3468_v57 = vsel %vm3467_vm6, %v3448_v32, %v3450_v28 }
 0x312   : > { %11495 = vmatprep.subr.msk.mxu1 %vm1865_vm1, %v3055_v33  ;;  %v3059_v48 = vsel %vm3051_vm5, %v3046_v37, %v3048_v25  ;;  %v3058_v50 = vsel %vm3051_vm5, %v3044_v20, %v3046_v37 }
 0x314   : > { %v3456_v41 = vpop.permute.xlu0 %3455  ;;  %11494 = vmatmul.mubr.msk.f32.vlgmr.msra.gmra.mrb[8].mxu1 %vm1861_vm2, %v11491_v38 }
 0x315   : > { %11496 = vmatpush1.msk.msra.mxu1 %vm1865_vm1, %v3054_v40  ;;  %v3458_v45 = vpop.permute.xlu1 %3457  ;;  %3217 = vmatprep.mubr.f32.mxu1 %v13173_v22  ;;  %v3471_v59 = vsel %vm3467_vm6, %v3454_v30, %v3456_v41 }
 0x316   : > { %11498 = vmatprep.subr.msk.mxu1 %vm1865_vm1, %v3057_v42  ;;  %v3472_v2 = vsel %vm3467_vm6, %v3456_v41, %v3458_v45 }
 0x318   : > { %v3460_v47 = vpop.permute.xlu0 %3459  ;;  %11497 = vmatmul.mubr.msk.f32.vlgmr.msra.gmra.mrb[10].mxu1 %vm1861_vm2, %v11491_v38 }
 0x319   : > { %11499 = vmatpush1.msk.msra.mxu1 %vm1865_vm1, %v3056_v46  ;;  %v3466_v49 = vpop.permute.xlu1 %3465  ;;  %3288 = vmatprep.mubr.f32.mxu1 %v13173_v22  ;;  %v3473_v0 = vsel %vm3467_vm6, %v3458_v45, %v3460_v47 }
 0x31a   : > { %11501 = vmatprep.subr.msk.mxu1 %vm1865_vm1, %v3059_v48 }
 0x31c   : > { %v3464_v51 = vpop.permute.xlu0 %3463  ;;  %11500 = vmatmul.mubr.msk.f32.vlgmr.msra.gmra.mrb[12].mxu1 %vm1861_vm2, %v11491_v38 }
 0x31d   : > { %11502 = vmatpush1.msk.msra.mxu1 %vm1865_vm1, %v3058_v50  ;;  %v14579_v52 = vpop.permute.xlu1 %3867  ;;  %3359 = vmatprep.mubr.f32.mxu1 %v13173_v22  ;;  %v3476_v15 = vsel %vm3467_vm6, %v3464_v51, %v3466_v49  ;;  %v11536_v50 = vld [vmem:[%s16938_s2 + $0x30] sm:$0xff] }
 0x31e   : > { %12303 = vmatprep.subr.mxu1 %v13173_v22 }
 0x320   : > { %v3866_v54 = vpop.permute.xlu0 %3865  ;;  %11503 = vmatmul.mubr.msk.f32.vlgmr.msra.gmra.mrb[14].mxu1 %vm1861_vm2, %v11491_v38 }
 0x321   : > { %12304 = vmatpush3.msk.msra.mxu1 %vm1865_vm1, %v3060_v53  ;;  %v3870_v56 = vpop.permute.xlu1 %3869  ;;  %12305 = vmatprep.mubr.msk.f32.mxu1 %vm13174_vm3, %v13173_v22  ;;  %v3885_v17 = vsel %vm3883_vm7, %v3866_v54, %v14579_v52 }
 0x322   : > { %11507 = vmatprep.subr.msk.mxu1 %vm1865_vm1, %v3469_v55  ;;  %v3886_v25 = vsel %vm3883_vm7, %v14579_v52, %v3870_v56 }
 0x324   : > { %v3864_v58 = vpop.permute.xlu0 %3863  ;;  %12306 = vmatmul.mubr.msk.f32.vlgmr.msra.gmra.mrb[22].mxu1 %vm1861_vm2, %v11491_v38 }
 0x325   : > { %11508 = vmatpush1.msk.msra.mxu1 %vm1865_vm1, %v3468_v57  ;;  %v3462_v60 = vpop.permute.xlu1 %3461  ;;  %3562 = vmatprep.mubr.f32.mxu1 %v13173_v22  ;;  %v3884_v19 = vsel %vm3883_vm7, %v3864_v58, %v3866_v54 }
 0x326   : > { %11510 = vmatprep.subr.msk.mxu1 %vm1865_vm1, %v3471_v59  ;;  %v3475_v4 = vsel %vm3467_vm6, %v3462_v60, %v3464_v51  ;;  %v3474_v6 = vsel %vm3467_vm6, %v3460_v47, %v3462_v60 }
 0x328   : > { %v3872_v63 = vpop.permute.xlu0 %3871  ;;  %11509 = vmatmul.mubr.msk.f32.vlgmr.msra.gmra.mrb[8].mxu1 %vm1861_vm2, %v11506_v61 }
 0x329   : > { %11511 = vmatpush1.msk.msra.mxu1 %vm1865_vm1, %v3470_v62  ;;  %v3874_v1 = vpop.permute.xlu1 %3873  ;;  %3633 = vmatprep.mubr.f32.mxu1 %v13173_v22  ;;  %v3887_v21 = vsel %vm3883_vm7, %v3870_v56, %v3872_v63 }
 0x32a   : > { %11513 = vmatprep.subr.msk.mxu1 %vm1865_vm1, %v3473_v0  ;;  %v3888_v29 = vsel %vm3883_vm7, %v3872_v63, %v3874_v1 }
 0x32c   : > { %v3876_v3 = vpop.permute.xlu0 %3875  ;;  %11512 = vmatmul.mubr.msk.f32.vlgmr.msra.gmra.mrb[10].mxu1 %vm1861_vm2, %v11506_v61 }
 0x32d   : > { %11514 = vmatpush1.msk.msra.mxu1 %vm1865_vm1, %v3472_v2  ;;  %v3882_v5 = vpop.permute.xlu1 %3881  ;;  %3704 = vmatprep.mubr.f32.mxu1 %v13173_v22  ;;  %v3889_v27 = vsel %vm3883_vm7, %v3874_v1, %v3876_v3 }
 0x32e   : > { %11516 = vmatprep.subr.msk.mxu1 %vm1865_vm1, %v3475_v4 }
 0x330   : > { %v3880_v7 = vpop.permute.xlu0 %3879  ;;  %11515 = vmatmul.mubr.msk.f32.vlgmr.msra.gmra.mrb[12].mxu1 %vm1861_vm2, %v11506_v61 }
 0x331   : > { %11517 = vmatpush1.msk.msra.mxu1 %vm1865_vm1, %v3474_v6  ;;  %v14616_v8 = vpop.permute.xlu1 %4283  ;;  %3775 = vmatprep.mubr.f32.mxu1 %v13173_v22  ;;  %v3892_v40 = vsel %vm3883_vm7, %v3880_v7, %v3882_v5 }
 0x332   : > { %12308 = vmatprep.subr.mxu1 %v13173_v22 }
 0x334   : > { %v4282_v16 = vpop.permute.xlu0 %4281  ;;  %11518 = vmatmul.mubr.msk.f32.vlgmr.msra.gmra.mrb[14].mxu1 %vm1861_vm2, %v11506_v61 }
 0x335   : > { %12309 = vmatpush3.msk.msra.mxu1 %vm1865_vm1, %v3476_v15  ;;  %v4286_v18 = vpop.permute.xlu1 %4285  ;;  %12310 = vmatprep.mubr.msk.f32.mxu1 %vm13174_vm3, %v13173_v22  ;;  %v4301_v42 = vsel %vm4299_vm8, %v4282_v16, %v14616_v8 }
 0x336   : > { %11522 = vmatprep.subr.msk.mxu1 %vm1865_vm1, %v3885_v17  ;;  %v4302_v51 = vsel %vm4299_vm8, %v14616_v8, %v4286_v18 }
 0x338   : > { %v4280_v20 = vpop.permute.xlu0 %4279  ;;  %12311 = vmatmul.mubr.msk.f32.vlgmr.msra.gmra.mrb[24].mxu1 %vm1861_vm2, %v11506_v61 }
 0x339   : > { %11523 = vmatpush1.msk.msra.mxu1 %vm1865_vm1, %v3884_v19  ;;  %v3878_v23 = vpop.permute.xlu1 %3877  ;;  %3978 = vmatprep.mubr.f32.mxu1 %v13173_v22  ;;  %v4300_v46 = vsel %vm4299_vm8, %v4280_v20, %v4282_v16 }
 0x33a   : > { %11525 = vmatprep.subr.msk.mxu1 %vm1865_vm1, %v3887_v21  ;;  %v3891_v31 = vsel %vm3883_vm7, %v3878_v23, %v3880_v7  ;;  %v3890_v33 = vsel %vm3883_vm7, %v3876_v3, %v3878_v23  ;;  %v11551_v3 = vld [vmem:[%s16938_s2 + $0x38] sm:$0xff] }
 0x33c   : > { %v4288_v26 = vpop.permute.xlu0 %4287  ;;  %11524 = vmatmul.mubr.msk.f32.vlgmr.msra.gmra.mrb[8].mxu1 %vm1861_vm2, %v11521_v24 }
 0x33d   : > { %11526 = vmatpush1.msk.msra.mxu1 %vm1865_vm1, %v3886_v25  ;;  %v4290_v28 = vpop.permute.xlu1 %4289  ;;  %4049 = vmatprep.mubr.f32.mxu1 %v13173_v22  ;;  %v4303_v48 = vsel %vm4299_vm8, %v4286_v18, %v4288_v26 }
 0x33e   : > { %11528 = vmatprep.subr.msk.mxu1 %vm1865_vm1, %v3889_v27  ;;  %v4304_v55 = vsel %vm4299_vm8, %v4288_v26, %v4290_v28 }
 0x340   : > { %v4292_v30 = vpop.permute.xlu0 %4291  ;;  %11527 = vmatmul.mubr.msk.f32.vlgmr.msra.gmra.mrb[10].mxu1 %vm1861_vm2, %v11521_v24 }
 0x341   : > { %11529 = vmatpush1.msk.msra.mxu1 %vm1865_vm1, %v3888_v29  ;;  %v4698_v32 = vpop.permute.xlu1 %4697  ;;  %4120 = vmatprep.mubr.f32.mxu1 %v13173_v22  ;;  %v4305_v53 = vsel %vm4299_vm8, %v4290_v28, %v4292_v30  ;;  %v11566_v29 = vld [vmem:[%s16938_s2 + $0x40] sm:$0xff] }
 0x342   : > { %11531 = vmatprep.subr.msk.mxu1 %vm1865_vm1, %v3891_v31 }
 0x344   : > { %v4296_v37 = vpop.permute.xlu0 %4295  ;;  %11530 = vmatmul.mubr.msk.f32.vlgmr.msra.gmra.mrb[12].mxu1 %vm1861_vm2, %v11521_v24 }
 0x345   : > { %11532 = vmatpush1.msk.msra.mxu1 %vm1865_vm1, %v3890_v33  ;;  %v4696_v38 = vpop.permute.xlu1 %4695  ;;  %4191 = vmatprep.mubr.f32.mxu1 %v13173_v22 }
 0x346   : > { %12313 = vmatprep.subr.mxu1 %v13173_v22  ;;  %v4716_v63 = vsel %vm4715_vm9, %v4696_v38, %v4698_v32 }
 0x348   : > { %v4700_v41 = vpop.permute.xlu0 %4699  ;;  %11533 = vmatmul.mubr.msk.f32.vlgmr.msra.gmra.mrb[14].mxu1 %vm1861_vm2, %v11521_v24 }
 0x349   : > { %12314 = vmatpush3.msk.msra.mxu1 %vm1865_vm1, %v3892_v40  ;;  %v4704_v45 = vpop.permute.xlu1 %4703  ;;  %12315 = vmatprep.mubr.msk.f32.mxu1 %vm13174_vm3, %v13173_v22  ;;  %v4717_v61 = vsel %vm4715_vm9, %v4698_v32, %v4700_v41 }
 0x34a   : > { %11537 = vmatprep.subr.msk.mxu1 %vm1865_vm1, %v4301_v42 }
 0x34c   : > { %v4702_v47 = vpop.permute.xlu0 %4701  ;;  %12316 = vmatmul.mubr.msk.f32.vlgmr.msra.gmra.mrb[26].mxu1 %vm1861_vm2, %v11521_v24 }
 0x34d   : > { %11538 = vmatpush1.msk.msra.mxu1 %vm1865_vm1, %v4300_v46  ;;  %v4294_v49 = vpop.permute.xlu1 %4293  ;;  %4394 = vmatprep.mubr.f32.mxu1 %v13173_v22  ;;  %v4719_v1 = vsel %vm4715_vm9, %v4702_v47, %v4704_v45  ;;  %v4718_v5 = vsel %vm4715_vm9, %v4700_v41, %v4702_v47 }
 0x34e   : > { %11540 = vmatprep.subr.msk.mxu1 %vm1865_vm1, %v4303_v48  ;;  %v4307_v57 = vsel %vm4299_vm8, %v4294_v49, %v4296_v37  ;;  %v4306_v59 = vsel %vm4299_vm8, %v4292_v30, %v4294_v49 }
 0x350   : > { %v4706_v52 = vpop.permute.xlu0 %4705  ;;  %11539 = vmatmul.mubr.msk.f32.vlgmr.msra.gmra.mrb[8].mxu1 %vm1861_vm2, %v11536_v50 }
 0x351   : > { %11541 = vmatpush1.msk.msra.mxu1 %vm1865_vm1, %v4302_v51  ;;  %v4708_v54 = vpop.permute.xlu1 %4707  ;;  %4465 = vmatprep.mubr.f32.mxu1 %v13173_v22  ;;  %v4720_v15 = vsel %vm4715_vm9, %v4704_v45, %v4706_v52 }
 0x352   : > { %11543 = vmatprep.subr.msk.mxu1 %vm1865_vm1, %v4305_v53  ;;  %v4721_v7 = vsel %vm4715_vm9, %v4706_v52, %v4708_v54 }
 0x354   : > { %v5114_v56 = vpop.permute.xlu0 %5113  ;;  %11542 = vmatmul.mubr.msk.f32.vlgmr.msra.gmra.mrb[10].mxu1 %vm1861_vm2, %v11536_v50 }
 0x355   : > { %11544 = vmatpush1.msk.msra.mxu1 %vm1865_vm1, %v4304_v55  ;;  %v4712_v58 = vpop.permute.xlu1 %4711  ;;  %4536 = vmatprep.mubr.f32.mxu1 %v13173_v22 }
 0x356   : > { %11546 = vmatprep.subr.msk.mxu1 %vm1865_vm1, %v4307_v57 }
 0x358   : > { %v5112_v60 = vpop.permute.xlu0 %5111  ;;  %11545 = vmatmul.mubr.msk.f32.vlgmr.msra.gmra.mrb[12].mxu1 %vm1861_vm2, %v11536_v50 }
 0x359   : > { %11547 = vmatpush1.msk.msra.mxu1 %vm1865_vm1, %v4306_v59  ;;  %v5116_v62 = vpop.permute.xlu1 %5115  ;;  %4607 = vmatprep.mubr.f32.mxu1 %v13173_v22  ;;  %v5132_v25 = vsel %vm5131_vm10, %v5112_v60, %v5114_v56 }
 0x35a   : > { %11552 = vmatprep.subr.msk.mxu1 %vm1865_vm1, %v4717_v61  ;;  %v5133_v23 = vsel %vm5131_vm10, %v5114_v56, %v5116_v62 }
 0x35c   : > { %v4710_v0 = vpop.permute.xlu0 %4709  ;;  %11548 = vmatmul.mubr.msk.f32.vlgmr.msra.gmra.mrb[14].mxu1 %vm1861_vm2, %v11536_v50 }
 0x35d   : > { %11553 = vmatpush1.msk.msra.mxu1 %vm1865_vm1, %v4716_v63  ;;  %v4298_v2 = vpop.permute.xlu1 %4297  ;;  %4810 = vmatprep.mubr.f32.mxu1 %v13173_v22  ;;  %v4723_v18 = vsel %vm4715_vm9, %v4710_v0, %v4712_v58  ;;  %v4722_v20 = vsel %vm4715_vm9, %v4708_v54, %v4710_v0 }
 0x35e   : > { %11555 = vmatprep.subr.msk.mxu1 %vm1865_vm1, %v4719_v1  ;;  %v4308_v4 = vsel %vm4299_vm8, %v4296_v37, %v4298_v2  ;;  %v5549_v2 = vld [vmem:[%s16940_s4] sm:$0xff] }
 0x35f   : > { %12319 = vmatpush3.msk.msra.mxu0 %vm1865_vm1, %v4308_v4 }
 0x360   : > { %v5118_v6 = vpop.permute.xlu0 %5117  ;;  %12321 = vmatmul.mubr.msk.f32.vlgmr.msra.gmra.mrb[2].mxu0 %vm1861_vm2, %v11536_v50  ;;  %11554 = vmatmul.mubr.msk.f32.vlgmr.msra.gmra.mrb[8].mxu1 %vm1861_vm2, %v11551_v3 }
 0x361   : > { %11556 = vmatpush1.msk.msra.mxu1 %vm1865_vm1, %v4718_v5  ;;  %v5120_v8 = vpop.permute.xlu1 %5119  ;;  %4881 = vmatprep.mubr.f32.mxu1 %v13173_v22  ;;  %v5134_v31 = vsel %vm5131_vm10, %v5116_v62, %v5118_v6 }
 0x362   : > { %11558 = vmatprep.subr.msk.mxu1 %vm1865_vm1, %v4721_v7  ;;  %12323 = vmatprep.subr.mxu0 %v13173_v22  ;;  %v5135_v27 = vsel %vm5131_vm10, %v5118_v6, %v5120_v8 }
 0x363   : > { %12325 = vmatprep.mubr.msk.f32.mxu0 %vm13174_vm3, %v13173_v22 }
 0x364   : > { %v4714_v16 = vpop.permute.xlu0 %4713  ;;  %11557 = vmatmul.mubr.msk.f32.vlgmr.msra.gmra.mrb[10].mxu1 %vm1861_vm2, %v11551_v3 }
 0x365   : > { %v4724_v17 = vsel %vm4715_vm9, %v4712_v58, %v4714_v16  ;;  %11559 = vmatpush1.msk.msra.mxu1 %vm1865_vm1, %v4720_v15  ;;  %v5122_v19 = vpop.permute.xlu1 %5121  ;;  %4952 = vmatprep.mubr.f32.mxu1 %v13173_v22 }
 0x366   : > { %11561 = vmatprep.subr.msk.mxu1 %vm1865_vm1, %v4723_v18  ;;  %12324 = vmatpush3.msk.msra.mxu0 %vm1865_vm1, %v4724_v17  ;;  %v5136_v33 = vsel %vm5131_vm10, %v5120_v8, %v5122_v19 }
 0x367   : > { %12326 = vmatmul.mubr.msk.f32.vlgmr.msra.gmra.mrb[4].mxu0 %vm1861_vm2, %v11551_v3  ;;  %12328 = vmatprep.subr.mxu0 %v13173_v22 }
 0x368   : > { %v5124_v21 = vpop.permute.xlu0 %5123  ;;  %11560 = vmatmul.mubr.msk.f32.vlgmr.msra.gmra.mrb[12].mxu1 %vm1861_vm2, %v11551_v3  ;;  %12330 = vmatprep.mubr.msk.f32.mxu0 %vm13174_vm3, %v13173_v22 }
 0x369   : > { %11562 = vmatpush1.msk.msra.mxu1 %vm1865_vm1, %v4722_v20  ;;  %v5126_v24 = vpop.permute.xlu1 %5125  ;;  %5023 = vmatprep.mubr.f32.mxu1 %v13173_v22  ;;  %v5137_v32 = vsel %vm5131_vm10, %v5122_v19, %v5124_v21 }
 0x36a   : > { %11567 = vmatprep.subr.msk.mxu1 %vm1865_vm1, %v5133_v23  ;;  %v5138_v38 = vsel %vm5131_vm10, %v5124_v21, %v5126_v24 }
 0x36c   : > { %v5128_v26 = vpop.permute.xlu0 %5127  ;;  %11563 = vmatmul.mubr.msk.f32.vlgmr.msra.gmra.mrb[14].mxu1 %vm1861_vm2, %v11551_v3 }
 0x36d   : > { %11568 = vmatpush1.msk.msra.mxu1 %vm1865_vm1, %v5132_v25  ;;  %v5130_v28 = vpop.permute.xlu1 %5129  ;;  %5226 = vmatprep.mubr.f32.mxu1 %v13173_v22  ;;  %v5139_v37 = vsel %vm5131_vm10, %v5126_v24, %v5128_v26  ;;  %v11581_v24 = vld [vmem:[%s16940_s4 + $0x8] ss:$0 sm:$0xff] }
 0x36e   : > { %11570 = vmatprep.subr.msk.mxu1 %vm1865_vm1, %v5135_v27  ;;  %v5140_v30 = vsel %vm5131_vm10, %v5128_v26, %v5130_v28 }
 0x36f   : > { %12329 = vmatpush3.msk.msra.mxu0 %vm1865_vm1, %v5140_v30 }
 0x370   : > { %11569 = vmatmul.mubr.msk.f32.vlgmr.msra.gmra.mrb[8].mxu1 %vm1861_vm2, %v11566_v29  ;;  %12331 = vmatmul.mubr.msk.f32.vlgmr.msra.gmra.mrb[6].mxu0 %vm1861_vm2, %v11566_v29 }
 0x371   : > { %11571 = vmatpush1.msk.msra.mxu1 %vm1865_vm1, %v5134_v31  ;;  %5297 = vmatprep.mubr.f32.mxu1 %v13173_v22 }
 0x372   : > { %11573 = vmatprep.subr.msk.mxu1 %vm1865_vm1, %v5137_v32  ;;  %5758 = vmatprep.mubr.f32.mxu0 %v13173_v22 }
 0x374   : > { %11572 = vmatmul.mubr.msk.f32.vlgmr.msra.gmra.mrb[10].mxu1 %vm1861_vm2, %v11566_v29 }
 0x375   : > { %11574 = vmatpush1.msk.msra.mxu1 %vm1865_vm1, %v5136_v33  ;;  %5368 = vmatprep.mubr.f32.mxu1 %v13173_v22 }
 0x376   : > { %11576 = vmatprep.subr.msk.mxu1 %vm1865_vm1, %v5139_v37 }
 0x378   : > { %11575 = vmatmul.mubr.msk.f32.vlgmr.msra.gmra.mrb[12].mxu1 %vm1861_vm2, %v11566_v29 }
 0x379   : > { %11577 = vmatpush1.msk.msra.mxu1 %vm1865_vm1, %v5138_v38  ;;  %5439 = vmatprep.mubr.f32.mxu1 %v13173_v22 }
 0x37a   : > { %12348 = vmatprep.subr.mxu1 %v13173_v22 }
 0x37c   : > { %11578 = vmatmul.mubr.msk.f32.vlgmr.msra.gmra.mrb[14].mxu1 %vm1861_vm2, %v11566_v29 }
 0x37d   : > { %12350 = vmatprep.mubr.msk.f32.mxu1 %vm13174_vm3, %v13173_v22  ;;  %v5554_v22 = vshrl.u32 %v361_v35, 7  ;;  %v5529_v4 = vpop.permute.xlu0 %5528 }
 0x37f   : > { %v5555_v1 = vsub.s32 0, %v5554_v22  ;;  %v5559_v3 = vsub.s32 1, %v5554_v22  ;;  %v5563_v7 = vsub.s32 2, %v5554_v22  ;;  %v5567_v21 = vsub.s32 3, %v5554_v22 }
 0x380   : > { %v5571_v32 = vsub.s32 4, %v5554_v22 }
 0x381   : > { %v5556_v15 = vrot.slane %v5549_v2, %v5555_v1  ;;  %v5560_v20 = vrot.slane %v5549_v2, %v5559_v3  ;;  %v5564_v27 = vrot.slane %v5549_v2, %v5563_v7  ;;  %v5568_v38 = vrot.slane %v5549_v2, %v5567_v21  ;;  %v14902_v21 = vld [vmem:[%s16941_s5 + $0x20] sm:$0xff] }
 0x3bb   : > { %v2234_v40 = vpop.f32.mrb[16].mxu1 }
 0x3bc   : > { %v12292_v41 = vpop.f32.mrb[17].mxu1 }
 0x3cf   : > { %v2609_v42 = vpop.f32.mrb[18].mxu1 }
 0x3d0   : > { %v2610_v45 = vadd.f32 %v2609_v42, %v2234_v40  ;;  %v12297_v46 = vpop.f32.mrb[19].mxu1  ;;  %v5575_v40 = vsub.s32 5, %v5554_v22 }
 0x3e3   : > { %v3016_v47 = vpop.f32.mrb[20].mxu1 }
 0x3e4   : > { %v3028_v48 = vadd.f32 %v3016_v47, %v2610_v45  ;;  %v12302_v49 = vpop.f32.mrb[21].mxu1 }
 0x3e5   : > { %v5572_v49 = vrot.slane %v5549_v2, %v5571_v32 }
 0x3f7   : > { %v3432_v50 = vpop.f32.mrb[22].mxu1 }
 0x3f8   : > { %v3444_v51 = vadd.f32 %v3432_v50, %v3028_v48  ;;  %v12307_v52 = vpop.f32.mrb[23].mxu1 }
 0x40b   : > { %v3848_v53 = vpop.f32.mrb[24].mxu1 }
 0x40c   : > { %v3860_v54 = vadd.f32 %v3848_v53, %v3444_v51  ;;  %v12312_v55 = vpop.f32.mrb[25].mxu1  ;;  %v5579_v51 = vsub.s32 6, %v5554_v22 }
 0x40d   : > { %v5583_v55 = vsub.s32 7, %v5554_v22 }
 0x40f   : > { %v5584_v3 = vrot.slane %v5549_v2, %v5583_v55  ;;  %v11582_v55 = vld [vmem:[%s16941_s5 + $0x8] sm:$0xff] }
 0x41f   : > { %v4264_v56 = vpop.f32.mrb[26].mxu1 }
 0x420   : > { %v4276_v57 = vadd.f32 %v4264_v56, %v3860_v54  ;;  %v12317_v58 = vpop.f32.mrb[27].mxu1  ;;  %v5576_v54 = vrot.slane %v5549_v2, %v5575_v40  ;;  %v7637_v56 = vld [vmem:[#allocation2 + $0x50] sm:$0xff] }
 0x433   : > { %v4680_v59 = vpop.f32.mrb[2].mxu0 }
 0x434   : > { %v4692_v60 = vadd.f32 %v4680_v59, %v4276_v57  ;;  %v12322_v61 = vpop.f32.mrb[3].mxu0 }
 0x43a   : > { %v5096_v62 = vpop.f32.mrb[4].mxu0 }
 0x43b   : > { %v5108_v63 = vadd.f32 %v5096_v62, %v4692_v60  ;;  %v12327_v0 = vpop.f32.mrb[5].mxu0  ;;  %v5580_v62 = vrot.slane %v5549_v2, %v5579_v51  ;;  %v14810_v2 = vld [vmem:[#allocation2] sm:$0xff] }
 0x43c   : > { %v9286_v51 = vld [vmem:[%s16944_s8] sm:$0xff] }
 0x443   : > { %v5228_v5 = vpop.f32.mrb[8].mxu1  ;;  %v5512_v6 = vpop.f32.mrb[6].mxu0 }
 0x444   : > { %v5531_v8 = vadd.f32 %v5529_v4, %v5228_v5  ;;  %v5524_v16 = vadd.f32 %v5512_v6, %v5108_v63  ;;  %v5230_v17 = vpop.f32.mrb[9].mxu1  ;;  %v12332_v18 = vpop.f32.mrb[7].mxu0 }
 0x445   : > { %v5532_v19 = vadd.f32 %v5529_v4, %v5230_v17  ;;  %v14884_v17 = vld [vmem:[%s16941_s5 + $0x18] sm:$0xff] }
 0x446   : > { %v5540_v23 = vmax.f32 %v5531_v8, 0.0  ;;  %v5539_v35 = vadd.f32 %v5529_v4, %v5524_v16 }
 0x447   : > { %v5541_v25 = vmax.f32 %v5532_v19, 0.0  ;;  %v5299_v26 = vpop.f32.mrb[10].mxu1 }
 0x448   : > { %v14771_v28 = vmul.f32 %v5556_v15, %v5540_v23  ;;  %v5548_v29 = vmax.f32 %v5539_v35, 0.0  ;;  %v5533_v30 = vadd.f32 %v5529_v4, %v5299_v26  ;;  %v5301_v31 = vpop.f32.mrb[11].mxu1 }
 0x449   : > { %v14773_v33 = vmul.f32 %v5560_v20, %v5541_v25  ;;  %v5534_v37 = vadd.f32 %v5529_v4, %v5301_v31  ;;  %v14921_v25 = vld [vmem:[%s16941_s5 + $0x28] sm:$0xff] }
 0x44a   : > { %v14775_v41 = vmul.f32 %v11581_v24, %v5548_v29  ;;  %v5542_v42 = vmax.f32 %v5533_v30, 0.0  ;;  %v14939_v30 = vld [vmem:[%s16941_s5 + $0x30] sm:$0xff] }
 0x44b   : > { %v5543_v45 = vmax.f32 %v5534_v37, 0.0  ;;  %v5370_v46 = vpop.f32.mrb[12].mxu1 }
 0x44c   : > { %v14777_v47 = vmul.f32 %v5564_v27, %v5542_v42  ;;  %v5535_v48 = vadd.f32 %v5529_v4, %v5370_v46  ;;  %v5372_v50 = vpop.f32.mrb[13].mxu1  ;;  %6871 = vrot.lane.b32.xlu0 %v14775_v41, %s13182_s11 }
 0x44d   : > { %v14781_v52 = vmul.f32 %v5568_v38, %v5543_v45  ;;  %v5536_v53 = vadd.f32 %v5529_v4, %v5372_v50  ;;  %v14957_v38 = vld [vmem:[%s16941_s5 + $0x38] sm:$0xff]  ;;  %v14973_v45 = vld [vmem:[%s16941_s5 + $0x40] sm:$0xff] }
 0x44e   : > { %v5544_v57 = vmax.f32 %v5535_v48, 0.0  ;;  %v13161_v50 = vld [vmem:[%s13356_s28] sm:$0xff] }
 0x44f   : > { %v5545_v58 = vmax.f32 %v5536_v53, 0.0  ;;  %v5441_v59 = vpop.f32.mrb[14].mxu1 }
 0x450   : > { %v14783_v60 = vmul.f32 %v5572_v49, %v5544_v57  ;;  %v5537_v61 = vadd.f32 %v5529_v4, %v5441_v59  ;;  %v5443_v63 = vpop.f32.mrb[15].mxu1  ;;  %7666 = vrot.lane.b32.xlu0 %v7637_v56, %s13172_s29 }
 0x451   : > { %v14786_v0 = vmul.f32 %v5576_v54, %v5545_v58  ;;  %v5538_v1 = vadd.f32 %v5529_v4, %v5443_v63 }
 0x452   : > { %v5546_v5 = vmax.f32 %v5537_v61, 0.0 }
 0x453   : > { %v5547_v6 = vmax.f32 %v5538_v1, 0.0 }
 0x454   : > { %v14788_v7 = vmul.f32 %v5580_v62, %v5546_v5  ;;  %8072 = vrot.lane.b32.xlu0 %v7637_v56, %s13183_s12  ;;  %v9367_v62 = vld [vmem:[%s16943_s7 + $0x10] sm:$0xff] }
 0x455   : > { %v14791_v22 = vmul.f32 %v5584_v3, %v5547_v6 }
 0x457   : > { %6869 = vrot.lane.b32.xlu1 %v14791_v22, %s13182_s11 }
 0x458   : > { %8479 = vrot.lane.b32.xlu0 %v7637_v56, %s13176_s15 }
 0x45b   : > { %7664 = vrot.lane.b32.xlu1 %v14775_v41, %s13172_s29 }
 0x45c   : > { %8885 = vrot.lane.b32.xlu0 %v7637_v56, %s13177_s16 }
 0x45f   : > { %8070 = vrot.lane.b32.xlu1 %v14775_v41, %s13183_s12 }
 0x460   : > { %5655 = vrot.lane.b32.xlu0 %v14773_v33, %s13184_s17 }
 0x463   : > { %8477 = vrot.lane.b32.xlu1 %v14775_v41, %s13176_s15 }
 0x464   : > { %5657 = vrot.lane.b32.xlu0 %v14777_v47, %s13184_s17 }
 0x467   : > { %8883 = vrot.lane.b32.xlu1 %v14775_v41, %s13177_s16 }
 0x468   : > { %5661 = vrot.lane.b32.xlu0 %v14783_v60, %s13184_s17 }
 0x46b   : > { %5653 = vrot.lane.b32.xlu1 %v14771_v28, %s13184_s17 }
 0x46c   : > { %5665 = vrot.lane.b32.xlu0 %v14788_v7, %s13184_s17 }
 0x46f   : > { %5651 = vrot.lane.b32.xlu1 %v14810_v2, %s13184_s17 }
 0x470   : > { %5669 = vrot.lane.b32.xlu0 %v14775_v41, %s13184_s17 }
 0x473   : > { %5659 = vrot.lane.b32.xlu1 %v14781_v52, %s13184_s17 }
 0x474   : > { %6052 = vrot.lane.b32.xlu0 %v14773_v33, %s13185_s18 }
 0x477   : > { %5663 = vrot.lane.b32.xlu1 %v14786_v0, %s13184_s17 }
 0x478   : > { %6054 = vrot.lane.b32.xlu0 %v14777_v47, %s13185_s18 }
 0x47b   : > { %5667 = vrot.lane.b32.xlu1 %v14791_v22, %s13184_s17 }
 0x47c   : > { %6058 = vrot.lane.b32.xlu0 %v14783_v60, %s13185_s18 }
 0x47f   : > { %6050 = vrot.lane.b32.xlu1 %v14771_v28, %s13185_s18 }
 0x480   : > { %6062 = vrot.lane.b32.xlu0 %v14788_v7, %s13185_s18 }
 0x483   : > { %6048 = vrot.lane.b32.xlu1 %v14810_v2, %s13185_s18 }
 0x484   : > { %6066 = vrot.lane.b32.xlu0 %v14775_v41, %s13185_s18 }
 0x487   : > { %6056 = vrot.lane.b32.xlu1 %v14781_v52, %s13185_s18 }
 0x488   : > { %6450 = vrot.lane.b32.xlu0 %v14773_v33, %s13186_s19 }
 0x48b   : > { %6060 = vrot.lane.b32.xlu1 %v14786_v0, %s13185_s18 }
 0x48c   : > { %6452 = vrot.lane.b32.xlu0 %v14777_v47, %s13186_s19 }
 0x48f   : > { %6064 = vrot.lane.b32.xlu1 %v14791_v22, %s13185_s18 }
 0x490   : > { %6456 = vrot.lane.b32.xlu0 %v14783_v60, %s13186_s19 }
 0x493   : > { %6448 = vrot.lane.b32.xlu1 %v14771_v28, %s13186_s19 }
 0x494   : > { %6460 = vrot.lane.b32.xlu0 %v14788_v7, %s13186_s19 }
 0x497   : > { %6446 = vrot.lane.b32.xlu1 %v14810_v2, %s13186_s19 }
 0x498   : > { %6464 = vrot.lane.b32.xlu0 %v14775_v41, %s13186_s19 }
 0x49b   : > { %6454 = vrot.lane.b32.xlu1 %v14781_v52, %s13186_s19 }
 0x49c   : > { %6857 = vrot.lane.b32.xlu0 %v14773_v33, %s13182_s11 }
 0x49f   : > { %6458 = vrot.lane.b32.xlu1 %v14786_v0, %s13186_s19 }
 0x4a0   : > { %6859 = vrot.lane.b32.xlu0 %v14777_v47, %s13182_s11 }
 0x4a3   : > { %6462 = vrot.lane.b32.xlu1 %v14791_v22, %s13186_s19 }
 0x4a4   : > { %6863 = vrot.lane.b32.xlu0 %v14783_v60, %s13182_s11 }
 0x4a7   : > { %6855 = vrot.lane.b32.xlu1 %v14771_v28, %s13182_s11 }
 0x4a8   : > { %6867 = vrot.lane.b32.xlu0 %v14788_v7, %s13182_s11 }
 0x4ab   : > { %6853 = vrot.lane.b32.xlu1 %v14810_v2, %s13182_s11 }
 0x4ac   : > { %7652 = vrot.lane.b32.xlu0 %v14777_v47, %s13172_s29 }
 0x4af   : > { %6861 = vrot.lane.b32.xlu1 %v14781_v52, %s13182_s11 }
 0x4b0   : > { %7654 = vrot.lane.b32.xlu0 %v14781_v52, %s13172_s29 }
 0x4b3   : > { %6865 = vrot.lane.b32.xlu1 %v14786_v0, %s13182_s11 }
 0x4b4   : > { %7658 = vrot.lane.b32.xlu0 %v14786_v0, %s13172_s29 }
 0x4b7   : > { %7650 = vrot.lane.b32.xlu1 %v14773_v33, %s13172_s29 }
 0x4b8   : > { %8058 = vrot.lane.b32.xlu0 %v14777_v47, %s13183_s12 }
 0x4bb   : > { %7648 = vrot.lane.b32.xlu1 %v14771_v28, %s13172_s29 }
 0x4bc   : > { %8060 = vrot.lane.b32.xlu0 %v14781_v52, %s13183_s12 }
 0x4be   : > { %v6872_v4 = vpop.permute.xlu0 %6871 }
 0x4bf   : > { %7656 = vrot.lane.b32.xlu1 %v14783_v60, %s13172_s29 }
 0x4c0   : > { %7662 = vrot.lane.b32.xlu0 %v14791_v22, %s13172_s29 }
 0x4c2   : > { %v7667_v8 = vpop.permute.xlu0 %7666 }
 0x4c3   : > { %7660 = vrot.lane.b32.xlu1 %v14788_v7, %s13172_s29 }
 0x4c4   : > { %8064 = vrot.lane.b32.xlu0 %v14786_v0, %s13183_s12 }
 0x4c6   : > { %v8073_v15 = vpop.permute.xlu0 %8072 }
 0x4c7   : > { %8056 = vrot.lane.b32.xlu1 %v14773_v33, %s13183_s12 }
 0x4c8   : > { %8465 = vrot.lane.b32.xlu0 %v14777_v47, %s13176_s15 }
 0x4c9   : > { %v14879_v16 = vpop.permute.xlu1 %6869 }
 0x4ca   : > { %v8480_v18 = vpop.permute.xlu0 %8479  ;;  %v6882_v19 = vsel %vm6873_vm12, %v14879_v16, %v6872_v4 }
 0x4cb   : > { %8054 = vrot.lane.b32.xlu1 %v14771_v28, %s13183_s12  ;;  %12349 = vmatpush3.msra.mxu1 %v6882_v19 }
 0x4cc   : > { %8467 = vrot.lane.b32.xlu0 %v14781_v52, %s13176_s15  ;;  %12351 = vmatmul.mubr.msk.f32.vlgmr.msra.gmra.mrb[28].mxu1 %vm5690_vm13, %v14884_v17 }
 0x4cd   : > { %12353 = vmatprep.subr.mxu1 %v14810_v2  ;;  %v14895_v20 = vpop.permute.xlu1 %7664  ;;  %12355 = vmatprep.mubr.msk.f32.mxu1 %vm13174_vm3, %v14810_v2 }
 0x4ce   : > { %12354 = vmatpush3.msra.mxu1 %v14775_v41  ;;  %v8886_v23 = vpop.permute.xlu0 %8885  ;;  %v7676_v35 = vsel %vm1851_vm0, %v14895_v20, %v7667_v8 }
 0x4cf   : > { %8062 = vrot.lane.b32.xlu1 %v14783_v60, %s13183_s12  ;;  %12358 = vmatprep.subr.mxu1 %v14810_v2 }
 0x4d0   : > { %8068 = vrot.lane.b32.xlu0 %v14791_v22, %s13183_s12  ;;  %12356 = vmatmul.mubr.msk.f32.vlgmr.msra.gmra.mrb[30].mxu1 %vm5690_vm13, %v14902_v21 }
 0x4d1   : > { %12359 = vmatpush3.msra.mxu1 %v7676_v35  ;;  %v14914_v24 = vpop.permute.xlu1 %8070  ;;  %12360 = vmatprep.mubr.msk.f32.mxu1 %vm13174_vm3, %v14810_v2 }
 0x4d2   : > { %v5656_v26 = vpop.permute.xlu0 %5655  ;;  %12363 = vmatprep.subr.mxu1 %v14810_v2  ;;  %v8083_v27 = vsel %vm8074_vm14, %v14914_v24, %v8073_v15  ;;  %v9366_v15 = vld [vmem:[%s16943_s7 + $0x8] sm:$0xff] }
 0x4d3   : > { %8066 = vrot.lane.b32.xlu1 %v14788_v7, %s13183_s12 }
 0x4d4   : > { %8471 = vrot.lane.b32.xlu0 %v14786_v0, %s13176_s15  ;;  %12361 = vmatmul.mubr.msk.f32.vlgmr.msra.gmra.mrb[32].mxu1 %vm5690_vm13, %v14921_v25 }
 0x4d5   : > { %12364 = vmatpush3.msra.mxu1 %v8083_v27  ;;  %v14932_v29 = vpop.permute.xlu1 %8477  ;;  %12365 = vmatprep.mubr.msk.f32.mxu1 %vm13174_vm3, %v14810_v2 }
 0x4d6   : > { %v5658_v31 = vpop.permute.xlu0 %5657  ;;  %12368 = vmatprep.subr.mxu1 %v14810_v2  ;;  %v8489_v32 = vsel %vm3051_vm5, %v14932_v29, %v8480_v18 }
 0x4d7   : > { %8463 = vrot.lane.b32.xlu1 %v14773_v33, %s13176_s15  ;;  %v5674_v59 = vsel %vm5671_vm15, %v5656_v26, %v5658_v31 }
 0x4d8   : > { %8871 = vrot.lane.b32.xlu0 %v14777_v47, %s13177_s16  ;;  %12366 = vmatmul.mubr.msk.f32.vlgmr.msra.gmra.mrb[34].mxu1 %vm5690_vm13, %v14939_v30 }
 0x4d9   : > { %12369 = vmatpush3.msra.mxu1 %v8489_v32  ;;  %v14950_v37 = vpop.permute.xlu1 %8883  ;;  %12370 = vmatprep.mubr.msk.f32.mxu1 %vm13174_vm3, %v14810_v2 }
 0x4da   : > { %v5662_v40 = vpop.permute.xlu0 %5661  ;;  %12373 = vmatprep.subr.mxu1 %v14810_v2  ;;  %v8895_v41 = vsel %vm3467_vm6, %v14950_v37, %v8886_v23  ;;  %v9370_v23 = vld [vmem:[%s16943_s7 + $0x28] sm:$0xff] }
 0x4db   : > { %8461 = vrot.lane.b32.xlu1 %v14771_v28, %s13176_s15 }
 0x4dc   : > { %8873 = vrot.lane.b32.xlu0 %v14781_v52, %s13177_s16  ;;  %12371 = vmatmul.mubr.msk.f32.vlgmr.msra.gmra.mrb[36].mxu1 %vm5690_vm13, %v14957_v38 }
 0x4dd   : > { %12374 = vmatpush3.msra.mxu1 %v8895_v41  ;;  %v5654_v42 = vpop.permute.xlu1 %5653  ;;  %12375 = vmatprep.mubr.msk.f32.mxu1 %vm13174_vm3, %v14810_v2  ;;  %v5628_v41 = vld [vmem:[%s16941_s5] sm:$0xff] }
 0x4de   : > { %v5666_v46 = vpop.permute.xlu0 %5665  ;;  %v5673_v48 = vsel %vm5671_vm15, %v5654_v42, %v5656_v26  ;;  %11635 = vmatprep.subr.msk.mxu1 %vm1865_vm1, %v13363_v34  ;;  %v9365_v34 = vld [vmem:[%s16943_s7] sm:$0xff] }
 0x4df   : > { %8469 = vrot.lane.b32.xlu1 %v14783_v60, %s13176_s15  ;;  %5694 = vmatprep.subr.mxu0 %v5673_v48  ;;  %v9374_v48 = vld [vmem:[%s16943_s7 + $0x48] sm:$0xff] }
 0x4e0   : > { %8475 = vrot.lane.b32.xlu0 %v14791_v22, %s13176_s15  ;;  %12376 = vmatmul.mubr.msk.f32.vlgmr.msra.gmra.mrb[38].mxu1 %vm5690_vm13, %v14973_v45 }
 0x4e1   : > { %v5652_v49 = vpop.permute.xlu1 %5651  ;;  %11636 = vmatpush1.msk.msra.mxu1 %vm1865_vm1, %v13161_v50  ;;  %9358 = vmatprep.mubr.f32.mxu1 %v14810_v2  ;;  %vm6068_vm1 = vcmask 302080  }
 0x4e2   : > { %v5672_v53 = vsel %vm5671_vm15, %v5652_v49, %v5654_v42  ;;  %v5670_v54 = vpop.permute.xlu0 %5669  ;;  %v9368_v42 = vld [vmem:[%s16943_s7 + $0x18] sm:$0xff] }
 0x4e3   : > { %8473 = vrot.lane.b32.xlu1 %v14788_v7, %s13176_s15  ;;  %5695 = vmatpush1.msra.mxu0 %v5672_v53  ;;  %s16922_s15 = scalar_lea.vmem %s16946_s10, %s13130_s21 }
 0x4e4   : > { %9398 = vperm.xlu0 %13156, %v9365_v34   ;;  %11637 = vmatmul.mubr.msk.f32.vlgmr.msra.gmra.mrb[40].mxu1 %vm1861_vm2, %v9286_v51  ;;  %v9369_v51 = vld [vmem:[%s16943_s7 + $0x20] sm:$0xff]  ;;  %vm6466_vm2 = vcmask 285696  }
 0x4e5   : > { %11583 = vmatmul.mubr.msk.f32.vlgmr.msra.gmra.mrb[8].mxu0 %vm5690_vm13, %v11582_v55  ;;  %v5660_v56 = vpop.permute.xlu1 %5659 }
 0x4e6   : > { %v6053_v57 = vpop.permute.xlu0 %6052  ;;  %v5675_v58 = vsel %vm5671_vm15, %v5658_v31, %v5660_v56  ;;  %5829 = vmatprep.mubr.f32.mxu0 %v14810_v2  ;;  %v5676_v3 = vsel %vm5671_vm15, %v5660_v56, %v5662_v40  ;;  %v9372_v31 = vld [vmem:[%s16943_s7 + $0x38] sm:$0xff] }
 0x4e7   : > { %8869 = vrot.lane.b32.xlu1 %v14773_v33, %s13177_s16  ;;  %5765 = vmatprep.subr.mxu0 %v5675_v58  ;;  %v9371_v58 = vld [vmem:[%s16943_s7 + $0x30] sm:$0xff] }
 0x4e8   : > { %8877 = vrot.lane.b32.xlu0 %v14786_v0, %s13177_s16  ;;  %5766 = vmatpush1.msra.mxu0 %v5674_v59 }
 0x4e9   : > { %11584 = vmatmul.mubr.msk.f32.vlgmr.msra.gmra.mrb[10].mxu0 %vm5690_vm13, %v11582_v55  ;;  %v5664_v61 = vpop.permute.xlu1 %5663 }
 0x4ea   : > { %v6055_v63 = vpop.permute.xlu0 %6054  ;;  %v5677_v1 = vsel %vm5671_vm15, %v5662_v40, %v5664_v61  ;;  %5900 = vmatprep.mubr.f32.mxu0 %v14810_v2  ;;  %v5678_v8 = vsel %vm5671_vm15, %v5664_v61, %v5666_v46  ;;  %v9378_v61 = vld [vmem:[%s16943_s7 + $0x68] sm:$0xff] }
 0x4eb   : > { %8867 = vrot.lane.b32.xlu1 %v14771_v28, %s13177_s16  ;;  %5836 = vmatprep.subr.mxu0 %v5677_v1  ;;  %v6071_v34 = vsel %vm6068_vm1, %v6053_v57, %v6055_v63 }
 0x4ec   : > { %9404 = vperm.xlu0 %13156, %v9367_v62   ;;  %5837 = vmatpush1.msra.mxu0 %v5676_v3  ;;  %v9373_v3 = vld [vmem:[%s16943_s7 + $0x40] sm:$0xff] }
 0x4ed   : > { %11585 = vmatmul.mubr.msk.f32.vlgmr.msra.gmra.mrb[12].mxu0 %vm5690_vm13, %v11582_v55  ;;  %v5668_v5 = vpop.permute.xlu1 %5667 }
 0x4ee   : > { %v6059_v6 = vpop.permute.xlu0 %6058  ;;  %v5679_v4 = vsel %vm5671_vm15, %v5666_v46, %v5668_v5  ;;  %5971 = vmatprep.mubr.f32.mxu0 %v14810_v2  ;;  %v5680_v18 = vsel %vm5671_vm15, %v5668_v5, %v5670_v54  ;;  %v9376_v54 = vld [vmem:[%s16943_s7 + $0x58] sm:$0xff] }
 0x4ef   : > { %8875 = vrot.lane.b32.xlu1 %v14783_v60, %s13177_s16  ;;  %5907 = vmatprep.subr.mxu0 %v5679_v4  ;;  %v9380_v4 = vld [vmem:[%s16943_s7 + $0x78] sm:$0xff] }
 0x4f0   : > { %8881 = vrot.lane.b32.xlu0 %v14791_v22, %s13177_s16  ;;  %5908 = vmatpush1.msra.mxu0 %v5678_v8 }
 0x4f1   : > { %11586 = vmatmul.mubr.msk.f32.vlgmr.msra.gmra.mrb[14].mxu0 %vm5690_vm13, %v11582_v55  ;;  %12333 = vmatprep.subr.mxu0 %v14810_v2  ;;  %v6051_v19 = vpop.permute.xlu1 %6050 }
 0x4f2   : > { %v6063_v35 = vpop.permute.xlu0 %6062  ;;  %12334 = vmatpush3.msra.mxu0 %v5680_v18  ;;  %v6070_v26 = vsel %vm6068_vm1, %v6051_v19, %v6053_v57  ;;  %12335 = vmatprep.mubr.msk.f32.mxu0 %vm13174_vm3, %v14810_v2  ;;  %v9375_v18 = vld [vmem:[%s16943_s7 + $0x50] sm:$0xff] }
 0x4f3   : > { %9401 = vperm.xlu1 %13157, %v9366_v15   ;;  %6090 = vmatprep.subr.mxu0 %v6070_v26 }
 0x4f4   : > { %9413 = vperm.xlu0 %13156, %v9370_v23   ;;  %v9382_v23 = vld [vmem:[%s16943_s7 + $0x88] sm:$0xff] }
 0x4f5   : > { %12336 = vmatmul.mubr.msk.f32.vlgmr.msra.gmra.mrb[16].mxu0 %vm5690_vm13, %v11582_v55  ;;  %v6049_v27 = vpop.permute.xlu1 %6048 }
 0x4f6   : > { %v6069_v32 = vsel %vm6068_vm1, %v6049_v27, %v6051_v19  ;;  %v6067_v40 = vpop.permute.xlu0 %6066  ;;  %6154 = vmatprep.mubr.f32.mxu0 %v14810_v2  ;;  %v11593_v27 = vld [vmem:[%s16941_s5 + $0x10] sm:$0xff] }
 0x4f7   : > { %8879 = vrot.lane.b32.xlu1 %v14788_v7, %s13177_s16  ;;  %6091 = vmatpush1.msra.mxu0 %v6069_v32 }
 0x4f8   : > { %9419 = vperm.xlu0 %13156, %v9372_v31   ;;  %v9377_v31 = vld [vmem:[%s16943_s7 + $0x60] sm:$0xff] }
 0x4f9   : > { %11588 = vmatmul.mubr.msk.f32.vlgmr.msra.gmra.mrb[8].mxu0 %vm5690_vm13, %v5628_v41  ;;  %v6057_v46 = vpop.permute.xlu1 %6056 }
 0x4fa   : > { %v15055_v49 = vpop.permute.xlu0 %6450  ;;  %v6072_v50 = vsel %vm6068_vm1, %v6055_v63, %v6057_v46  ;;  %6225 = vmatprep.mubr.f32.mxu0 %v14810_v2  ;;  %v6073_v57 = vsel %vm6068_vm1, %v6057_v46, %v6059_v6 }
 0x4fb   : > { %9407 = vperm.xlu1 %13157, %v9368_v42   ;;  %6161 = vmatprep.subr.mxu0 %v6072_v50 }
 0x4fc   : > { %9425 = vperm.xlu0 %13156, %v9374_v48   ;;  %6162 = vmatpush1.msra.mxu0 %v6071_v34  ;;  %v9379_v48 = vld [vmem:[%s16943_s7 + $0x70] sm:$0xff]  ;;  %v9386_v34 = vld [vmem:[%s16943_s7 + $0xa8] sm:$0xff] }
 0x4fd   : > { %11589 = vmatmul.mubr.msk.f32.vlgmr.msra.gmra.mrb[10].mxu0 %vm5690_vm13, %v5628_v41  ;;  %v6061_v53 = vpop.permute.xlu1 %6060 }
 0x4fe   : > { %v6453_v55 = vpop.permute.xlu0 %6452  ;;  %v6074_v56 = vsel %vm6068_vm1, %v6059_v6, %v6061_v53  ;;  %6296 = vmatprep.mubr.f32.mxu0 %v14810_v2  ;;  %v6075_v1 = vsel %vm6068_vm1, %v6061_v53, %v6063_v35 }
 0x4ff   : > { %9410 = vperm.xlu1 %13157, %v9369_v51   ;;  %6232 = vmatprep.subr.mxu0 %v6074_v56  ;;  %v6469_v46 = vsel %vm6466_vm2, %v15055_v49, %v6453_v55  ;;  %v9388_v56 = vld [vmem:[%s16943_s7 + $0xb8] sm:$0xff] }
 0x500   : > { %9431 = vperm.xlu0 %13156, %v9376_v54   ;;  %6233 = vmatpush1.msra.mxu0 %v6073_v57  ;;  %v9381_v54 = vld [vmem:[%s16943_s7 + $0x80] sm:$0xff] }
 0x501   : > { %11590 = vmatmul.mubr.msk.f32.vlgmr.msra.gmra.mrb[12].mxu0 %vm5690_vm13, %v5628_v41  ;;  %v6065_v59 = vpop.permute.xlu1 %6064 }
 0x502   : > { %v6457_v62 = vpop.permute.xlu0 %6456  ;;  %v6076_v63 = vsel %vm6068_vm1, %v6063_v35, %v6065_v59  ;;  %6367 = vmatprep.mubr.f32.mxu0 %v14810_v2  ;;  %v6077_v5 = vsel %vm6068_vm1, %v6065_v59, %v6067_v40  ;;  %v9384_v40 = vld [vmem:[%s16943_s7 + $0x98] sm:$0xff] }
 0x503   : > { %9416 = vperm.xlu1 %13157, %v9371_v58   ;;  %6303 = vmatprep.subr.mxu0 %v6076_v63 }
 0x504   : > { %9437 = vperm.xlu0 %13156, %v9378_v61   ;;  %6304 = vmatpush1.msra.mxu0 %v6075_v1  ;;  %v9383_v61 = vld [vmem:[%s16943_s7 + $0x90] sm:$0xff]  ;;  %v9390_v1 = vld [vmem:[%s16943_s7 + $0xc8] sm:$0xff] }
 0x505   : > { %11591 = vmatmul.mubr.msk.f32.vlgmr.msra.gmra.mrb[14].mxu0 %vm5690_vm13, %v5628_v41  ;;  %12338 = vmatprep.subr.mxu0 %v14810_v2  ;;  %v6449_v6 = vpop.permute.xlu1 %6448 }
 0x506   : > { %v6461_v8 = vpop.permute.xlu0 %6460  ;;  %12339 = vmatpush3.msra.mxu0 %v6077_v5  ;;  %v6468_v15 = vsel %vm6466_vm2, %v6449_v6, %v15055_v49  ;;  %12340 = vmatprep.mubr.msk.f32.mxu0 %vm13174_vm3, %v14810_v2 }
 0x507   : > { %9422 = vperm.xlu1 %13157, %v9373_v3   ;;  %6488 = vmatprep.subr.mxu0 %v6468_v15 }
 0x508   : > { %9443 = vperm.xlu0 %13156, %v9380_v4  }
 0x509   : > { %12341 = vmatmul.mubr.msk.f32.vlgmr.msra.gmra.mrb[18].mxu0 %vm5690_vm13, %v5628_v41  ;;  %v6447_v19 = vpop.permute.xlu1 %6446 }
 0x50a   : > { %v6467_v35 = vsel %vm6466_vm2, %v6447_v19, %v6449_v6  ;;  %v6465_v26 = vpop.permute.xlu0 %6464  ;;  %6552 = vmatprep.mubr.f32.mxu0 %v14810_v2  ;;  %v9385_v6 = vld [vmem:[%s16943_s7 + $0xa0] sm:$0xff]  ;;  %v9387_v19 = vld [vmem:[%s16943_s7 + $0xb0] sm:$0xff] }
 0x50b   : > { %9428 = vperm.xlu1 %13157, %v9375_v18   ;;  %6489 = vmatpush1.msra.mxu0 %v6467_v35  ;;  %v9394_v35 = vld [vmem:[%s16943_s7 + $0xe8] sm:$0xff] }
 0x50c   : > { %9449 = vperm.xlu0 %13156, %v9382_v23  }
 0x50d   : > { %11594 = vmatmul.mubr.msk.f32.vlgmr.msra.gmra.mrb[8].mxu0 %vm5690_vm13, %v11593_v27  ;;  %v6455_v32 = vpop.permute.xlu1 %6454 }
 0x50e   : > { %v15112_v41 = vpop.permute.xlu0 %6857  ;;  %v6470_v42 = vsel %vm6466_vm2, %v6453_v55, %v6455_v32  ;;  %6623 = vmatprep.mubr.f32.mxu0 %v14810_v2  ;;  %v6471_v49 = vsel %vm6466_vm2, %v6455_v32, %v6457_v62  ;;  %v9389_v32 = vld [vmem:[%s16943_s7 + $0xc0] sm:$0xff] }
 0x50f   : > { %9434 = vperm.xlu1 %13157, %v9377_v31   ;;  %6559 = vmatprep.subr.mxu0 %v6470_v42  ;;  %v9396_v42 = vld [vmem:[%s16943_s7 + $0xf8] sm:$0xff] }
 0x510   : > { %9455 = vperm.xlu0 %13156, %v9384_v40   ;;  %6560 = vmatpush1.msra.mxu0 %v6469_v46 }
 0x511   : > { %11595 = vmatmul.mubr.msk.f32.vlgmr.msra.gmra.mrb[10].mxu0 %vm5690_vm13, %v11593_v27  ;;  %v6459_v50 = vpop.permute.xlu1 %6458 }
 0x512   : > { %v6860_v51 = vpop.permute.xlu0 %6859  ;;  %v6472_v53 = vsel %vm6466_vm2, %v6457_v62, %v6459_v50  ;;  %6694 = vmatprep.mubr.f32.mxu0 %v14810_v2  ;;  %v6473_v59 = vsel %vm6466_vm2, %v6459_v50, %v6461_v8 }
 0x513   : > { %9440 = vperm.xlu1 %13157, %v9379_v48   ;;  %6630 = vmatprep.subr.mxu0 %v6472_v53  ;;  %v6876_v31 = vsel %vm6873_vm12, %v15112_v41, %v6860_v51 }
 0x514   : > { %9461 = vperm.xlu0 %13156, %v9386_v34   ;;  %6631 = vmatpush1.msra.mxu0 %v6471_v49  ;;  %v9391_v34 = vld [vmem:[%s16943_s7 + $0xd0] sm:$0xff]  ;;  %v10720_v49 = vld [vmem:[%s16945_s9] sm:$0xff] }
 0x515   : > { %11596 = vmatmul.mubr.msk.f32.vlgmr.msra.gmra.mrb[12].mxu0 %vm5690_vm13, %v11593_v27  ;;  %v6463_v55 = vpop.permute.xlu1 %6462 }
 0x516   : > { %v6864_v57 = vpop.permute.xlu0 %6863  ;;  %v6474_v58 = vsel %vm6466_vm2, %v6461_v8, %v6463_v55  ;;  %6765 = vmatprep.mubr.f32.mxu0 %v14810_v2  ;;  %v6475_v62 = vsel %vm6466_vm2, %v6463_v55, %v6465_v26  ;;  %v9392_v8 = vld [vmem:[%s16943_s7 + $0xd8] sm:$0xff] }
 0x517   : > { %9446 = vperm.xlu1 %13157, %v9381_v54   ;;  %6701 = vmatprep.subr.mxu0 %v6474_v58 }
 0x518   : > { %9467 = vperm.xlu0 %13156, %v9388_v56   ;;  %6702 = vmatpush1.msra.mxu0 %v6473_v59 }
 0x519   : > { %11597 = vmatmul.mubr.msk.f32.vlgmr.msra.gmra.mrb[14].mxu0 %vm5690_vm13, %v11593_v27  ;;  %12343 = vmatprep.subr.mxu0 %v14810_v2  ;;  %v6856_v63 = vpop.permute.xlu1 %6855 }
 0x51a   : > { %v6868_v3 = vpop.permute.xlu0 %6867  ;;  %12344 = vmatpush3.msra.mxu0 %v6475_v62  ;;  %v6875_v5 = vsel %vm6873_vm12, %v6856_v63, %v15112_v41  ;;  %12345 = vmatprep.mubr.msk.f32.mxu0 %vm13174_vm3, %v14810_v2 }
 0x51b   : > { %9452 = vperm.xlu1 %13157, %v9383_v61   ;;  %6895 = vmatprep.subr.mxu0 %v6875_v5  ;;  %v6881_v50 = vsel %vm6873_vm12, %v6868_v3, %v14879_v16  ;;  %v9393_v16 = vld [vmem:[%s16943_s7 + $0xe0] sm:$0xff] }
 0x51c   : > { %9473 = vperm.xlu0 %13156, %v9390_v1  }
 0x51d   : > { %12346 = vmatmul.mubr.msk.f32.vlgmr.msra.gmra.mrb[20].mxu0 %vm5690_vm13, %v11593_v27  ;;  %v6854_v4 = vpop.permute.xlu1 %6853 }
 0x51e   : > { %v6874_v15 = vsel %vm6873_vm12, %v6854_v4, %v6856_v63  ;;  %v15159_v18 = vpop.permute.xlu0 %7652  ;;  %6959 = vmatprep.mubr.f32.mxu0 %v14810_v2 }
 0x51f   : > { %9458 = vperm.xlu1 %13157, %v9385_v6   ;;  %6896 = vmatpush1.msra.mxu0 %v6874_v15 }
 0x520   : > { %9479 = vperm.xlu0 %13156, %v9392_v8  }
 0x521   : > { %11600 = vmatmul.mubr.msk.f32.vlgmr.msra.gmra.mrb[8].mxu0 %vm5690_vm13, %v14884_v17  ;;  %v6862_v23 = vpop.permute.xlu1 %6861 }
 0x522   : > { %v15170_v26 = vpop.permute.xlu0 %7654  ;;  %v6877_v27 = vsel %vm6873_vm12, %v6860_v51, %v6862_v23  ;;  %7030 = vmatprep.mubr.f32.mxu0 %v14810_v2  ;;  %v6878_v48 = vsel %vm6873_vm12, %v6862_v23, %v6864_v57 }
 0x523   : > { %9464 = vperm.xlu1 %13157, %v9387_v19   ;;  %6966 = vmatprep.subr.mxu0 %v6877_v27 }
 0x524   : > { %9485 = vperm.xlu0 %13156, %v9394_v35   ;;  %6967 = vmatpush1.msra.mxu0 %v6876_v31 }
 0x525   : > { %11601 = vmatmul.mubr.msk.f32.vlgmr.msra.gmra.mrb[10].mxu0 %vm5690_vm13, %v14884_v17  ;;  %v6866_v40 = vpop.permute.xlu1 %6865 }
 0x526   : > { %v15184_v46 = vpop.permute.xlu0 %7658  ;;  %v6879_v41 = vsel %vm6873_vm12, %v6864_v57, %v6866_v40  ;;  %7101 = vmatprep.mubr.f32.mxu0 %v14810_v2  ;;  %v6880_v51 = vsel %vm6873_vm12, %v6866_v40, %v6868_v3 }
 0x527   : > { %9470 = vperm.xlu1 %13157, %v9389_v32   ;;  %7037 = vmatprep.subr.mxu0 %v6879_v41 }
 0x528   : > { %9491 = vperm.xlu0 %13156, %v9396_v42   ;;  %7038 = vmatpush1.msra.mxu0 %v6878_v48 }
 0x529   : > { %11602 = vmatmul.mubr.msk.f32.vlgmr.msra.gmra.mrb[12].mxu0 %vm5690_vm13, %v14884_v17  ;;  %7108 = vmatprep.subr.mxu0 %v6881_v50  ;;  %v7651_v53 = vpop.permute.xlu1 %7650 }
 0x52a   : > { %v15200_v54 = vpop.permute.xlu0 %8058  ;;  %7109 = vmatpush1.msra.mxu0 %v6880_v51  ;;  %7172 = vmatprep.mubr.f32.mxu0 %v14810_v2 }
 0x52b   : > { %9476 = vperm.xlu1 %13157, %v9391_v34   ;;  %7263 = vmatprep.subr.mxu0 %v14773_v33  ;;  %v9395_v33 = vld [vmem:[%s16943_s7 + $0xf0] sm:$0xff] }
 0x52c   : > { %10723 = vperm.xlu0 %13156, %v10720_v49  }
 0x52d   : > { %11603 = vmatmul.mubr.msk.f32.vlgmr.msra.gmra.mrb[14].mxu0 %vm5690_vm13, %v14884_v17  ;;  %v7649_v55 = vpop.permute.xlu1 %7648 }
 0x52e   : > { %7264 = vmatpush1.msra.mxu0 %v14771_v28  ;;  %v15210_v56 = vpop.permute.xlu0 %8060  ;;  %7327 = vmatprep.mubr.f32.mxu0 %v14810_v2  ;;  %v9271_v28 = vld [vmem:[%s16942_s6] sm:$0xff] }
 0x52f   : > { %7334 = vmatprep.subr.mxu0 %v14781_v52  ;;  %9482 = vperm.xlu1 %13157, %v9393_v16   ;;  %v8077_v35 = vsel %vm8074_vm14, %v15200_v54, %v15210_v56 }
 0x531   : > { %11606 = vmatmul.mubr.msk.f32.vlgmr.msra.gmra.mrb[8].mxu0 %vm5690_vm13, %v14902_v21  ;;  %v7657_v57 = vpop.permute.xlu1 %7656 }
 0x532   : > { %7335 = vmatpush1.msra.mxu0 %v14777_v47  ;;  %v7663_v17 = vpop.permute.xlu0 %7662  ;;  %7398 = vmatprep.mubr.f32.mxu0 %v14810_v2  ;;  %v7671_v61 = vsel %vm1851_vm0, %v15170_v26, %v7657_v57  ;;  %v7672_v1 = vsel %vm1851_vm0, %v7657_v57, %v15184_v46 }
 0x533   : > { %7405 = vmatprep.subr.mxu0 %v14786_v0  ;;  %9488 = vperm.xlu1 %13157, %v9395_v33   ;;  %v7669_v0 = vsel %vm1851_vm0, %v7651_v53, %v15159_v18  ;;  %v7675_v5 = vsel %vm1851_vm0, %v7663_v17, %v14895_v20 }
 0x535   : > { %11607 = vmatmul.mubr.msk.f32.vlgmr.msra.gmra.mrb[10].mxu0 %vm5690_vm13, %v14902_v21  ;;  %v7661_v52 = vpop.permute.xlu1 %7660 }
 0x536   : > { %7406 = vmatpush1.msra.mxu0 %v14783_v60  ;;  %v8065_v58 = vpop.permute.xlu0 %8064  ;;  %7469 = vmatprep.mubr.f32.mxu0 %v14810_v2  ;;  %v7668_v60 = vsel %vm1851_vm0, %v7649_v55, %v7651_v53  ;;  %v7674_v4 = vsel %vm1851_vm0, %v7661_v52, %v7663_v17 }
 0x537   : > { %7476 = vmatprep.subr.mxu0 %v14791_v22  ;;  %9274 = vperm.xlu1 %13157, %v9271_v28  }
 0x539   : > { %11608 = vmatmul.mubr.msk.f32.vlgmr.msra.gmra.mrb[12].mxu0 %vm5690_vm13, %v14902_v21  ;;  %v8057_v47 = vpop.permute.xlu1 %8056 }
 0x53a   : > { %7477 = vmatpush1.msra.mxu0 %v14788_v7  ;;  %7540 = vmatprep.mubr.f32.mxu0 %v14810_v2  ;;  %v15236_v59 = vpop.permute.xlu0 %8465  ;;  %v7670_v7 = vsel %vm1851_vm0, %v15159_v18, %v15170_v26  ;;  %v8076_v15 = vsel %vm8074_vm14, %v8057_v47, %v15200_v54 }
 0x53b   : > { %7689 = vmatprep.subr.mxu0 %v7669_v0 }
 0x53d   : > { %11609 = vmatmul.mubr.msk.f32.vlgmr.msra.gmra.mrb[14].mxu0 %vm5690_vm13, %v14902_v21  ;;  %v8055_v22 = vpop.permute.xlu1 %8054  ;;  %v7673_v21 = vsel %vm1851_vm0, %v15184_v46, %v7661_v52 }
 0x53e   : > { %7690 = vmatpush1.msra.mxu0 %v7668_v60  ;;  %7753 = vmatprep.mubr.f32.mxu0 %v14810_v2  ;;  %v8468_v62 = vpop.permute.xlu0 %8467  ;;  %v8075_v18 = vsel %vm8074_vm14, %v8055_v22, %v8057_v47 }
 0x53f   : > { %7760 = vmatprep.subr.mxu0 %v7671_v61  ;;  %v8483_v51 = vsel %vm3051_vm5, %v15236_v59, %v8468_v62  ;;  %v16974_v61 = vmov 0 }
 0x541   : > { %11612 = vmatmul.mubr.msk.f32.vlgmr.msra.gmra.mrb[8].mxu0 %vm5690_vm13, %v14921_v25  ;;  %v8063_v63 = vpop.permute.xlu1 %8062 }
 0x542   : > { %7761 = vmatpush1.msra.mxu0 %v7670_v7  ;;  %7824 = vmatprep.mubr.f32.mxu0 %v14810_v2  ;;  %v8069_v6 = vpop.permute.xlu0 %8068  ;;  %v8078_v23 = vsel %vm8074_vm14, %v15210_v56, %v8063_v63  ;;  %v8079_v31 = vsel %vm8074_vm14, %v8063_v63, %v8065_v58 }
 0x543   : > { %7831 = vmatprep.subr.mxu0 %v7673_v21  ;;  %v8082_v32 = vsel %vm8074_vm14, %v8069_v6, %v14914_v24  ;;  %v16978_v21 = vmov 0 }
 0x545   : > { %11613 = vmatmul.mubr.msk.f32.vlgmr.msra.gmra.mrb[10].mxu0 %vm5690_vm13, %v14921_v25  ;;  %v8067_v3 = vpop.permute.xlu1 %8066 }
 0x546   : > { %7832 = vmatpush1.msra.mxu0 %v7672_v1  ;;  %7895 = vmatprep.mubr.f32.mxu0 %v14810_v2  ;;  %v8472_v20 = vpop.permute.xlu0 %8471  ;;  %v8080_v26 = vsel %vm8074_vm14, %v8065_v58, %v8067_v3  ;;  %v8081_v40 = vsel %vm8074_vm14, %v8067_v3, %v8069_v6  ;;  %v16984_v6 = vmov 0 }
 0x547   : > { %7902 = vmatprep.subr.mxu0 %v7675_v5 }
 0x549   : > { %11614 = vmatmul.mubr.msk.f32.vlgmr.msra.gmra.mrb[12].mxu0 %vm5690_vm13, %v14921_v25  ;;  %v8464_v8 = vpop.permute.xlu1 %8463 }
 0x54a   : > { %7903 = vmatpush1.msra.mxu0 %v7674_v4  ;;  %7966 = vmatprep.mubr.f32.mxu0 %v14810_v2  ;;  %v8482_v41 = vsel %vm3051_vm5, %v8464_v8, %v15236_v59 }
 0x54b   : > { %8096 = vmatprep.subr.mxu0 %v8076_v15 }
 0x54d   : > { %11615 = vmatmul.mubr.msk.f32.vlgmr.msra.gmra.mrb[14].mxu0 %vm5690_vm13, %v14921_v25  ;;  %v8462_v19 = vpop.permute.xlu1 %8461  ;;  %v8872_v25 = vpop.permute.xlu0 %8871 }
 0x54e   : > { %8097 = vmatpush1.msra.mxu0 %v8075_v18  ;;  %8160 = vmatprep.mubr.f32.mxu0 %v14810_v2  ;;  %v8481_v48 = vsel %vm3051_vm5, %v8462_v19, %v8464_v8  ;;  %v16987_v8 = vmov 0  ;;  %v16989_v18 = vmov 0 }
 0x54f   : > { %8167 = vmatprep.subr.mxu0 %v8078_v23  ;;  %v16991_v23 = vmov 0 }
 0x551   : > { %11618 = vmatmul.mubr.msk.f32.vlgmr.msra.gmra.mrb[8].mxu0 %vm5690_vm13, %v14939_v30  ;;  %v8470_v27 = vpop.permute.xlu1 %8469  ;;  %v8874_v42 = vpop.permute.xlu0 %8873 }
 0x552   : > { %8168 = vmatpush1.msra.mxu0 %v8077_v35  ;;  %8231 = vmatprep.mubr.f32.mxu0 %v14810_v2  ;;  %v8484_v24 = vsel %vm3051_vm5, %v8468_v62, %v8470_v27  ;;  %v8485_v49 = vsel %vm3051_vm5, %v8470_v27, %v8472_v20  ;;  %v8889_v58 = vsel %vm3467_vm6, %v8872_v25, %v8874_v42  ;;  %v16976_v62 = vmov 0 }
 0x553   : > { %8238 = vmatprep.subr.mxu0 %v8080_v26 }
 0x555   : > { %11619 = vmatmul.mubr.msk.f32.vlgmr.msra.gmra.mrb[10].mxu0 %vm5690_vm13, %v14939_v30  ;;  %v8474_v46 = vpop.permute.xlu1 %8473  ;;  %v8476_v50 = vpop.permute.xlu0 %8475 }
 0x556   : > { %8239 = vmatpush1.msra.mxu0 %v8079_v31  ;;  %8302 = vmatprep.mubr.f32.mxu0 %v14810_v2  ;;  %v8486_v53 = vsel %vm3051_vm5, %v8472_v20, %v8474_v46  ;;  %v8488_v16 = vsel %vm3051_vm5, %v8476_v50, %v14932_v29  ;;  %v8487_v56 = vsel %vm3051_vm5, %v8474_v46, %v8476_v50 }
 0x557   : > { %8309 = vmatprep.subr.mxu0 %v8082_v32  ;;  %v16995_v32 = vmov 0 }
 0x559   : > { %11620 = vmatmul.mubr.msk.f32.vlgmr.msra.gmra.mrb[12].mxu0 %vm5690_vm13, %v14939_v30  ;;  %v8870_v34 = vpop.permute.xlu1 %8869 }
 0x55a   : > { %8310 = vmatpush1.msra.mxu0 %v8081_v40  ;;  %8373 = vmatprep.mubr.f32.mxu0 %v14810_v2  ;;  %v8888_v33 = vsel %vm3467_vm6, %v8870_v34, %v8872_v25  ;;  %v16993_v25 = vmov 0 }
 0x55b   : > { %8502 = vmatprep.subr.mxu0 %v8482_v41  ;;  %v16999_v41 = vmov 0 }
 0x55d   : > { %11621 = vmatmul.mubr.msk.f32.vlgmr.msra.gmra.mrb[14].mxu0 %vm5690_vm13, %v14939_v30  ;;  %v8868_v54 = vpop.permute.xlu1 %8867 }
 0x55e   : > { %8503 = vmatpush1.msra.mxu0 %v8481_v48  ;;  %8566 = vmatprep.mubr.f32.mxu0 %v14810_v2  ;;  %v8887_v29 = vsel %vm3467_vm6, %v8868_v54, %v8870_v34  ;;  %v17006_v34 = vmov 0 }
 0x55f   : > { %8573 = vmatprep.subr.mxu0 %v8484_v24 }
 0x561   : > { %11624 = vmatmul.mubr.msk.f32.vlgmr.msra.gmra.mrb[8].mxu0 %vm5690_vm13, %v14957_v38  ;;  %v8876_v57 = vpop.permute.xlu1 %8875 }
 0x562   : > { %8574 = vmatpush1.msra.mxu0 %v8483_v51  ;;  %8637 = vmatprep.mubr.f32.mxu0 %v14810_v2  ;;  %v8890_v28 = vsel %vm3467_vm6, %v8874_v42, %v8876_v57 }
 0x563   : > { %8644 = vmatprep.subr.mxu0 %v8486_v53  ;;  %v15301_v30 = vpop.permute.xlu0 %9398 }
 0x564   : > { %vm9494_vm4 = vcmp.eq.s32.totalorder %v13375_v39, %v15301_v30  ;;  %vm9496_vm8 = vcmp.eq.s32.totalorder %v13758_v9, %v15301_v30  ;;  %vm9495_vm11 = vcmp.eq.s32.totalorder %v13769_v10, %v15301_v30  ;;  %vm9498_vm15 = vcmp.eq.s32.totalorder %v13929_v11, %v15301_v30 }
 0x565   : > { %11625 = vmatmul.mubr.msk.f32.vlgmr.msra.gmra.mrb[10].mxu0 %vm5690_vm13, %v14957_v38 }
 0x566   : > { %8645 = vmatpush1.msra.mxu0 %v8485_v49  ;;  %8708 = vmatprep.mubr.f32.mxu0 %v14810_v2 }
 0x567   : > { %8715 = vmatprep.subr.mxu0 %v8488_v16  ;;  %v8878_v55 = vpop.permute.xlu0 %8877  ;;  %v17143_v16 = vmov 0 }
 0x568   : > { %v8891_v7 = vsel %vm3467_vm6, %v8876_v57, %v8878_v55 }
 0x569   : > { %11626 = vmatmul.mubr.msk.f32.vlgmr.msra.gmra.mrb[12].mxu0 %vm5690_vm13, %v14957_v38 }
 0x56a   : > { %8716 = vmatpush1.msra.mxu0 %v8487_v56  ;;  %8779 = vmatprep.mubr.f32.mxu0 %v14810_v2 }
 0x56b   : > { %8908 = vmatprep.subr.mxu0 %v8888_v33  ;;  %v15314_v17 = vpop.permute.xlu0 %9404 }
 0x56d   : > { %11627 = vmatmul.mubr.msk.f32.vlgmr.msra.gmra.mrb[14].mxu0 %vm5690_vm13, %v14957_v38 }
 0x56e   : > { %8909 = vmatpush1.msra.mxu0 %v8887_v29  ;;  %8972 = vmatprep.mubr.f32.mxu0 %v14810_v2  ;;  %v17043_v29 = vmov 0 }
 0x56f   : > { %8979 = vmatprep.subr.mxu0 %v8890_v28  ;;  %v8882_v52 = vpop.permute.xlu0 %8881 }
 0x570   : > { %v8894_v63 = vsel %vm3467_vm6, %v8882_v52, %v14950_v37  ;;  %v16981_v37 = vmov 0 }
 0x571   : > { %11630 = vmatmul.mubr.msk.f32.vlgmr.msra.gmra.mrb[8].mxu0 %vm5690_vm13, %v14973_v45 }
 0x572   : > { %8980 = vmatpush1.msra.mxu0 %v8889_v58  ;;  %v15324_v47 = vpop.permute.xlu1 %9401  ;;  %9043 = vmatprep.mubr.f32.mxu0 %v14810_v2 }
 0x573   : > { %v15327_v0 = vpop.permute.xlu0 %9413  ;;  %vm9503_vm0 = vcmp.eq.s32.totalorder %v13375_v39, %v15324_v47  ;;  %vm9505_vm3 = vcmp.eq.s32.totalorder %v13758_v9, %v15324_v47  ;;  %vm9504_vm5 = vcmp.eq.s32.totalorder %v13769_v10, %v15324_v47  ;;  %vm9507_vm9 = vcmp.eq.s32.totalorder %v13929_v11, %v15324_v47 }
 0x574   : > { %vm15340_vm7 = vmpackc.low %vm9503_vm0, %vm9494_vm4  ;;  %vm9506_vm12 = vcmp.eq.s32.totalorder %v13940_v12, %v15324_v47  ;;  %vm9509_vm1 = vcmp.eq.s32.totalorder %v14097_v13, %v15324_v47  ;;  %vm9497_vm0 = vcmp.eq.s32.totalorder %v13940_v12, %v15301_v30 }
 0x575   : > { %11631 = vmatmul.mubr.msk.f32.vlgmr.msra.gmra.mrb[10].mxu0 %vm5690_vm13, %v14973_v45  ;;  %vm15351_vm10 = vmpackc.low %vm9505_vm3, %vm9496_vm8  ;;  %vm9502_vm3 = vcmp.eq.s32.totalorder %v13368_v36, %v15324_v47 }
 0x576   : > { %v8880_v38 = vpop.permute.xlu1 %8879  ;;  %9114 = vmatprep.mubr.f32.mxu0 %v14810_v2  ;;  %v16975_v61 = vsel %vm15351_vm10, 4294967295, %v16974_v61  ;;  %vm15360_vm14 = vmpackc.low %vm9504_vm5, %vm9495_vm11  ;;  %vm9500_vm5 = vcmp.eq.s32.totalorder %v14097_v13, %v15301_v30 }
 0x577   : > { %v15348_v60 = vpop.permute.xlu0 %9419  ;;  %v8892_v22 = vsel %vm3467_vm6, %v8878_v55, %v8880_v38  ;;  %v16977_v62 = vsel %vm15360_vm14, 4294967295, %v16976_v62  ;;  %vm15370_vm2 = vmpackc.low %vm9507_vm9, %vm9498_vm15  ;;  %v8893_v1 = vsel %vm3467_vm6, %v8880_v38, %v8882_v52  ;;  %vm9493_vm9 = vcmp.eq.s32.totalorder %v13368_v36, %v15301_v30 }
 0x578   : > { %9050 = vmatprep.subr.mxu0 %v8892_v22  ;;  %v16979_v21 = vsel %vm15370_vm2, 4294967295, %v16978_v21  ;;  %vm15386_vm4 = vmpackc.low %vm9506_vm12, %vm9497_vm0  ;;  %vm9512_vm15 = vcmp.eq.s32.totalorder %v13375_v39, %v15314_v17  ;;  %v17023_v52 = vmov 0  ;;  %v17054_v55 = vmov 0 }
 0x579   : > { %9051 = vmatpush1.msra.mxu0 %v8891_v7  ;;  %16980 = vst [vmem:[#allocation3_spill] sm:$0xff] %v16979_v21  ;;  %v16982_v37 = vsel %vm15386_vm4, 4294967295, %v16981_v37  ;;  %vm15400_vm8 = vmpackc.low %vm9509_vm1, %vm9500_vm5  ;;  %v17064_v21 = vmov 1.0|1.0  }
 0x57a   : > { %11632 = vmatmul.mubr.msk.f32.vlgmr.msra.gmra.mrb[12].mxu0 %vm5690_vm13, %v14973_v45  ;;  %9121 = vmatprep.subr.mxu0 %v8894_v63  ;;  %v15379_v3 = vpop.permute.xlu1 %9407  ;;  %16983 = vst [vmem:[#allocation4_spill] sm:$0xff] %v16982_v37  ;;  %v16985_v6 = vsel %vm15400_vm8, 4294967295, %v16984_v6  ;;  %vm12700_vm12 = vmpackc.low %vm9502_vm3, %vm9493_vm9 }
 0x57b   : > { %v15392_v5 = vpop.permute.xlu0 %9425  ;;  %9122 = vmatpush1.msra.mxu0 %v8893_v1  ;;  %9185 = vmatprep.mubr.f32.mxu0 %v14810_v2  ;;  %vm9521_vm6 = vcmp.eq.s32.totalorder %v13375_v39, %v15379_v3  ;;  %16986 = vst [vmem:[#allocation5_spill] sm:$0xff] %v16985_v6  ;;  %vm9523_vm11 = vcmp.eq.s32.totalorder %v13758_v9, %v15379_v3  ;;  %v17033_v1 = vmov 0 }
 0x57c   : > { %12699 = vmatprep.subr.msk.bf16.mxu0 %vm15340_vm7, %v16949_v44  ;;  %vm12702_vm1 = vmpackc.low %vm9521_vm6, %vm9512_vm15  ;;  %vm9520_vm0 = vcmp.eq.s32.totalorder %v13368_v36, %v15379_v3  ;;  %vm9514_vm7 = vcmp.eq.s32.totalorder %v13758_v9, %v15314_v17  ;;  %vm9522_vm6 = vcmp.eq.s32.totalorder %v13769_v10, %v15379_v3 }
 0x57d   : > { %vm15426_vm5 = vmpackc.low %vm9523_vm11, %vm9514_vm7  ;;  %vm9513_vm7 = vcmp.eq.s32.totalorder %v13769_v10, %v15314_v17 }
 0x57e   : > { %11633 = vmatmul.mubr.msk.f32.vlgmr.msra.gmra.mrb[14].mxu0 %vm5690_vm13, %v14973_v45  ;;  %v15415_v2 = vpop.permute.xlu1 %9410  ;;  %v16988_v8 = vsel %vm15426_vm5, 4294967295, %v16987_v8  ;;  %vm9511_vm13 = vcmp.eq.s32.totalorder %v13368_v36, %v15314_v17 }
 0x57f   : > { %12701 = vmatpush1.bf16.msk.msra.mxu0 %vm12700_vm12, %v16949_v44  ;;  %v15422_v4 = vpop.permute.xlu0 %9431  ;;  %vm9530_vm3 = vcmp.eq.s32.totalorder %v13375_v39, %v15415_v2  ;;  %vm12704_vm9 = vmpackc.low %vm9520_vm0, %vm9511_vm13  ;;  %vm9539_vm12 = vcmp.eq.s32.totalorder %v13375_v39, %v15327_v0  ;;  %vm9529_vm11 = vcmp.eq.s32.totalorder %v13368_v36, %v15415_v2  ;;  %vm9532_vm13 = vcmp.eq.s32.totalorder %v13758_v9, %v15415_v2 }
 0x580   : > { %12703 = vmatprep.subr.msk.bf16.mxu0 %vm12702_vm1, %v16949_v44  ;;  %vm12706_vm15 = vmpackc.low %vm9539_vm12, %vm9530_vm3  ;;  %vm9538_vm3 = vcmp.eq.s32.totalorder %v13368_v36, %v15327_v0 }
 0x581   : > { %vm15448_vm0 = vmpackc.low %vm9522_vm6, %vm9513_vm7  ;;  %vm9541_vm7 = vcmp.eq.s32.totalorder %v13758_v9, %v15327_v0 }
 0x582   : > { %v15437_v45 = vpop.permute.xlu1 %9416  ;;  %v16990_v18 = vsel %vm15448_vm0, 4294967295, %v16989_v18  ;;  %vm12708_vm12 = vmpackc.low %vm9538_vm3, %vm9529_vm11  ;;  %vm9531_vm3 = vcmp.eq.s32.totalorder %v13769_v10, %v15415_v2  ;;  %vm9558_vm0 = vcmp.eq.s32.totalorder %v13769_v10, %v15348_v60 }
 0x583   : > { %12705 = vmatpush1.bf16.msk.msra.mxu0 %vm12704_vm9, %v16949_v44  ;;  %v15444_v15 = vpop.permute.xlu0 %9437  ;;  %vm9548_vm1 = vcmp.eq.s32.totalorder %v13375_v39, %v15437_v45  ;;  %vm9557_vm9 = vcmp.eq.s32.totalorder %v13375_v39, %v15348_v60  ;;  %vm9547_vm6 = vcmp.eq.s32.totalorder %v13368_v36, %v15437_v45  ;;  %vm15470_vm11 = vmpackc.low %vm9541_vm7, %vm9532_vm13  ;;  %vm9540_vm7 = vcmp.eq.s32.totalorder %v13769_v10, %v15327_v0 }
 0x584   : > { %12707 = vmatprep.subr.msk.bf16.mxu0 %vm12706_vm15, %v16949_v44  ;;  %vm12710_vm8 = vmpackc.low %vm9557_vm9, %vm9548_vm1  ;;  %v16992_v23 = vsel %vm15470_vm11, 4294967295, %v16991_v23  ;;  %vm9556_vm1 = vcmp.eq.s32.totalorder %v13368_v36, %v15348_v60  ;;  %vm9611_vm11 = vcmp.eq.s32.totalorder %v13375_v39, %v15444_v15 }
 0x585   : > { %vm12712_vm9 = vmpackc.low %vm9556_vm1, %vm9547_vm6  ;;  %vm9550_vm1 = vcmp.eq.s32.totalorder %v13758_v9, %v15437_v45 }
 0x586   : > { %v15459_v20 = vpop.permute.xlu1 %9422  ;;  %vm15492_vm6 = vmpackc.low %vm9540_vm7, %vm9531_vm3  ;;  %vm9510_vm7 = vcmp.eq.s32.totalorder %v13385_v43, %v15324_v47 }
 0x587   : > { %12709 = vmatpush1.bf16.msk.msra.mxu0 %vm12708_vm12, %v16949_v44  ;;  %v15466_v19 = vpop.permute.xlu0 %9443  ;;  %vm9566_vm15 = vcmp.eq.s32.totalorder %v13375_v39, %v15459_v20  ;;  %vm9575_vm12 = vcmp.eq.s32.totalorder %v13375_v39, %v15392_v5  ;;  %vm9565_vm13 = vcmp.eq.s32.totalorder %v13368_v36, %v15459_v20  ;;  %v16994_v25 = vsel %vm15492_vm6, 4294967295, %v16993_v25 }
 0x588   : > { %12711 = vmatprep.subr.msk.bf16.mxu0 %vm12710_vm8, %v16949_v44  ;;  %vm12714_vm4 = vmpackc.low %vm9575_vm12, %vm9566_vm15  ;;  %vm9574_vm15 = vcmp.eq.s32.totalorder %v13368_v36, %v15392_v5  ;;  %vm9628_vm14 = vcmp.eq.s32.totalorder %v13368_v36, %v15466_v19 }
 0x589   : > { %vm12716_vm12 = vmpackc.low %vm9574_vm15, %vm9565_vm13 }
 0x58a   : > { %v15481_v35 = vpop.permute.xlu1 %9428 }
 0x58b   : > { %12713 = vmatpush1.bf16.msk.msra.mxu0 %vm12712_vm9, %v16949_v44  ;;  %v15488_v26 = vpop.permute.xlu0 %9449  ;;  %vm9584_vm8 = vcmp.eq.s32.totalorder %v13375_v39, %v15481_v35  ;;  %vm9593_vm9 = vcmp.eq.s32.totalorder %v13375_v39, %v15422_v4  ;;  %vm9583_vm3 = vcmp.eq.s32.totalorder %v13368_v36, %v15481_v35 }
 0x58c   : > { %12715 = vmatprep.subr.msk.bf16.mxu0 %vm12714_vm4, %v16949_v44  ;;  %vm12718_vm2 = vmpackc.low %vm9593_vm9, %vm9584_vm8  ;;  %vm9559_vm4 = vcmp.eq.s32.totalorder %v13758_v9, %v15348_v60  ;;  %vm9592_vm8 = vcmp.eq.s32.totalorder %v13368_v36, %v15422_v4  ;;  %vm9501_vm9 = vcmp.eq.s32.totalorder %v13385_v43, %v15301_v30 }
 0x58d   : > { %vm15516_vm15 = vmpackc.low %vm9559_vm4, %vm9550_vm1 }
 0x58e   : > { %v15503_v27 = vpop.permute.xlu1 %9434  ;;  %v16996_v32 = vsel %vm15516_vm15, 4294967295, %v16995_v32  ;;  %vm12720_vm6 = vmpackc.low %vm9592_vm8, %vm9583_vm3  ;;  %vm9610_vm3 = vcmp.eq.s32.totalorder %v13368_v36, %v15444_v15  ;;  %vm9568_vm15 = vcmp.eq.s32.totalorder %v13758_v9, %v15459_v20 }
 0x58f   : > { %12717 = vmatpush1.bf16.msk.msra.mxu0 %vm12716_vm12, %v16949_v44  ;;  %v15512_v31 = vpop.permute.xlu0 %9455  ;;  %vm9602_vm13 = vcmp.eq.s32.totalorder %v13375_v39, %v15503_v27  ;;  %vm9549_vm12 = vcmp.eq.s32.totalorder %v13769_v10, %v15437_v45  ;;  %vm9601_vm1 = vcmp.eq.s32.totalorder %v13368_v36, %v15503_v27  ;;  %vm15531_vm4 = vmpackc.low %vm9510_vm7, %vm9501_vm9  ;;  %vm9519_vm9 = vcmp.eq.s32.totalorder %v13385_v43, %v15314_v17 }
 0x590   : > { %12719 = vmatprep.subr.msk.bf16.mxu0 %vm12718_vm2, %v16949_v44  ;;  %vm12722_vm2 = vmpackc.low %vm9611_vm11, %vm9602_vm13 }
 0x591   : > { %vm15550_vm11 = vmpackc.low %vm9558_vm0, %vm9549_vm12  ;;  %vm17001_vm0 = vcmp.eq.s32.totalorder %v13385_v43, %v15379_v3 }
 0x592   : > { %v15535_v42 = vpop.permute.xlu1 %9440  ;;  %v17000_v41 = vsel %vm15550_vm11, 4294967295, %v16999_v41  ;;  %vm12724_vm13 = vmpackc.low %vm9610_vm3, %vm9601_vm1  ;;  %vm9577_vm3 = vcmp.eq.s32.totalorder %v13758_v9, %v15392_v5  ;;  %vm9567_vm11 = vcmp.eq.s32.totalorder %v13769_v10, %v15459_v20 }
 0x593   : > { %12721 = vmatpush1.bf16.msk.msra.mxu0 %vm12720_vm6, %v16949_v44  ;;  %v15542_v46 = vpop.permute.xlu0 %9461  ;;  %vm9620_vm7 = vcmp.eq.s32.totalorder %v13375_v39, %v15535_v42  ;;  %vm9619_vm8 = vcmp.eq.s32.totalorder %v13368_v36, %v15535_v42  ;;  %vm9629_vm6 = vcmp.eq.s32.totalorder %v13375_v39, %v15466_v19  ;;  %vm15566_vm12 = vmpackc.low %vm17001_vm0, %vm9519_vm9  ;;  %vm9647_vm0 = vcmp.eq.s32.totalorder %v13375_v39, %v15488_v26 }
 0x594   : > { %12723 = vmatprep.subr.msk.bf16.mxu0 %vm12722_vm2, %v16949_v44  ;;  %vm12726_vm5 = vmpackc.low %vm9629_vm6, %vm9620_vm7  ;;  %vm9654_vm6 = vcmp.eq.s32.totalorder %v13385_v43, %v15488_v26  ;;  %vm9546_vm2 = vcmp.eq.s32.totalorder %v13385_v43, %v15327_v0 }
 0x595   : > { %vm15572_vm1 = vmpackc.low %vm9628_vm14, %vm9619_vm8 }
 0x596   : > { %v15570_v24 = vpop.permute.xlu1 %9446  ;;  %vm15589_vm9 = vmpackc.low %vm9577_vm3, %vm9568_vm15  ;;  %vm9646_vm3 = vcmp.eq.s32.totalorder %v13368_v36, %v15488_v26 }
 0x597   : > { %12725 = vmatpush1.bf16.msk.msra.mxu0 %vm12724_vm13, %v16949_v44  ;;  %vm9645_vm7 = vcmp.eq.s32.totalorder %v13385_v43, %v15570_v24  ;;  %vm9638_vm14 = vcmp.eq.s32.totalorder %v13375_v39, %v15570_v24  ;;  %vm9637_vm8 = vcmp.eq.s32.totalorder %v13368_v36, %v15570_v24  ;;  %v17007_v34 = vsel %vm15589_vm9, 4294967295, %v17006_v34  ;;  %v15593_v51 = vpop.permute.xlu0 %9467 }
 0x598   : > { %12727 = vmatprep.subr.msk.bf16.mxu0 %vm12726_vm5, %v16949_v44  ;;  %vm12954_vm13 = vmpackc.low %vm9654_vm6, %vm9645_vm7  ;;  %vm17008_vm9 = vcmp.eq.s32.totalorder %v13385_v43, %v15415_v2  ;;  %vm9586_vm6 = vcmp.eq.s32.totalorder %v13758_v9, %v15481_v35 }
 0x599   : > { %12955 = vmatprep.subr.msk.bf16.mxu1 %vm12954_vm13, %v16949_v44  ;;  %vm12730_vm15 = vmpackc.low %vm9647_vm0, %vm9638_vm14  ;;  %vm9576_vm14 = vcmp.eq.s32.totalorder %v13769_v10, %v15392_v5  ;;  %vm9665_vm0 = vcmp.eq.s32.totalorder %v13375_v39, %v15512_v31 }
 0x59a   : > { %vm15608_vm5 = vmpackc.low %vm9546_vm2, %vm17008_vm9  ;;  %12957 = vmatpush3.bf16.msk.msra.mxu1 %vm15531_vm4, %v16949_v44  ;;  %v15615_v49 = vpop.permute.xlu1 %9452  ;;  %vm9672_vm4 = vcmp.eq.s32.totalorder %v13385_v43, %v15512_v31 }
 0x59b   : > { %vm15617_vm7 = vmpackc.low %vm9646_vm3, %vm9637_vm8  ;;  %12729 = vmatpush1.bf16.msk.msra.mxu0 %vm15572_vm1, %v16949_v44  ;;  %vm9663_vm2 = vcmp.eq.s32.totalorder %v13385_v43, %v15615_v49  ;;  %vm9656_vm8 = vcmp.eq.s32.totalorder %v13375_v39, %v15615_v49  ;;  %vm9655_vm9 = vcmp.eq.s32.totalorder %v13368_v36, %v15615_v49  ;;  %vm9564_vm3 = vcmp.eq.s32.totalorder %v13385_v43, %v15348_v60  ;;  %v15664_v33 = vpop.permute.xlu0 %9473 }
 0x59c   : > { %vm15639_vm13 = vmpackc.low %vm9576_vm14, %vm9567_vm11  ;;  %12731 = vmatprep.subr.msk.bf16.mxu0 %vm12730_vm15, %v16949_v44  ;;  %vm9664_vm11 = vcmp.eq.s32.totalorder %v13368_v36, %v15512_v31  ;;  %vm17017_vm15 = vcmp.eq.s32.totalorder %v13385_v43, %v15437_v45 }
 0x59d   : > { %vm12958_vm1 = vmpackc.low %vm9672_vm4, %vm9663_vm2  ;;  %vm9585_vm4 = vcmp.eq.s32.totalorder %v13769_v10, %v15481_v35 }
 0x59e   : > { %12959 = vmatprep.subr.msk.bf16.mxu1 %vm12958_vm1, %v16949_v44  ;;  %vm15651_vm10 = vmpackc.low %vm9665_vm0, %vm9656_vm8  ;;  %v15669_v57 = vpop.permute.xlu1 %9458  ;;  %vm9595_vm8 = vcmp.eq.s32.totalorder %v13758_v9, %v15422_v4 }
 0x59f   : > { %vm15660_vm14 = vmpackc.low %vm9564_vm3, %vm17017_vm15  ;;  %12961 = vmatpush3.bf16.msk.msra.mxu1 %vm15566_vm12, %v16949_v44  ;;  %12733 = vmatpush1.bf16.msk.msra.mxu0 %vm15617_vm7, %v16949_v44  ;;  %vm9681_vm1 = vcmp.eq.s32.totalorder %v13385_v43, %v15669_v57  ;;  %vm9690_vm12 = vcmp.eq.s32.totalorder %v13385_v43, %v15542_v46  ;;  %v15688_v28 = vpop.f32.mrb[28].mxu1  ;;  %vm9673_vm0 = vcmp.eq.s32.totalorder %v13368_v36, %v15669_v57  ;;  %v15755_v40 = vpop.permute.xlu0 %9479 }
 0x5a0   : > { %vm15671_vm2 = vmpackc.low %vm9664_vm11, %vm9655_vm9  ;;  %vm9674_vm9 = vcmp.eq.s32.totalorder %v13375_v39, %v15669_v57  ;;  %17022 = vst [vmem:[#allocation6_spill] sm:$0xff] %v15688_v28  ;;  %12735 = vmatprep.subr.msk.bf16.mxu0 %vm15651_vm10, %v16949_v44  ;;  %vm9683_vm11 = vcmp.eq.s32.totalorder %v13375_v39, %v15542_v46  ;;  %v12352_v58 = vpop.f32.mrb[29].mxu1  ;;  %vm9582_vm15 = vcmp.eq.s32.totalorder %v13385_v43, %v15392_v5  ;;  %v17085_v28 = vmov 0 }
 0x5a1   : > { %vm15695_vm3 = vmpackc.low %vm9595_vm8, %vm9586_vm6  ;;  %vm9682_vm10 = vcmp.eq.s32.totalorder %v13368_v36, %v15542_v46  ;;  %vm17027_vm8 = vcmp.eq.s32.totalorder %v13385_v43, %v15459_v20 }
 0x5a2   : > { %v17024_v52 = vsel %vm15695_vm3, 4294967295, %v17023_v52  ;;  %vm12962_vm7 = vmpackc.low %vm9690_vm12, %vm9681_vm1  ;;  %v15725_v22 = vpop.permute.xlu1 %9464  ;;  %vm9622_vm3 = vcmp.eq.s32.totalorder %v13758_v9, %v15535_v42 }
 0x5a3   : > { %12963 = vmatprep.subr.msk.bf16.mxu1 %vm12962_vm7, %v16949_v44  ;;  %vm15709_vm6 = vmpackc.low %vm9683_vm11, %vm9674_vm9  ;;  %vm9591_vm9 = vcmp.eq.s32.totalorder %v13385_v43, %v15481_v35  ;;  %vm9594_vm7 = vcmp.eq.s32.totalorder %v13769_v10, %v15422_v4  ;;  %12737 = vmatpush1.bf16.msk.msra.mxu0 %vm15671_vm2, %v16949_v44  ;;  %vm9699_vm11 = vcmp.eq.s32.totalorder %v13385_v43, %v15725_v22  ;;  %v15744_v63 = vpop.f32.mrb[30].mxu1 }
 0x5a4   : > { %vm15718_vm1 = vmpackc.low %vm9582_vm15, %vm17027_vm8  ;;  %12965 = vmatpush3.bf16.msk.msra.mxu1 %vm15608_vm5, %v16949_v44  ;;  %vm9708_vm5 = vcmp.eq.s32.totalorder %v13385_v43, %v15593_v51  ;;  %17032 = vst [vmem:[#allocation7_spill] sm:$0xff] %v15744_v63  ;;  %12739 = vmatprep.subr.msk.bf16.mxu0 %vm15709_vm6, %v16949_v44  ;;  %vm9701_vm8 = vcmp.eq.s32.totalorder %v13375_v39, %v15593_v51  ;;  %v12357_v48 = vpop.f32.mrb[31].mxu1  ;;  %v17082_v63 = vmov 0 }
 0x5a5   : > { %vm15727_vm12 = vmpackc.low %vm9682_vm10, %vm9673_vm0  ;;  %vm9692_vm0 = vcmp.eq.s32.totalorder %v13375_v39, %v15725_v22  ;;  %vm9600_vm15 = vcmp.eq.s32.totalorder %v13385_v43, %v15422_v4  ;;  %vm9700_vm6 = vcmp.eq.s32.totalorder %v13368_v36, %v15593_v51  ;;  %v15839_v48 = vpop.permute.xlu0 %9485 }
 0x5a6   : > { %vm15751_vm10 = vmpackc.low %vm9594_vm7, %vm9585_vm4  ;;  %vm9604_vm4 = vcmp.eq.s32.totalorder %v13758_v9, %v15503_v27  ;;  %v15783_v54 = vpop.permute.xlu1 %9470 }
 0x5a7   : > { %v17034_v1 = vsel %vm15751_vm10, 4294967295, %v17033_v1  ;;  %vm12966_vm2 = vmpackc.low %vm9708_vm5, %vm9699_vm11  ;;  %vm17039_vm5 = vcmp.eq.s32.totalorder %v13368_v36, %v15725_v22  ;;  %12741 = vmatpush1.bf16.msk.msra.mxu0 %vm15727_vm12, %v16949_v44  ;;  %v15805_v56 = vpop.f32.mrb[32].mxu1  ;;  %vm9618_vm10 = vcmp.eq.s32.totalorder %v13385_v43, %v15444_v15 }
 0x5a8   : > { %12967 = vmatprep.subr.msk.bf16.mxu1 %vm12966_vm2, %v16949_v44  ;;  %vm15767_vm7 = vmpackc.low %vm9701_vm8, %vm9692_vm0  ;;  %vm9710_vm8 = vcmp.eq.s32.totalorder %v13375_v39, %v15783_v54  ;;  %17042 = vst [vmem:[#allocation8_spill] sm:$0xff] %v15805_v56  ;;  %vm9719_vm2 = vcmp.eq.s32.totalorder %v13375_v39, %v15664_v33  ;;  %v12362_v58 = vpop.f32.mrb[33].mxu1  ;;  %v17190_v56 = vmov 0 }
 0x5a9   : > { %vm15776_vm11 = vmpackc.low %vm9600_vm15, %vm9591_vm9  ;;  %12969 = vmatpush3.bf16.msk.msra.mxu1 %vm15660_vm14, %v16949_v44  ;;  %vm9613_vm9 = vcmp.eq.s32.totalorder %v13758_v9, %v15444_v15  ;;  %vm9717_vm14 = vcmp.eq.s32.totalorder %v13385_v43, %v15783_v54  ;;  %vm9726_vm15 = vcmp.eq.s32.totalorder %v13385_v43, %v15664_v33  ;;  %12743 = vmatprep.subr.msk.bf16.mxu0 %vm15767_vm7, %v16949_v44  ;;  %v17062_v58 = vmov 0 }
 0x5aa   : > { %vm15788_vm0 = vmpackc.low %vm9700_vm6, %vm17039_vm5  ;;  %vm9603_vm6 = vcmp.eq.s32.totalorder %v13769_v10, %v15503_v27  ;;  %vm9718_vm7 = vcmp.eq.s32.totalorder %v13368_v36, %v15664_v33  ;;  %v15844_v50 = vpop.permute.xlu1 %9476 }
 0x5ab   : > { %vm15812_vm5 = vmpackc.low %vm9613_vm9, %vm9604_vm4  ;;  %vm17047_vm9 = vcmp.eq.s32.totalorder %v13385_v43, %v15503_v27  ;;  %12745 = vmatpush1.bf16.msk.msra.mxu0 %vm15788_vm0, %v16949_v44  ;;  %v15866_v59 = vpop.f32.mrb[34].mxu1 }
 0x5ac   : > { %v17044_v29 = vsel %vm15812_vm5, 4294967295, %v17043_v29  ;;  %vm12970_vm12 = vmpackc.low %vm9726_vm15, %vm9717_vm14  ;;  %17053 = vst [vmem:[#allocation9_spill] sm:$0xff] %v15866_v59  ;;  %v12367_v6 = vpop.f32.mrb[35].mxu1  ;;  %vm9636_vm5 = vcmp.eq.s32.totalorder %v13385_v43, %v15466_v19 }
 0x5ad   : > { %12971 = vmatprep.subr.msk.bf16.mxu1 %vm12970_vm12, %v16949_v44  ;;  %vm15826_vm4 = vmpackc.low %vm9719_vm2, %vm9710_vm8  ;;  %vm17050_vm2 = vcmp.eq.s32.totalorder %v13368_v36, %v15783_v54  ;;  %vm9612_vm8 = vcmp.eq.s32.totalorder %v13769_v10, %v15444_v15  ;;  %vm9744_vm12 = vcmp.eq.s32.totalorder %v13385_v43, %v15755_v40 }
 0x5ae   : > { %vm15835_vm14 = vmpackc.low %vm9618_vm10, %vm17047_vm9  ;;  %12973 = vmatpush3.bf16.msk.msra.mxu1 %vm15718_vm1, %v16949_v44  ;;  %vm9735_vm1 = vcmp.eq.s32.totalorder %v13385_v43, %v15844_v50  ;;  %vm9727_vm9 = vcmp.eq.s32.totalorder %v13368_v36, %v15844_v50  ;;  %12747 = vmatprep.subr.msk.bf16.mxu0 %vm15826_vm4, %v16949_v44  ;;  %vm9737_vm10 = vcmp.eq.s32.totalorder %v13375_v39, %v15755_v40  ;;  %v15899_v6 = vpop.permute.xlu1 %9482 }
 0x5af   : > { %vm15849_vm15 = vmpackc.low %vm9718_vm7, %vm17050_vm2  ;;  %vm9728_vm7 = vcmp.eq.s32.totalorder %v13375_v39, %v15844_v50  ;;  %vm17056_vm4 = vcmp.eq.s32.totalorder %v13385_v43, %v15535_v42  ;;  %v15914_v53 = vpop.f32.mrb[36].mxu1 }
 0x5b0   : > { %vm15873_vm2 = vmpackc.low %vm9612_vm8, %vm9603_vm6  ;;  %vm9736_vm8 = vcmp.eq.s32.totalorder %v13368_v36, %v15755_v40  ;;  %12749 = vmatpush1.bf16.msk.msra.mxu0 %vm15849_vm15, %v16949_v44  ;;  %17061 = vst [vmem:[#allocation10_spill] sm:$0xff] %v15914_v53  ;;  %v12372_v53 = vpop.f32.mrb[37].mxu1 }
 0x5b1   : > { %v17055_v55 = vsel %vm15873_vm2, 4294967295, %v17054_v55  ;;  %vm12974_vm0 = vmpackc.low %vm9744_vm12, %vm9735_vm1 }
 0x5b2   : > { %12975 = vmatprep.subr.msk.bf16.mxu1 %vm12974_vm0, %v16949_v44  ;;  %vm12750_vm6 = vmpackc.low %vm9737_vm10, %vm9728_vm7  ;;  %vm9631_vm10 = vcmp.eq.s32.totalorder %v13758_v9, %v15466_v19  ;;  %vm9762_vm7 = vcmp.eq.s32.totalorder %v13385_v43, %v15839_v48  ;;  %v15940_v59 = vpop.permute.xlu1 %9488 }
 0x5b3   : > { %vm15892_vm1 = vmpackc.low %vm9636_vm5, %vm17056_vm4  ;;  %12977 = vmatpush3.bf16.msk.msra.mxu1 %vm15776_vm11, %v16949_v44  ;;  %vm9753_vm5 = vcmp.eq.s32.totalorder %v13385_v43, %v15899_v6  ;;  %vm9746_vm11 = vcmp.eq.s32.totalorder %v13375_v39, %v15899_v6  ;;  %v15927_v44 = vpop.permute.xlu0 %9491  ;;  %12751 = vmatprep.subr.msk.bf16.mxu0 %vm12750_vm6, %v17064_v21  ;;  %vm9621_vm4 = vcmp.eq.s32.totalorder %v13769_v10, %v15535_v42  ;;  %v15951_v53 = vpop.f32.mrb[38].mxu1 }
 0x5b4   : > { %vm15901_vm12 = vmpackc.low %vm9736_vm8, %vm9727_vm9  ;;  %vm9745_vm9 = vcmp.eq.s32.totalorder %v13368_v36, %v15899_v6  ;;  %vm9755_vm8 = vcmp.eq.s32.totalorder %v13375_v39, %v15839_v48  ;;  %17067 = vst [vmem:[#allocation11_spill] sm:$0xff] %v15951_v53  ;;  %v12377_v37 = vpop.f32.mrb[39].mxu1  ;;  %v17228_v53 = vmov 0 }
 0x5b5   : > { %vm15923_vm0 = vmpackc.low %vm9631_vm10, %vm9622_vm3  ;;  %vm9754_vm3 = vcmp.eq.s32.totalorder %v13368_v36, %v15839_v48  ;;  %vm9630_vm10 = vcmp.eq.s32.totalorder %v13769_v10, %v15466_v19  ;;  %12753 = vmatpush1.bf16.msk.msra.mxu0 %vm15901_vm12, %v17064_v21  ;;  %v17188_v37 = vmov 0 }
 0x5b6   : > { %v17063_v58 = vsel %vm15923_vm0, 4294967295, %v17062_v58  ;;  %vm12978_vm15 = vmpackc.low %vm9762_vm7, %vm9753_vm5  ;;  %vm9771_vm5 = vcmp.eq.s32.totalorder %v13385_v43, %v15940_v59  ;;  %vm9764_vm7 = vcmp.eq.s32.totalorder %v13375_v39, %v15940_v59  ;;  %vm9772_vm0 = vcmp.eq.s32.totalorder %v13368_v36, %v15927_v44 }
 0x5b7   : > { %12979 = vmatprep.subr.msk.bf16.mxu1 %vm12978_vm15, %v17064_v21  ;;  %vm12754_vm2 = vmpackc.low %vm9755_vm8, %vm9746_vm11  ;;  %vm9763_vm11 = vcmp.eq.s32.totalorder %v13368_v36, %v15940_v59  ;;  %vm9773_vm15 = vcmp.eq.s32.totalorder %v13375_v39, %v15927_v44  ;;  %vm9640_vm8 = vcmp.eq.s32.totalorder %v13758_v9, %v15570_v24  ;;  %v15989_v36 = vpop.f32.mrb[40].mxu1  ;;  %v9275_v39 = vpop.permute.xlu1 %9274 }
 0x5b8   : > { %12981 = vmatpush3.bf16.msk.msra.mxu1 %vm15835_vm14, %v17064_v21  ;;  %vm15942_vm6 = vmpackc.low %vm9754_vm3, %vm9745_vm9  ;;  %vm9780_vm14 = vcmp.eq.s32.totalorder %v13385_v43, %v15927_v44  ;;  %12755 = vmatprep.subr.msk.bf16.mxu0 %vm12754_vm2, %v17064_v21  ;;  %17072 = vst [vmem:[#allocation12_spill] sm:$0xff] %v15989_v36  ;;  %v16000_v38 = vpop.f32.mrb[41].mxu1  ;;  %v17087_v43 = vmov 0 }
 0x5b9   : > { %vm15961_vm9 = vmpackc.low %vm9630_vm10, %vm9621_vm4  ;;  %vm9639_vm4 = vcmp.eq.s32.totalorder %v13769_v10, %v15570_v24  ;;  %vm9649_vm10 = vcmp.eq.s32.totalorder %v13758_v9, %v15488_v26  ;;  %12757 = vmatpush1.bf16.msk.msra.mxu0 %vm15942_vm6, %v17064_v21  ;;  %17075 = vst [vmem:[#allocation13_spill] sm:$0xff] %v16000_v38  ;;  %vm9667_vm6 = vcmp.eq.s32.totalorder %v13758_v9, %v15512_v31 }
 0x5ba   : > { %vm12982_vm12 = vmpackc.low %vm9780_vm14, %vm9771_vm5  ;;  %vm9658_vm5 = vcmp.eq.s32.totalorder %v13758_v9, %v15615_v49  ;;  %10705 = vmatprep.mubr.f32.mxu1 %v16000_v38  ;;  %10421 = vmatprep.mubr.f32.mxu0 %v16000_v38 }
 0x5bb   : > { %12983 = vmatprep.subr.msk.bf16.mxu1 %vm12982_vm12, %v17064_v21  ;;  %vm12758_vm3 = vmpackc.low %vm9773_vm15, %vm9764_vm7  ;;  %vm9666_vm15 = vcmp.eq.s32.totalorder %v13769_v10, %v15512_v31 }
 0x5bc   : > { %12985 = vmatpush3.bf16.msk.msra.mxu1 %vm15892_vm1, %v17064_v21  ;;  %vm15978_vm2 = vmpackc.low %vm9772_vm0, %vm9763_vm11  ;;  %vm9648_vm1 = vcmp.eq.s32.totalorder %v13769_v10, %v15488_v26  ;;  %vm9657_vm0 = vcmp.eq.s32.totalorder %v13769_v10, %v15615_v49  ;;  %12759 = vmatprep.subr.msk.bf16.mxu0 %vm12758_vm3, %v17064_v21  ;;  %vm9676_vm11 = vcmp.eq.s32.totalorder %v13758_v9, %v15669_v57 }
 0x5bd   : > { %vm15991_vm14 = vmpackc.low %vm9649_vm10, %vm9640_vm8  ;;  %vm9675_vm8 = vcmp.eq.s32.totalorder %v13769_v10, %v15669_v57  ;;  %vm9694_vm10 = vcmp.eq.s32.totalorder %v13758_v9, %v15725_v22  ;;  %12761 = vmatpush1.bf16.msk.msra.mxu0 %vm15978_vm2, %v17064_v21  ;;  %vm9703_vm2 = vcmp.eq.s32.totalorder %v13758_v9, %v15593_v51 }
 0x5be   : > { %vm16002_vm7 = vmpackc.low %vm9648_vm1, %vm9639_vm4  ;;  %vm9685_vm4 = vcmp.eq.s32.totalorder %v13758_v9, %v15542_v46  ;;  %vm9684_vm1 = vcmp.eq.s32.totalorder %v13769_v10, %v15542_v46 }
 0x5bf   : > { %vm16012_vm12 = vmpackc.low %vm9667_vm6, %vm9658_vm5  ;;  %10706 = vmatmul.mubr.f32.vlgmr.msra.gmra.mrb[42].mxu1 %v15989_v36  ;;  %vm17084_vm6 = vnez %v16975_v61  ;;  %v17090_v61 = vmov 0 }
 0x5c0   : > { %vm16021_vm3 = vmpackc.low %vm9666_vm15, %vm9657_vm0  ;;  %vm9693_vm0 = vcmp.eq.s32.totalorder %v13769_v10, %v15725_v22  ;;  %12763 = vmatprep.subr.msk.bf16.mxu0 %vm17084_vm6, %v17064_v21  ;;  %vm9711_vm6 = vcmp.eq.s32.totalorder %v13769_v10, %v15783_v54  ;;  %10422 = vmatmul.mubr.f32.vlgmr.msra.gmra.mrb[8].mxu0 %v15989_v36  ;;  %v17096_v36 = vmov 0 }
 0x5c1   : > { %vm16032_vm5 = vmpackc.low %vm9685_vm4, %vm9676_vm11  ;;  %vm9712_vm11 = vcmp.eq.s32.totalorder %v13758_v9, %v15783_v54  ;;  %10492 = vmatprep.mubr.f32.mxu0 %v16000_v38  ;;  %v17104_v38 = vmov 0 }
 0x5c2   : > { %v17083_v63 = vsel %vm16032_vm5, 4294967295, %v17082_v63  ;;  %vm16043_vm15 = vmpackc.low %vm9684_vm1, %vm9675_vm8  ;;  %vm9702_vm5 = vcmp.eq.s32.totalorder %v13769_v10, %v15593_v51  ;;  %vm9721_vm1 = vcmp.eq.s32.totalorder %v13758_v9, %v15664_v33 }
 0x5c3   : > { %v17086_v28 = vsel %vm16043_vm15, 4294967295, %v17085_v28  ;;  %vm16051_vm4 = vmpackc.low %vm9703_vm2, %vm9694_vm10  ;;  %vm9730_vm10 = vcmp.eq.s32.totalorder %v13758_v9, %v15844_v50  ;;  %vm17092_vm2 = vnez %v16977_v62  ;;  %v17098_v62 = vmov 0 }
 0x5c4   : > { %v17088_v43 = vsel %vm16051_vm4, 4294967295, %v17087_v43  ;;  %vm16060_vm8 = vmpackc.low %vm9702_vm5, %vm9693_vm0  ;;  %12765 = vmatpush1.bf16.msk.msra.mxu0 %vm17092_vm2, %v17064_v21  ;;  %vm9720_vm5 = vcmp.eq.s32.totalorder %v13769_v10, %v15664_v33  ;;  %vm9729_vm0 = vcmp.eq.s32.totalorder %v13769_v10, %v15844_v50 }
 0x5c5   : > { %17089 = vst [vmem:[#allocation14_spill] sm:$0xff] %v17088_v43  ;;  %v17091_v61 = vsel %vm16060_vm8, 4294967295, %v17090_v61  ;;  %vm16072_vm4 = vmpackc.low %vm9721_vm1, %vm9712_vm11  ;;  %v17093_v43 = vmov 0  ;;  %vm17095_vm8 = vnez %v16988_v8  ;;  %vm9739_vm11 = vcmp.eq.s32.totalorder %v13758_v9, %v15755_v40 }
 0x5c6   : > { %v17094_v43 = vsel %vm16072_vm4, 4294967295, %v17093_v43  ;;  %12767 = vmatprep.subr.msk.bf16.mxu0 %vm17095_vm8, %v17064_v21  ;;  %vm16083_vm15 = vmpackc.low %vm9720_vm5, %vm9711_vm6  ;;  %vm9748_vm1 = vcmp.eq.s32.totalorder %v13758_v9, %v15899_v6  ;;  %vm9738_vm4 = vcmp.eq.s32.totalorder %v13769_v10, %v15755_v40  ;;  %vm9747_vm8 = vcmp.eq.s32.totalorder %v13769_v10, %v15899_v6 }
 0x5c7   : > { %v17097_v36 = vsel %vm16083_vm15, 4294967295, %v17096_v36  ;;  %vm16091_vm2 = vmpackc.low %vm9739_vm11, %vm9730_vm10  ;;  %v17100_v8 = vmov 0  ;;  %vm9757_vm5 = vcmp.eq.s32.totalorder %v13758_v9, %v15839_v48  ;;  %vm9766_vm15 = vcmp.eq.s32.totalorder %v13758_v9, %v15940_v59 }
 0x5c8   : > { %v17099_v62 = vsel %vm16091_vm2, 4294967295, %v17098_v62  ;;  %vm16099_vm6 = vmpackc.low %vm9738_vm4, %vm9729_vm0  ;;  %vm17103_vm10 = vnez %v16990_v18  ;;  %vm9756_vm4 = vcmp.eq.s32.totalorder %v13769_v10, %v15839_v48  ;;  %vm9765_vm0 = vcmp.eq.s32.totalorder %v13769_v10, %v15940_v59 }
 0x5c9   : > { %v17101_v8 = vsel %vm16099_vm6, 4294967295, %v17100_v8  ;;  %12769 = vmatpush1.bf16.msk.msra.mxu0 %vm17103_vm10, %v17064_v21  ;;  %vm16110_vm11 = vmpackc.low %vm9757_vm5, %vm9748_vm1  ;;  %vm17106_vm6 = vnez %v16992_v23  ;;  %vm9775_vm1 = vcmp.eq.s32.totalorder %v13758_v9, %v15927_v44  ;;  %vm9525_vm5 = vcmp.eq.s32.totalorder %v13929_v11, %v15379_v3 }
 0x5ca   : > { %17102 = vst [vmem:[#allocation15_spill] sm:$0xff] %v17101_v8  ;;  %v17105_v38 = vsel %vm16110_vm11, 4294967295, %v17104_v38  ;;  %12771 = vmatprep.subr.msk.bf16.mxu0 %vm17106_vm6, %v17064_v21  ;;  %vm16121_vm2 = vmpackc.low %vm9756_vm4, %vm9747_vm8  ;;  %v17107_v8 = vmov 0  ;;  %v17109_v18 = vmov 0  ;;  %vm9774_vm11 = vcmp.eq.s32.totalorder %v13769_v10, %v15927_v44  ;;  %v16159_v10 = vpop.f32.mrb[16].mxu0 }
 0x5cb   : > { %v17108_v8 = vsel %vm16121_vm2, 4294967295, %v17107_v8  ;;  %vm16129_vm10 = vmpackc.low %vm9775_vm1, %vm9766_vm15  ;;  %vm9524_vm6 = vcmp.eq.s32.totalorder %v13940_v12, %v15379_v3  ;;  %v17111_v23 = vmov 0  ;;  %vm9516_vm4 = vcmp.eq.s32.totalorder %v13929_v11, %v15314_v17 }
 0x5cc   : > { %v17110_v18 = vsel %vm16129_vm10, 4294967295, %v17109_v18  ;;  %vm16137_vm8 = vmpackc.low %vm9774_vm11, %vm9765_vm0  ;;  %vm9534_vm2 = vcmp.eq.s32.totalorder %v13929_v11, %v15415_v2  ;;  %vm17114_vm15 = vnez %v16994_v25  ;;  %v17115_v9 = vmov 0  ;;  %v12337_v25 = vpop.f32.mrb[17].mxu0 }
 0x5cd   : > { %v17112_v23 = vsel %vm16137_vm8, 4294967295, %v17111_v23  ;;  %12773 = vmatpush1.bf16.msk.msra.mxu0 %vm17114_vm15, %v17064_v21  ;;  %vm16148_vm1 = vmpackc.low %vm9525_vm5, %vm9516_vm4  ;;  %vm9515_vm11 = vcmp.eq.s32.totalorder %v13940_v12, %v15314_v17  ;;  %vm9533_vm0 = vcmp.eq.s32.totalorder %v13940_v12, %v15415_v2  ;;  %vm17118_vm8 = vnez %v16996_v32 }
 0x5ce   : > { %17113 = vst [vmem:[#allocation16_spill] sm:$0xff] %v17112_v23  ;;  %v17116_v9 = vsel %vm16148_vm1, 4294967295, %v17115_v9  ;;  %12775 = vmatprep.subr.msk.bf16.mxu0 %vm17118_vm8, %v17064_v21  ;;  %vm16161_vm10 = vmpackc.low %vm9524_vm6, %vm9515_vm11  ;;  %v17119_v23 = vmov 0  ;;  %vm9543_vm5 = vcmp.eq.s32.totalorder %v13929_v11, %v15327_v0  ;;  %vm9552_vm4 = vcmp.eq.s32.totalorder %v13929_v11, %v15437_v45 }
 0x5cf   : > { %17117 = vst [vmem:[#allocation17_spill] sm:$0xff] %v17116_v9  ;;  %v17120_v23 = vsel %vm16161_vm10, 4294967295, %v17119_v23  ;;  %vm16169_vm15 = vmpackc.low %vm9543_vm5, %vm9534_vm2  ;;  %v17121_v9 = vmov 0  ;;  %vm9542_vm8 = vcmp.eq.s32.totalorder %v13940_v12, %v15327_v0  ;;  %vm9551_vm6 = vcmp.eq.s32.totalorder %v13940_v12, %v15437_v45 }
 0x5d0   : > { %v17122_v9 = vsel %vm16169_vm15, 4294967295, %v17121_v9  ;;  %vm16177_vm11 = vmpackc.low %vm9542_vm8, %vm9533_vm0  ;;  %v17123_v32 = vmov 0  ;;  %vm9561_vm10 = vcmp.eq.s32.totalorder %v13929_v11, %v15348_v60  ;;  %vm9570_vm1 = vcmp.eq.s32.totalorder %v13929_v11, %v15459_v20 }
 0x5d1   : > { %v17124_v32 = vsel %vm16177_vm11, 4294967295, %v17123_v32  ;;  %vm17126_vm2 = vnez %v17000_v41  ;;  %vm16188_vm5 = vmpackc.low %vm9561_vm10, %vm9552_vm4  ;;  %v17127_v25 = vmov 0  ;;  %vm9560_vm0 = vcmp.eq.s32.totalorder %v13940_v12, %v15348_v60 }
 0x5d2   : > { %17125 = vst [vmem:[#allocation18_spill] sm:$0xff] %v17124_v32  ;;  %12777 = vmatpush1.bf16.msk.msra.mxu0 %vm17126_vm2, %v17064_v21  ;;  %v17128_v25 = vsel %vm16188_vm5, 4294967295, %v17127_v25  ;;  %vm9569_vm8 = vcmp.eq.s32.totalorder %v13940_v12, %v15459_v20  ;;  %vm17129_vm11 = vnez %v17007_v34  ;;  %vm16199_vm15 = vmpackc.low %vm9560_vm0, %vm9551_vm6  ;;  %v17130_v32 = vmov 0 }
 0x5d3   : > { %12779 = vmatprep.subr.msk.bf16.mxu0 %vm17129_vm11, %v17064_v21  ;;  %v17131_v32 = vsel %vm16199_vm15, 4294967295, %v17130_v32  ;;  %vm9579_vm10 = vcmp.eq.s32.totalorder %v13929_v11, %v15392_v5  ;;  %vm9588_vm4 = vcmp.eq.s32.totalorder %v13929_v11, %v15481_v35  ;;  %v17132_v41 = vmov 0 }
 0x5d4   : > { %vm16207_vm2 = vmpackc.low %vm9579_vm10, %vm9570_vm1  ;;  %vm9578_vm5 = vcmp.eq.s32.totalorder %v13940_v12, %v15392_v5  ;;  %vm9587_vm11 = vcmp.eq.s32.totalorder %v13940_v12, %v15481_v35  ;;  %v17135_v34 = vmov 0  ;;  %vm9597_vm0 = vcmp.eq.s32.totalorder %v13929_v11, %v15422_v4 }
 0x5d5   : > { %v17133_v41 = vsel %vm16207_vm2, 4294967295, %v17132_v41  ;;  %vm16215_vm6 = vmpackc.low %vm9578_vm5, %vm9569_vm8  ;;  %vm9606_vm15 = vcmp.eq.s32.totalorder %v13929_v11, %v15503_v27  ;;  %vm9596_vm5 = vcmp.eq.s32.totalorder %v13940_v12, %v15422_v4  ;;  %vm9605_vm8 = vcmp.eq.s32.totalorder %v13940_v12, %v15503_v27 }
 0x5d6   : > { %17134 = vst [vmem:[#allocation19_spill] sm:$0xff] %v17133_v41  ;;  %v17136_v34 = vsel %vm16215_vm6, 4294967295, %v17135_v34  ;;  %12781 = vmatpush1.bf16.msk.msra.mxu0 %vm15639_vm13, %v17064_v21  ;;  %vm16226_vm1 = vmpackc.low %vm9597_vm0, %vm9588_vm4  ;;  %v17138_v41 = vmov 0  ;;  %vm17140_vm10 = vnez %v17024_v52  ;;  %vm9615_vm13 = vcmp.eq.s32.totalorder %v13929_v11, %v15444_v15 }
 0x5d7   : > { %17137 = vst [vmem:[#allocation20_spill] sm:$0xff] %v17136_v34  ;;  %v17139_v41 = vsel %vm16226_vm1, 4294967295, %v17138_v41  ;;  %12783 = vmatprep.subr.msk.bf16.mxu0 %vm17140_vm10, %v17064_v21  ;;  %vm16237_vm6 = vmpackc.low %vm9596_vm5, %vm9587_vm11  ;;  %v17141_v34 = vmov 0  ;;  %vm9624_vm4 = vcmp.eq.s32.totalorder %v13929_v11, %v15535_v42  ;;  %vm9614_vm1 = vcmp.eq.s32.totalorder %v13940_v12, %v15444_v15 }
 0x5d8   : > { %v17142_v34 = vsel %vm16237_vm6, 4294967295, %v17141_v34  ;;  %vm16245_vm0 = vmpackc.low %vm9615_vm13, %vm9606_vm15  ;;  %vm9623_vm10 = vcmp.eq.s32.totalorder %v13940_v12, %v15535_v42  ;;  %v17146_v52 = vmov 0  ;;  %vm9633_vm5 = vcmp.eq.s32.totalorder %v13929_v11, %v15466_v19 }
 0x5d9   : > { %v17144_v16 = vsel %vm16245_vm0, 4294967295, %v17143_v16  ;;  %vm16253_vm11 = vmpackc.low %vm9614_vm1, %vm9605_vm8  ;;  %vm9642_vm6 = vcmp.eq.s32.totalorder %v13929_v11, %v15570_v24  ;;  %vm17149_vm15 = vnez %v17034_v1  ;;  %vm9632_vm1 = vcmp.eq.s32.totalorder %v13940_v12, %v15466_v19 }
 0x5da   : > { %17145 = vst [vmem:[#allocation21_spill] sm:$0xff] %v17144_v16  ;;  %v17147_v52 = vsel %vm16253_vm11, 4294967295, %v17146_v52  ;;  %12785 = vmatpush1.bf16.msk.msra.mxu0 %vm17149_vm15, %v17064_v21  ;;  %vm16264_vm13 = vmpackc.low %vm9633_vm5, %vm9624_vm4  ;;  %v17150_v16 = vmov 0  ;;  %vm9641_vm8 = vcmp.eq.s32.totalorder %v13940_v12, %v15570_v24  ;;  %vm17152_vm11 = vnez %v17044_v29 }
 0x5db   : > { %17148 = vst [vmem:[#allocation22_spill] sm:$0xff] %v17147_v52  ;;  %v17151_v16 = vsel %vm16264_vm13, 4294967295, %v17150_v16  ;;  %12787 = vmatprep.subr.msk.bf16.mxu0 %vm17152_vm11, %v17064_v21  ;;  %vm16275_vm0 = vmpackc.low %vm9632_vm1, %vm9623_vm10  ;;  %v17153_v52 = vmov 0  ;;  %vm9651_vm4 = vcmp.eq.s32.totalorder %v13929_v11, %v15488_v26  ;;  %vm9660_vm5 = vcmp.eq.s32.totalorder %v13929_v11, %v15615_v49 }
 0x5dc   : > { %v17154_v52 = vsel %vm16275_vm0, 4294967295, %v17153_v52  ;;  %vm16283_vm15 = vmpackc.low %vm9651_vm4, %vm9642_vm6  ;;  %v17155_v1 = vmov 0  ;;  %vm9650_vm13 = vcmp.eq.s32.totalorder %v13940_v12, %v15488_v26  ;;  %vm9659_vm11 = vcmp.eq.s32.totalorder %v13940_v12, %v15615_v49 }
 0x5dd   : > { %v17156_v1 = vsel %vm16283_vm15, 4294967295, %v17155_v1  ;;  %vm16291_vm10 = vmpackc.low %vm9650_vm13, %vm9641_vm8  ;;  %v17158_v29 = vmov 0  ;;  %vm9669_vm1 = vcmp.eq.s32.totalorder %v13929_v11, %v15512_v31  ;;  %vm9678_vm0 = vcmp.eq.s32.totalorder %v13929_v11, %v15669_v57 }
 0x5de   : > { %17157 = vst [vmem:[#allocation23_spill] sm:$0xff] %v17156_v1  ;;  %v17159_v29 = vsel %vm16291_vm10, 4294967295, %v17158_v29  ;;  %vm17161_vm6 = vnez %v17055_v55  ;;  %vm16302_vm4 = vmpackc.low %vm9669_vm1, %vm9660_vm5  ;;  %v17162_v1 = vmov 0  ;;  %vm9668_vm13 = vcmp.eq.s32.totalorder %v13940_v12, %v15512_v31 }
 0x5df   : > { %17160 = vst [vmem:[#allocation24_spill] sm:$0xff] %v17159_v29  ;;  %12789 = vmatpush1.bf16.msk.msra.mxu0 %vm17161_vm6, %v17064_v21  ;;  %v17163_v1 = vsel %vm16302_vm4, 4294967295, %v17162_v1  ;;  %vm9677_vm8 = vcmp.eq.s32.totalorder %v13940_v12, %v15669_v57  ;;  %vm17165_vm10 = vnez %v17063_v58  ;;  %vm16313_vm15 = vmpackc.low %vm9668_vm13, %vm9659_vm11  ;;  %v17166_v29 = vmov 0 }
 0x5e0   : > { %17164 = vst [vmem:[#allocation25_spill] sm:$0xff] %v17163_v1  ;;  %12791 = vmatprep.subr.msk.bf16.mxu0 %vm17165_vm10, %v17064_v21  ;;  %v17167_v29 = vsel %vm16313_vm15, 4294967295, %v17166_v29  ;;  %vm9687_vm5 = vcmp.eq.s32.totalorder %v13929_v11, %v15542_v46  ;;  %vm9696_vm1 = vcmp.eq.s32.totalorder %v13929_v11, %v15725_v22  ;;  %v17169_v55 = vmov 0  ;;  %v17323_v1 = vld [vmem:[#allocation5_spill] sm:$0xff] }
 0x5e1   : > { %17168 = vst [vmem:[#allocation26_spill] sm:$0xff] %v17167_v29  ;;  %vm16321_vm6 = vmpackc.low %vm9687_vm5, %vm9678_vm0  ;;  %vm9686_vm4 = vcmp.eq.s32.totalorder %v13940_v12, %v15542_v46  ;;  %vm9695_vm10 = vcmp.eq.s32.totalorder %v13940_v12, %v15725_v22  ;;  %v17172_v58 = vmov 0  ;;  %vm9705_vm13 = vcmp.eq.s32.totalorder %v13929_v11, %v15593_v51 }
 0x5e2   : > { %v17170_v55 = vsel %vm16321_vm6, 4294967295, %v17169_v55  ;;  %vm16329_vm11 = vmpackc.low %vm9686_vm4, %vm9677_vm8  ;;  %vm9714_vm15 = vcmp.eq.s32.totalorder %v13929_v11, %v15783_v54  ;;  %vm9704_vm4 = vcmp.eq.s32.totalorder %v13940_v12, %v15593_v51  ;;  %vm9713_vm8 = vcmp.eq.s32.totalorder %v13940_v12, %v15783_v54 }
 0x5e3   : > { %17171 = vst [vmem:[#allocation27_spill] sm:$0xff] %v17170_v55  ;;  %v17173_v58 = vsel %vm16329_vm11, 4294967295, %v17172_v58  ;;  %12793 = vmatpush1.bf16.msk.msra.mxu0 %vm15961_vm9, %v17064_v21  ;;  %vm16340_vm0 = vmpackc.low %vm9705_vm13, %vm9696_vm1  ;;  %v17175_v55 = vmov 0  ;;  %v17178_v29 = vmov 0  ;;  %vm9723_vm9 = vcmp.eq.s32.totalorder %v13929_v11, %v15664_v33 }
 0x5e4   : > { %17174 = vst [vmem:[#allocation28_spill] sm:$0xff] %v17173_v58  ;;  %v17176_v55 = vsel %vm16340_vm0, 4294967295, %v17175_v55  ;;  %12795 = vmatprep.subr.msk.bf16.mxu0 %vm15991_vm14, %v17064_v21  ;;  %v6440_v58 = vpop.f32.mrb[18].mxu0  ;;  %vm16351_vm5 = vmpackc.low %vm9704_vm4, %vm9695_vm10  ;;  %vm9732_vm1 = vcmp.eq.s32.totalorder %v13929_v11, %v15844_v50  ;;  %vm9722_vm14 = vcmp.eq.s32.totalorder %v13940_v12, %v15664_v33  ;;  %vm9731_vm10 = vcmp.eq.s32.totalorder %v13940_v12, %v15844_v50 }
 0x5e5   : > { %17177 = vst [vmem:[#allocation29_spill] sm:$0xff] %v17176_v55  ;;  %v17179_v29 = vsel %vm16351_vm5, 4294967295, %v17178_v29  ;;  %v16360_v7 = vadd.f32 %v6440_v58, %v16159_v10  ;;  %v12342_v55 = vpop.f32.mrb[19].mxu0  ;;  %vm16362_vm13 = vmpackc.low %vm9723_vm9, %vm9714_vm15  ;;  %vm9741_vm5 = vcmp.eq.s32.totalorder %v13929_v11, %v15755_v40  ;;  %vm9750_vm0 = vcmp.eq.s32.totalorder %v13929_v11, %v15899_v6 }
 0x5e6   : > { %vm16370_vm4 = vmpackc.low %vm9722_vm14, %vm9713_vm8  ;;  %v17184_v10 = vmov 0  ;;  %vm9740_vm8 = vcmp.eq.s32.totalorder %v13940_v12, %v15755_v40  ;;  %vm9749_vm9 = vcmp.eq.s32.totalorder %v13940_v12, %v15899_v6  ;;  %v17186_v55 = vmov 0 }
 0x5e7   : > { %12797 = vmatpush1.bf16.msk.msra.mxu0 %vm16002_vm7, %v17064_v21  ;;  %vm16381_vm15 = vmpackc.low %vm9741_vm5, %vm9732_vm1  ;;  %vm9759_vm7 = vcmp.eq.s32.totalorder %v13929_v11, %v15839_v48  ;;  %vm9768_vm5 = vcmp.eq.s32.totalorder %v13929_v11, %v15940_v59  ;;  %v17192_v58 = vmov 0 }
 0x5e8   : > { %v17185_v10 = vsel %vm16381_vm15, 4294967295, %v17184_v10  ;;  %12799 = vmatprep.subr.msk.bf16.mxu0 %vm16012_vm12, %v17064_v21  ;;  %vm16392_vm14 = vmpackc.low %vm9740_vm8, %vm9731_vm10  ;;  %vm9758_vm15 = vcmp.eq.s32.totalorder %v13940_v12, %v15839_v48  ;;  %vm9767_vm12 = vcmp.eq.s32.totalorder %v13940_v12, %v15940_v59  ;;  %vm9777_vm8 = vcmp.eq.s32.totalorder %v13929_v11, %v15927_v44 }
 0x5e9   : > { %v17187_v55 = vsel %vm16392_vm14, 4294967295, %v17186_v55  ;;  %vm16400_vm1 = vmpackc.low %vm9759_vm7, %vm9750_vm0  ;;  %vm9508_vm14 = vcmp.eq.s32.totalorder %v14108_v14, %v15324_v47  ;;  %vm17194_vm7 = vnez %v17083_v63  ;;  %v17195_v11 = vmov 0 }
 0x5ea   : > { %v17189_v37 = vsel %vm16400_vm1, 4294967295, %v17188_v37  ;;  %vm16408_vm10 = vmpackc.low %vm9758_vm15, %vm9749_vm9  ;;  %vm9776_vm15 = vcmp.eq.s32.totalorder %v13940_v12, %v15927_v44  ;;  %vm9527_vm9 = vcmp.eq.s32.totalorder %v14097_v13, %v15379_v3  ;;  %v17197_v47 = vmov 0 }
 0x5eb   : > { %v17191_v56 = vsel %vm16408_vm10, 4294967295, %v17190_v56  ;;  %12801 = vmatpush1.bf16.msk.msra.mxu0 %vm16021_vm3, %v17064_v21  ;;  %vm16419_vm0 = vmpackc.low %vm9777_vm8, %vm9768_vm5  ;;  %vm9499_vm3 = vcmp.eq.s32.totalorder %v14108_v14, %v15301_v30  ;;  %vm9526_vm5 = vcmp.eq.s32.totalorder %v14108_v14, %v15379_v3  ;;  %v17199_v12 = vmov 0  ;;  %v17204_v3 = vld [vmem:[#allocation14_spill] sm:$0xff] }
 0x5ec   : > { %v17193_v58 = vsel %vm16419_vm0, 4294967295, %v17192_v58  ;;  %12803 = vmatprep.subr.msk.bf16.mxu0 %vm17194_vm7, %v17064_v21  ;;  %vm16430_vm10 = vmpackc.low %vm9776_vm15, %vm9767_vm12  ;;  %vm9518_vm0 = vcmp.eq.s32.totalorder %v14097_v13, %v15314_v17  ;;  %vm9536_vm7 = vcmp.eq.s32.totalorder %v14097_v13, %v15415_v2  ;;  %vm9517_vm15 = vcmp.eq.s32.totalorder %v14108_v14, %v15314_v17 }
 0x5ed   : > { %v17196_v11 = vsel %vm16430_vm10, 4294967295, %v17195_v11  ;;  %vm16438_vm8 = vmpackc.low %vm9508_vm14, %vm9499_vm3  ;;  %vm9535_vm10 = vcmp.eq.s32.totalorder %v14108_v14, %v15415_v2  ;;  %vm17201_vm14 = vnez %v17086_v28  ;;  %v17202_v30 = vmov 0 }
 0x5ee   : > { %v17198_v47 = vsel %vm16438_vm8, 4294967295, %v17197_v47  ;;  %vm16446_vm12 = vmpackc.low %vm9527_vm9, %vm9518_vm0  ;;  %vm9545_vm0 = vcmp.eq.s32.totalorder %v14097_v13, %v15327_v0  ;;  %vm9554_vm9 = vcmp.eq.s32.totalorder %v14097_v13, %v15437_v45  ;;  %v17206_v17 = vmov 0 }
 0x5ef   : > { %v17200_v12 = vsel %vm16446_vm12, 4294967295, %v17199_v12  ;;  %12805 = vmatpush1.bf16.msk.msra.mxu0 %vm17201_vm14, %v17064_v21  ;;  %vm16457_vm3 = vmpackc.low %vm9526_vm5, %vm9517_vm15  ;;  %vm17205_vm12 = vnez %v17204_v3  ;;  %vm9544_vm5 = vcmp.eq.s32.totalorder %v14108_v14, %v15327_v0  ;;  %vm9553_vm15 = vcmp.eq.s32.totalorder %v14108_v14, %v15437_v45 }
 0x5f0   : > { %v17203_v30 = vsel %vm16457_vm3, 4294967295, %v17202_v30  ;;  %12807 = vmatprep.subr.msk.bf16.mxu0 %vm17205_vm12, %v17064_v21  ;;  %vm16468_vm8 = vmpackc.low %vm9545_vm0, %vm9536_vm7  ;;  %v17208_v2 = vmov 0  ;;  %vm9563_vm3 = vcmp.eq.s32.totalorder %v14097_v13, %v15348_v60  ;;  %vm9572_vm12 = vcmp.eq.s32.totalorder %v14097_v13, %v15459_v20 }
 0x5f1   : > { %v17207_v17 = vsel %vm16468_vm8, 4294967295, %v17206_v17  ;;  %vm16476_vm14 = vmpackc.low %vm9544_vm5, %vm9535_vm10  ;;  %v17210_v28 = vmov 0  ;;  %vm9562_vm0 = vcmp.eq.s32.totalorder %v14108_v14, %v15348_v60  ;;  %vm9571_vm8 = vcmp.eq.s32.totalorder %v14108_v14, %v15459_v20 }
 0x5f2   : > { %v17209_v2 = vsel %vm16476_vm14, 4294967295, %v17208_v2  ;;  %vm16484_vm7 = vmpackc.low %vm9563_vm3, %vm9554_vm9  ;;  %vm17212_vm10 = vnez %v17091_v61  ;;  %v17213_v0 = vmov 0  ;;  %vm9581_vm3 = vcmp.eq.s32.totalorder %v14097_v13, %v15392_v5 }
 0x5f3   : > { %v17211_v28 = vsel %vm16484_vm7, 4294967295, %v17210_v28  ;;  %12809 = vmatpush1.bf16.msk.msra.mxu0 %vm17212_vm10, %v17064_v21  ;;  %vm16495_vm5 = vmpackc.low %vm9562_vm0, %vm9553_vm15  ;;  %vm9590_vm9 = vcmp.eq.s32.totalorder %v14097_v13, %v15481_v35  ;;  %vm17215_vm7 = vnez %v17094_v43  ;;  %v17216_v60 = vmov 0  ;;  %v17233_v43 = vld [vmem:[#allocation15_spill] sm:$0xff] }
 0x5f4   : > { %v17214_v0 = vsel %vm16495_vm5, 4294967295, %v17213_v0  ;;  %12811 = vmatprep.subr.msk.bf16.mxu0 %vm17215_vm7, %v17064_v21  ;;  %vm16506_vm14 = vmpackc.low %vm9581_vm3, %vm9572_vm12  ;;  %vm9580_vm15 = vcmp.eq.s32.totalorder %v14108_v14, %v15392_v5  ;;  %vm9589_vm0 = vcmp.eq.s32.totalorder %v14108_v14, %v15481_v35  ;;  %v17218_v45 = vmov 0 }
 0x5f5   : > { %v17217_v60 = vsel %vm16506_vm14, 4294967295, %v17216_v60  ;;  %vm16514_vm10 = vmpackc.low %vm9580_vm15, %vm9571_vm8  ;;  %vm9599_vm5 = vcmp.eq.s32.totalorder %v14097_v13, %v15422_v4  ;;  %vm9608_vm7 = vcmp.eq.s32.totalorder %v14097_v13, %v15503_v27  ;;  %v17220_v20 = vmov 0 }
 0x5f6   : > { %v17219_v45 = vsel %vm16514_vm10, 4294967295, %v17218_v45  ;;  %vm16522_vm12 = vmpackc.low %vm9599_vm5, %vm9590_vm9  ;;  %vm9598_vm3 = vcmp.eq.s32.totalorder %v14108_v14, %v15422_v4  ;;  %vm9607_vm14 = vcmp.eq.s32.totalorder %v14108_v14, %v15503_v27  ;;  %vm17222_vm8 = vnez %v17097_v36  ;;  %v6838_v4 = vpop.f32.mrb[20].mxu0 }
 0x5f7   : > { %v17221_v20 = vsel %vm16522_vm12, 4294967295, %v17220_v20  ;;  %12813 = vmatpush1.bf16.msk.msra.mxu0 %vm17222_vm8, %v17064_v21  ;;  %vm16533_vm15 = vmpackc.low %vm9598_vm3, %vm9589_vm0  ;;  %v17223_v5 = vmov 0  ;;  %vm9617_vm5 = vcmp.eq.s32.totalorder %v14097_v13, %v15444_v15  ;;  %vm9626_vm9 = vcmp.eq.s32.totalorder %v14097_v13, %v15535_v42  ;;  %v12347_v63 = vpop.f32.mrb[21].mxu0 }
 0x5f8   : > { %v17224_v5 = vsel %vm16533_vm15, 4294967295, %v17223_v5  ;;  %vm17225_vm12 = vnez %v17099_v62  ;;  %vm16544_vm10 = vmpackc.low %vm9617_vm5, %vm9608_vm7  ;;  %v17226_v35 = vmov 0  ;;  %vm9616_vm0 = vcmp.eq.s32.totalorder %v14108_v14, %v15444_v15  ;;  %v17232_v15 = vld [vmem:[#allocation6_spill] sm:$0xff] }
 0x5f9   : > { %12815 = vmatprep.subr.msk.bf16.mxu0 %vm17225_vm12, %v17064_v21  ;;  %v17227_v35 = vsel %vm16544_vm10, 4294967295, %v17226_v35  ;;  %vm9625_vm3 = vcmp.eq.s32.totalorder %v14108_v14, %v15535_v42  ;;  %v6850_v27 = vadd.f32 %v6838_v4, %v16360_v7  ;;  %vm16553_vm8 = vmpackc.low %vm9616_vm0, %vm9607_vm14  ;;  %vm9635_vm12 = vcmp.eq.s32.totalorder %v14097_v13, %v15466_v19  ;;  %v17267_v63 = vld [vmem:[#allocation10_spill] sm:$0xff] }
 0x5fa   : > { %v17229_v53 = vsel %vm16553_vm8, 4294967295, %v17228_v53  ;;  %vm9644_vm7 = vcmp.eq.s32.totalorder %v14097_v13, %v15570_v24  ;;  %vm16561_vm5 = vmpackc.low %vm9635_vm12, %vm9626_vm9  ;;  %v17230_v36 = vmov 0  ;;  %vm9634_vm10 = vcmp.eq.s32.totalorder %v14108_v14, %v15466_v19 }
 0x5fb   : > { %v17231_v36 = vsel %vm16561_vm5, 4294967295, %v17230_v36  ;;  %vm9643_vm15 = vcmp.eq.s32.totalorder %v14108_v14, %v15570_v24  ;;  %v7257_v42 = vadd.f32 %v17232_v15, %v6850_v27  ;;  %vm17234_vm14 = vnez %v17233_v43  ;;  %vm16573_vm0 = vmpackc.low %vm9634_vm10, %vm9625_vm3  ;;  %v17240_v24 = vld [vmem:[#allocation7_spill] sm:$0xff] }
 0x5fc   : > { %12817 = vmatpush1.bf16.msk.msra.mxu0 %vm17234_vm14, %v17064_v21  ;;  %v17235_v61 = vmov 0  ;;  %vm9653_vm9 = vcmp.eq.s32.totalorder %v14097_v13, %v15488_v26  ;;  %vm9662_vm12 = vcmp.eq.s32.totalorder %v14097_v13, %v15615_v49  ;;  %vm17237_vm5 = vnez %v17105_v38  ;;  %v17261_v27 = vld [vmem:[#allocation3_spill] sm:$0xff] }
 0x5fd   : > { %v17236_v61 = vsel %vm16573_vm0, 4294967295, %v17235_v61  ;;  %12819 = vmatprep.subr.msk.bf16.mxu0 %vm17237_vm5, %v17064_v21  ;;  %vm16584_vm8 = vmpackc.low %vm9653_vm9, %vm9644_vm7  ;;  %v17238_v19 = vmov 0  ;;  %vm9652_vm10 = vcmp.eq.s32.totalorder %v14108_v14, %v15488_v26  ;;  %vm9661_vm3 = vcmp.eq.s32.totalorder %v14108_v14, %v15615_v49  ;;  %v17245_v26 = vld [vmem:[#allocation8_spill] sm:$0xff] }
 0x5fe   : > { %v17239_v19 = vsel %vm16584_vm8, 4294967295, %v17238_v19  ;;  %v7625_v62 = vadd.f32 %v17240_v24, %v7257_v42  ;;  %vm16593_vm14 = vmpackc.low %vm9652_vm10, %vm9643_vm15  ;;  %v17241_v7 = vmov 0  ;;  %vm9671_vm0 = vcmp.eq.s32.totalorder %v14097_v13, %v15512_v31  ;;  %v17268_v42 = vld [vmem:[#allocation12_spill] sm:$0xff] }
 0x5ff   : > { %v17242_v7 = vsel %vm16593_vm14, 4294967295, %v17241_v7  ;;  %vm9680_vm7 = vcmp.eq.s32.totalorder %v14097_v13, %v15669_v57  ;;  %vm16601_vm5 = vmpackc.low %vm9671_vm0, %vm9662_vm12  ;;  %v17243_v38 = vmov 0  ;;  %vm9670_vm9 = vcmp.eq.s32.totalorder %v14108_v14, %v15512_v31 }
 0x600   : > { %v17244_v38 = vsel %vm16601_vm5, 4294967295, %v17243_v38  ;;  %vm9679_vm8 = vcmp.eq.s32.totalorder %v14108_v14, %v15669_v57  ;;  %v8051_v49 = vadd.f32 %v17245_v26, %v7625_v62  ;;  %vm17246_vm15 = vnez %v17108_v8  ;;  %vm16613_vm10 = vmpackc.low %vm9670_vm9, %vm9661_vm3  ;;  %v17252_v57 = vld [vmem:[#allocation9_spill] sm:$0xff] }
 0x601   : > { %12821 = vmatpush1.bf16.msk.msra.mxu0 %vm17246_vm15, %v17064_v21  ;;  %v17247_v3 = vmov 0  ;;  %vm9689_vm0 = vcmp.eq.s32.totalorder %v14097_v13, %v15542_v46  ;;  %vm9698_vm12 = vcmp.eq.s32.totalorder %v14097_v13, %v15725_v22  ;;  %vm17249_vm5 = vnez %v17110_v18 }
 0x602   : > { %v17248_v3 = vsel %vm16613_vm10, 4294967295, %v17247_v3  ;;  %12823 = vmatprep.subr.msk.bf16.mxu0 %vm17249_vm5, %v17064_v21  ;;  %vm16624_vm14 = vmpackc.low %vm9689_vm0, %vm9680_vm7  ;;  %v17250_v31 = vmov 0  ;;  %vm9688_vm3 = vcmp.eq.s32.totalorder %v14108_v14, %v15542_v46  ;;  %vm9697_vm9 = vcmp.eq.s32.totalorder %v14108_v14, %v15725_v22  ;;  %v17257_v46 = vld [vmem:[#allocation16_spill] sm:$0xff] }
 0x603   : > { %v17251_v31 = vsel %vm16624_vm14, 4294967295, %v17250_v31  ;;  %v8458_v8 = vadd.f32 %v17252_v57, %v8051_v49  ;;  %vm16633_vm15 = vmpackc.low %vm9688_vm3, %vm9679_vm8  ;;  %v17253_v4 = vmov 0  ;;  %vm9707_vm10 = vcmp.eq.s32.totalorder %v14097_v13, %v15593_v51 }
 0x604   : > { %v17254_v4 = vsel %vm16633_vm15, 4294967295, %v17253_v4  ;;  %vm9716_vm7 = vcmp.eq.s32.totalorder %v14097_v13, %v15783_v54  ;;  %vm16641_vm5 = vmpackc.low %vm9707_vm10, %vm9698_vm12  ;;  %v17255_v18 = vmov 0  ;;  %vm9706_vm0 = vcmp.eq.s32.totalorder %v14108_v14, %v15593_v51 }
 0x605   : > { %v17256_v18 = vsel %vm16641_vm5, 4294967295, %v17255_v18  ;;  %vm9715_vm14 = vcmp.eq.s32.totalorder %v14108_v14, %v15783_v54  ;;  %vm17258_vm8 = vnez %v17257_v46  ;;  %vm16652_vm3 = vmpackc.low %vm9706_vm0, %vm9697_vm9  ;;  %v17259_v22 = vmov 0 }
 0x606   : > { %12825 = vmatpush1.bf16.msk.msra.mxu0 %vm17258_vm8, %v17064_v21  ;;  %v17260_v22 = vsel %vm16652_vm3, 4294967295, %v17259_v22  ;;  %vm9725_vm10 = vcmp.eq.s32.totalorder %v14097_v13, %v15664_v33  ;;  %vm9734_vm12 = vcmp.eq.s32.totalorder %v14097_v13, %v15844_v50  ;;  %vm17262_vm5 = vnez %v17261_v27 }
 0x607   : > { %12827 = vmatprep.subr.msk.bf16.mxu0 %vm17262_vm5, %v17064_v21  ;;  %vm16663_vm15 = vmpackc.low %vm9725_vm10, %vm9716_vm7  ;;  %v17263_v51 = vmov 0  ;;  %vm9724_vm9 = vcmp.eq.s32.totalorder %v14108_v14, %v15664_v33  ;;  %vm9733_vm0 = vcmp.eq.s32.totalorder %v14108_v14, %v15844_v50  ;;  %v17265_v54 = vmov 0  ;;  %v17271_v33 = vld [vmem:[#allocation4_spill] sm:$0xff]  ;;  %v17273_v50 = vld [vmem:[#allocation13_spill] sm:$0xff] }
 0x608   : > { %v17264_v51 = vsel %vm16663_vm15, 4294967295, %v17263_v51  ;;  %vm16671_vm8 = vmpackc.low %vm9724_vm9, %vm9715_vm14  ;;  %vm9743_vm3 = vcmp.eq.s32.totalorder %v14097_v13, %v15755_v40  ;;  %vm9752_vm5 = vcmp.eq.s32.totalorder %v14097_v13, %v15899_v6  ;;  %v8864_v15 = vadd.f32 %v17267_v63, %v8458_v8 }
 0x609   : > { %v17266_v54 = vsel %vm16671_vm8, 4294967295, %v17265_v54  ;;  %10493 = vmatmul.mubr.f32.vlgmr.msra.gmra.mrb[10].mxu0 %v17268_v42  ;;  %vm16681_vm7 = vmpackc.low %vm9743_vm3, %vm9734_vm12  ;;  %v17269_v43 = vmov 0  ;;  %vm9742_vm14 = vcmp.eq.s32.totalorder %v14108_v14, %v15755_v40  ;;  %vm9751_vm10 = vcmp.eq.s32.totalorder %v14108_v14, %v15899_v6  ;;  %v17276_v40 = vld [vmem:[#allocation11_spill] sm:$0xff]  ;;  %v17277_v6 = vld [vmem:[#allocation17_spill] sm:$0xff] }
 0x60a   : > { %v17270_v43 = vsel %vm16681_vm7, 4294967295, %v17269_v43  ;;  %vm17272_vm9 = vnez %v17271_v33  ;;  %10563 = vmatprep.mubr.f32.mxu0 %v17273_v50  ;;  %vm16693_vm8 = vmpackc.low %vm9742_vm14, %vm9733_vm0  ;;  %v17274_v24 = vmov 0  ;;  %vm9761_vm3 = vcmp.eq.s32.totalorder %v14097_v13, %v15839_v48 }
 0x60b   : > { %12829 = vmatpush1.bf16.msk.msra.mxu0 %vm17272_vm9, %v17064_v21  ;;  %v17275_v24 = vsel %vm16693_vm8, 4294967295, %v17274_v24  ;;  %vm9770_vm12 = vcmp.eq.s32.totalorder %v14097_v13, %v15940_v59  ;;  %v16702_v62 = vadd.f32 %v17276_v40, %v8864_v15  ;;  %vm17278_vm7 = vnez %v17277_v6  ;;  %vm16707_vm9 = vmpackc.low %vm9761_vm3, %vm9752_vm5 }
 0x60c   : > { %12831 = vmatprep.subr.msk.bf16.mxu0 %vm17278_vm7, %v17064_v21  ;;  %vm9760_vm0 = vcmp.eq.s32.totalorder %v14108_v14, %v15839_v48  ;;  %vm9769_vm14 = vcmp.eq.s32.totalorder %v14108_v14, %v15940_v59  ;;  %vm9779_vm15 = vcmp.eq.s32.totalorder %v14097_v13, %v15927_v44  ;;  %vm9778_vm5 = vcmp.eq.s32.totalorder %v14108_v14, %v15927_v44  ;;  %v17289_v13 = vld [vmem:[#allocation18_spill] sm:$0xff]  ;;  %v17294_v14 = vld [vmem:[#allocation20_spill] sm:$0xff]  ;;  %v17298_v59 = vld [vmem:[#allocation21_spill] sm:$0xff] }
 0x60d   : > { %vm16715_vm8 = vmpackc.low %vm9760_vm0, %vm9751_vm10  ;;  %vm17285_vm7 = vnez %v17120_v23  ;;  %vm17288_vm10 = vnez %v17122_v9  ;;  %vm17292_vm0 = vnez %v17131_v32  ;;  %v17300_v23 = vld [vmem:[#allocation22_spill] sm:$0xff]  ;;  %v17304_v9 = vld [vmem:[#allocation23_spill] sm:$0xff] }
 0x60e   : > { %vm16721_vm1 = vmpackc.low %vm9779_vm15, %vm9770_vm12  ;;  %vm17290_vm15 = vnez %v17289_v13  ;;  %vm17291_vm12 = vnez %v17128_v25  ;;  %v17306_v32 = vld [vmem:[#allocation24_spill] sm:$0xff]  ;;  %v17308_v25 = vld [vmem:[#allocation25_spill] sm:$0xff] }
 0x60f   : > { %12833 = vmatpush1.bf16.msk.msra.mxu0 %vm17285_vm7, %v17064_v21  ;;  %vm16730_vm3 = vmpackc.low %vm9778_vm5, %vm9769_vm14  ;;  %vm17295_vm14 = vnez %v17294_v14  ;;  %vm17296_vm5 = vnez %v17139_v41  ;;  %vm17297_vm7 = vnez %v17142_v34  ;;  %v17310_v41 = vld [vmem:[#allocation26_spill] sm:$0xff] }
 0x610   : > { %12835 = vmatprep.subr.msk.bf16.mxu0 %vm17288_vm10, %v17064_v21  ;;  %vm17299_vm10 = vnez %v17298_v59 }
 0x613   : > { %12837 = vmatpush1.bf16.msk.msra.mxu0 %vm17290_vm15, %v17064_v21  ;;  %vm17301_vm15 = vnez %v17300_v23 }
 0x614   : > { %12839 = vmatprep.subr.msk.bf16.mxu0 %vm17291_vm12, %v17064_v21  ;;  %vm17303_vm12 = vnez %v17154_v52  ;;  %v17314_v52 = vld [vmem:[#allocation29_spill] sm:$0xff] }
 0x617   : > { %12841 = vmatpush1.bf16.msk.msra.mxu0 %vm17292_vm0, %v17064_v21  ;;  %vm17305_vm0 = vnez %v17304_v9 }
 0x618   : > { %12843 = vmatprep.subr.msk.bf16.mxu0 %vm16207_vm2, %v17064_v21  ;;  %vm17302_vm2 = vnez %v17151_v16 }
 0x61b   : > { %12845 = vmatpush1.bf16.msk.msra.mxu0 %vm17295_vm14, %v17064_v21  ;;  %vm17307_vm14 = vnez %v17306_v32 }
 0x61c   : > { %12847 = vmatprep.subr.msk.bf16.mxu0 %vm17296_vm5, %v17064_v21  ;;  %vm17309_vm5 = vnez %v17308_v25 }
 0x61f   : > { %12849 = vmatpush1.bf16.msk.msra.mxu0 %vm17297_vm7, %v17064_v21  ;;  %vm17311_vm7 = vnez %v17310_v41 }
 0x620   : > { %12851 = vmatprep.subr.msk.bf16.mxu0 %vm17299_vm10, %v17064_v21  ;;  %vm17315_vm10 = vnez %v17314_v52 }
 0x623   : > { %12853 = vmatpush1.bf16.msk.msra.mxu0 %vm17301_vm15, %v17064_v21  ;;  %vm17316_vm15 = vnez %v17179_v29 }
 0x624   : > { %12855 = vmatprep.subr.msk.bf16.mxu0 %vm17302_vm2, %v17064_v21  ;;  %vm17319_vm2 = vnez %v17189_v37 }
 0x627   : > { %12857 = vmatpush1.bf16.msk.msra.mxu0 %vm17303_vm12, %v17064_v21  ;;  %vm17320_vm12 = vnez %v17191_v56 }
 0x628   : > { %12859 = vmatprep.subr.msk.bf16.mxu0 %vm17305_vm0, %v17064_v21  ;;  %vm17324_vm0 = vnez %v17323_v1 }
 0x62b   : > { %12861 = vmatpush1.bf16.msk.msra.mxu0 %vm17307_vm14, %v17064_v21  ;;  %vm17325_vm14 = vnez %v17198_v47 }
 0x62c   : > { %12863 = vmatprep.subr.msk.bf16.mxu0 %vm17309_vm5, %v17064_v21  ;;  %vm17326_vm5 = vnez %v17200_v12 }
 0x62f   : > { %12865 = vmatpush1.bf16.msk.msra.mxu0 %vm17311_vm7, %v17064_v21  ;;  %vm17327_vm7 = vnez %v17203_v30 }
 0x630   : > { %12867 = vmatprep.subr.msk.bf16.mxu0 %vm16321_vm6, %v17064_v21  ;;  %vm17317_vm6 = vnez %v17185_v10 }
 0x633   : > { %12869 = vmatpush1.bf16.msk.msra.mxu0 %vm16329_vm11, %v17064_v21  ;;  %vm17318_vm11 = vnez %v17187_v55  ;;  %v9285_v55 = vadd.f32 %v9275_v39, %v16702_v62 }
 0x634   : > { %12871 = vmatprep.subr.msk.bf16.mxu0 %vm17315_vm10, %v17064_v21  ;;  %vm17328_vm10 = vnez %v17207_v17 }
 0x637   : > { %12873 = vmatpush1.bf16.msk.msra.mxu0 %vm17316_vm15, %v17064_v21  ;;  %vm17329_vm15 = vnez %v17209_v2 }
 0x638   : > { %12875 = vmatprep.subr.msk.bf16.mxu0 %vm16362_vm13, %v17064_v21  ;;  %vm17321_vm13 = vnez %v17193_v58 }
 0x63b   : > { %12877 = vmatpush1.bf16.msk.msra.mxu0 %vm16370_vm4, %v17064_v21  ;;  %vm17322_vm4 = vnez %v17196_v11  ;;  %v10724_v11 = vpop.permute.xlu0 %10723 }
 0x63c   : > { %12879 = vmatprep.subr.msk.bf16.mxu0 %vm17317_vm6, %v17064_v21  ;;  %vm17330_vm6 = vnez %v17211_v28 }
 0x63f   : > { %12881 = vmatpush1.bf16.msk.msra.mxu0 %vm17318_vm11, %v17064_v21  ;;  %vm17331_vm11 = vnez %v17214_v0 }
 0x640   : > { %12883 = vmatprep.subr.msk.bf16.mxu0 %vm17319_vm2, %v17064_v21  ;;  %vm17332_vm2 = vnez %v17217_v60 }
 0x643   : > { %12885 = vmatpush1.bf16.msk.msra.mxu0 %vm17320_vm12, %v17064_v21  ;;  %vm17333_vm12 = vnez %v17219_v45 }
 0x644   : > { %12887 = vmatprep.subr.msk.bf16.mxu0 %vm17321_vm13, %v17064_v21  ;;  %vm17334_vm13 = vnez %v17221_v20 }
 0x647   : > { %12889 = vmatpush1.bf16.msk.msra.mxu0 %vm17322_vm4, %v17064_v21  ;;  %vm17335_vm4 = vnez %v17224_v5 }
 0x648   : > { %12891 = vmatprep.subr.msk.bf16.mxu0 %vm17324_vm0, %v17064_v21  ;;  %vm17336_vm0 = vnez %v17227_v35 }
 0x64a   : > { %10564 = vmatmul.mubr.f32.vlgmr.msra.gmra.mrb[12].mxu0 %v17268_v42 }
 0x64b   : > { %12893 = vmatpush1.bf16.msk.msra.mxu0 %vm17325_vm14, %v17064_v21  ;;  %10634 = vmatprep.mubr.f32.mxu0 %v17273_v50  ;;  %vm17337_vm14 = vnez %v17229_v53 }
 0x64c   : > { %12895 = vmatprep.subr.msk.bf16.mxu0 %vm17326_vm5, %v17064_v21  ;;  %vm17338_vm5 = vnez %v17231_v36 }
 0x64f   : > { %12897 = vmatpush1.bf16.msk.msra.mxu0 %vm17327_vm7, %v17064_v21  ;;  %vm17339_vm7 = vnez %v17236_v61 }
 0x650   : > { %12899 = vmatprep.subr.msk.bf16.mxu0 %vm17328_vm10, %v17064_v21  ;;  %vm17340_vm10 = vnez %v17239_v19 }
 0x653   : > { %12901 = vmatpush1.bf16.msk.msra.mxu0 %vm17329_vm15, %v17064_v21  ;;  %vm17341_vm15 = vnez %v17242_v7 }
 0x654   : > { %12903 = vmatprep.subr.msk.bf16.mxu0 %vm17330_vm6, %v17064_v21  ;;  %vm17342_vm6 = vnez %v17244_v38 }
 0x657   : > { %12905 = vmatpush1.bf16.msk.msra.mxu0 %vm17331_vm11, %v17064_v21  ;;  %vm17343_vm11 = vnez %v17248_v3 }
 0x658   : > { %12907 = vmatprep.subr.msk.bf16.mxu0 %vm17332_vm2, %v17064_v21  ;;  %vm17344_vm2 = vnez %v17251_v31 }
 0x65b   : > { %12909 = vmatpush1.bf16.msk.msra.mxu0 %vm17333_vm12, %v17064_v21  ;;  %vm17345_vm12 = vnez %v17254_v4 }
 0x65c   : > { %12911 = vmatprep.subr.msk.bf16.mxu0 %vm17334_vm13, %v17064_v21  ;;  %vm17346_vm13 = vnez %v17256_v18 }
 0x65f   : > { %12913 = vmatpush1.bf16.msk.msra.mxu0 %vm17335_vm4, %v17064_v21  ;;  %vm17347_vm4 = vnez %v17260_v22 }
 0x660   : > { %12915 = vmatprep.subr.msk.bf16.mxu0 %vm17336_vm0, %v17064_v21  ;;  %vm17348_vm0 = vnez %v17264_v51 }
 0x663   : > { %12917 = vmatpush1.bf16.msk.msra.mxu0 %vm17337_vm14, %v17064_v21  ;;  %vm17349_vm14 = vnez %v17266_v54 }
 0x664   : > { %12919 = vmatprep.subr.msk.bf16.mxu0 %vm17338_vm5, %v17064_v21  ;;  %vm17350_vm5 = vnez %v17270_v43 }
 0x667   : > { %12921 = vmatpush1.bf16.msk.msra.mxu0 %vm17339_vm7, %v17064_v21  ;;  %vm17351_vm7 = vnez %v17275_v24 }
 0x668   : > { %12923 = vmatprep.subr.msk.bf16.mxu0 %vm17340_vm10, %v17064_v21 }
 0x66b   : > { %12925 = vmatpush1.bf16.msk.msra.mxu0 %vm17341_vm15, %v17064_v21 }
 0x66c   : > { %12927 = vmatprep.subr.msk.bf16.mxu0 %vm17342_vm6, %v17064_v21 }
 0x66f   : > { %12929 = vmatpush1.bf16.msk.msra.mxu0 %vm17343_vm11, %v17064_v21 }
 0x670   : > { %12931 = vmatprep.subr.msk.bf16.mxu0 %vm17344_vm2, %v17064_v21 }
 0x673   : > { %12933 = vmatpush1.bf16.msk.msra.mxu0 %vm17345_vm12, %v17064_v21 }
 0x674   : > { %12935 = vmatprep.subr.msk.bf16.mxu0 %vm17346_vm13, %v17064_v21 }
 0x677   : > { %12937 = vmatpush1.bf16.msk.msra.mxu0 %vm17347_vm4, %v17064_v21 }
 0x678   : > { %12939 = vmatprep.subr.msk.bf16.mxu0 %vm17348_vm0, %v17064_v21 }
 0x67b   : > { %12941 = vmatpush1.bf16.msk.msra.mxu0 %vm17349_vm14, %v17064_v21 }
 0x67c   : > { %12943 = vmatprep.subr.msk.bf16.mxu0 %vm17350_vm5, %v17064_v21 }
 0x67f   : > { %12945 = vmatpush1.bf16.msk.msra.mxu0 %vm17351_vm7, %v17064_v21 }
 0x680   : > { %12947 = vmatprep.subr.msk.bf16.mxu0 %vm16707_vm9, %v17064_v21 }
 0x683   : > { %12949 = vmatpush1.bf16.msk.msra.mxu0 %vm16715_vm8, %v17064_v21 }
 0x684   : > { %12951 = vmatprep.subr.msk.bf16.mxu0 %vm16721_vm1, %v17064_v21 }
 0x687   : > { %12953 = vmatpush1.bf16.msk.msra.mxu0 %vm16730_vm3, %v17064_v21 }
 0x68a   : > { %10635 = vmatmul.mubr.f32.vlgmr.msra.gmra.mrb[14].mxu0 %v17268_v42 }
 0x692   : > { %v12285_v29 = vpop.f32.mrb[42].mxu1 }
 0x693   : > { %v12286_v10 = vpop.f32.mrb[43].mxu1  ;;  %v10423_v58 = vpop.f32.mrb[8].mxu0 }
 0x694   : > { %v12287_v37 = vadd.f32 %v12286_v10, %v12285_v29  ;;  %v12986_v21 = vadd.f32 %v10423_v58, %v9275_v39  ;;  %v10425_v47 = vpop.f32.mrb[9].mxu0 }
 0x695   : > { %v12987_v30 = vadd.f32 %v10425_v47, %v9275_v39 }
 0x696   : > { %v10719_v56 = vadd.f32 %v12287_v37, %v9285_v55  ;;  %v10726_v17 = vadd.f32 %v12986_v21, %v10724_v11 }
 0x697   : > { %v10727_v2 = vadd.f32 %v12987_v30, %v10724_v11 }
 0x698   : > { %v10734_v12 = vadd.f32 %v10724_v11, %v10719_v56  ;;  %10735 = vst [vmem:[%s16922_s15] sm:$0xff] %v10726_v17 }
 0x699   : > { %10736 = vst [vmem:[%s16922_s15 + $0x8] sm:$0xff] %v10727_v2 }
 0x69a   : > { %10743 = vst [vmem:[%s16922_s15 + $0x40] sm:$0xff] %v10734_v12 }
 0x6dc   : > { %v10494_v28 = vpop.f32.mrb[10].mxu0 }
 0x6dd   : > { %v12988_v0 = vadd.f32 %v10494_v28, %v9275_v39  ;;  %v10496_v60 = vpop.f32.mrb[11].mxu0 }
 0x6de   : > { %v12989_v45 = vadd.f32 %v10496_v60, %v9275_v39 }
 0x6df   : > { %v10728_v20 = vadd.f32 %v12988_v0, %v10724_v11 }
 0x6e0   : > { %v10729_v5 = vadd.f32 %v12989_v45, %v10724_v11 }
 0x6e1   : > { %10737 = vst [vmem:[%s16922_s15 + $0x10] sm:$0xff] %v10728_v20 }
 0x6e2   : > { %10738 = vst [vmem:[%s16922_s15 + $0x18] sm:$0xff] %v10729_v5 }
 0x71d   : > { %v10565_v35 = vpop.f32.mrb[12].mxu0 }
 0x71e   : > { %v12990_v53 = vadd.f32 %v10565_v35, %v9275_v39  ;;  %v10567_v36 = vpop.f32.mrb[13].mxu0 }
 0x71f   : > { %v12991_v61 = vadd.f32 %v10567_v36, %v9275_v39 }
 0x720   : > { %v10730_v19 = vadd.f32 %v12990_v53, %v10724_v11 }
 0x721   : > { %v10731_v7 = vadd.f32 %v12991_v61, %v10724_v11 }
 0x722   : > { %10739 = vst [vmem:[%s16922_s15 + $0x20] sm:$0xff] %v10730_v19 }
 0x723   : > { %10740 = vst [vmem:[%s16922_s15 + $0x28] sm:$0xff] %v10731_v7 }
 0x75d   : > { %v10636_v38 = vpop.f32.mrb[14].mxu0 }
 0x75e   : > { %v12992_v3 = vadd.f32 %v10636_v38, %v9275_v39  ;;  %v10638_v31 = vpop.f32.mrb[15].mxu0 }
 0x75f   : > { %v12993_v8 = vadd.f32 %v10638_v31, %v9275_v39 }
 0x760   : > { %v10732_v4 = vadd.f32 %v12992_v3, %v10724_v11 }
 0x761   : > { %v10733_v18 = vadd.f32 %v12993_v8, %v10724_v11 }
 0x762   : > { %10741 = vst [vmem:[%s16922_s15 + $0x30] sm:$0xff] %v10732_v4 }
 0x763   : > { %10742 = vst [vmem:[%s16922_s15 + $0x38] sm:$0xff] %v10733_v18 }
 0x764 PF: > { %s20_s13 = sadd.s32 1, %s13168_s13  }
 0x765   : > { %p17_p4 = scmp.ge.s32.totalorder %s20_s13, 4  }
 0x767   :  { %19 = sbr.rel (!%p17_p4) target bundleno = 1 (0x1), region = 106 }

</bundles_post_ra>
